<compile_context>
chip_gen: v7x
topology: tpu7x:2x2x1
jax: 0.10.0
libtpu: 0.0.40
codegen_flags: <defaults>
</compile_context>

<pallas_src>
import functools
import math

import jax
import jax.numpy as jnp
from jax.experimental import pallas as pl
from jax.experimental.pallas import tpu as pltpu


LN_EPS = 1e-6  # reference uses LayerNorm(d_model, eps=1e-06)


# ----------------------------- in-kernel helpers ----------------------------

def _ln(x, g, b, eps=LN_EPS):
    mu = jnp.mean(x, axis=-1, keepdims=True)
    xc = x - mu
    var = jnp.mean(xc * xc, axis=-1, keepdims=True)
    return xc * jax.lax.rsqrt(var + eps) * g + b


def _proj(x, w_bf16, b_f32):
    """(N, Din) @ (Din, Dout) bf16 MXU matmul, f32 accumulate, f32 bias."""
    y = jnp.dot(x.astype(jnp.bfloat16), w_bf16,
                preferred_element_type=jnp.float32)
    return y + b_f32


def _split_heads(x2d, nhead, dh):
    """(L, E) -> (H, L, dh): static lane slices stacked on a new leading axis
    (avoids in-kernel lane-splitting reshapes)."""
    return jnp.stack([x2d[:, h * dh:(h + 1) * dh] for h in range(nhead)],
                     axis=0)


def _mha(q, k, v, out_w, out_b, *, nhead):
    """All-head attention, fully in-kernel.

    q: (Lq, E), k/v: (Lk, E).  Returns (out (Lq, E) f32, attn_avg (Lq, Lk))."""
    _, E = q.shape
    dh = E // nhead
    scale = 1.0 / math.sqrt(dh)
    qh = _split_heads(q.astype(jnp.bfloat16), nhead, dh)   # (H, Lq, dh)
    kh = _split_heads(k.astype(jnp.bfloat16), nhead, dh)   # (H, Lk, dh)
    vh = _split_heads(v.astype(jnp.bfloat16), nhead, dh)   # (H, Lk, dh)

    # Two batched MXU contractions for all heads (bf16 in / f32 accumulate).
    s = jnp.einsum('hqd,hkd->hqk', qh, kh,
                   preferred_element_type=jnp.float32) * scale
    m = jnp.max(s, axis=-1, keepdims=True)
    p = jnp.exp(s - m)
    w = p / jnp.sum(p, axis=-1, keepdims=True)              # exact softmax, f32
    o = jnp.einsum('hqk,hkd->hqd', w.astype(jnp.bfloat16), vh,
                   preferred_element_type=jnp.float32)      # (H, Lq, dh)

    o2d = jnp.concatenate([o[h] for h in range(nhead)], axis=-1)  # (Lq, E)
    out = _proj(o2d, out_w, out_b)
    attn_avg = jnp.sum(w, axis=0) * (1.0 / nhead)            # head average
    return out, attn_avg


# ------------------------- fused whole-stack kernels -------------------------

def _enc_stack_kernel(src_ref, pe_ref,
                      qkv_w, qkv_b, out_w, out_b,
                      w1, b1, w2, b2,
                      n1_g, n1_b, n2_g, n2_b,
                      fn_g, fn_b,
                      o_ref, attn_ref,
                      x_scr, *, nhead):
    l = pl.program_id(1)
    n_layers = pl.num_programs(1)

    # layer 0: (re)initialize the resident activation carry with src + pos-enc
    @pl.when(l == 0)
    def _():
        x_scr[...] = src_ref[0] + pe_ref[...]

    x = x_scr[...]                                 # (L, E) f32 residual stream
    E = x.shape[-1]

    # pre-norm self-attention + residual
    x1 = _ln(x, n1_g[0], n1_b[0])
    qkv = _proj(x1, qkv_w[0], qkv_b[0]).astype(jnp.bfloat16)   # (L, 3E)
    att, attn = _mha(qkv[:, :E], qkv[:, E:2 * E], qkv[:, 2 * E:],
                     out_w[0], out_b[0], nhead=nhead)
    x = x + att

    # pre-norm FFN + residual
    x1 = _ln(x, n2_g[0], n2_b[0])
    h = jnp.maximum(_proj(x1, w1[0], b1[0]), 0.0)
    y = x + _proj(h, w2[0], b2[0])

    x_scr[...] = y                                 # carry to the next layer
    attn_ref[0, 0] = attn

    # last layer: apply the stack's final LayerNorm and emit the HBM output
    @pl.when(l == n_layers - 1)
    def _():
        o_ref[0] = _ln(y, fn_g[...], fn_b[...])


def _dec_stack_kernel(tgt_ref, mem_ref, pe_ref,
                      sa_qkv_w, sa_qkv_b, sa_out_w, sa_out_b,
                      ca_q_w, ca_q_b, ca_kv_w, ca_kv_b, ca_out_w, ca_out_b,
                      w1, b1, w2, b2,
                      n1_g, n1_b, n2_g, n2_b, n3_g, n3_b,
                      fn_g, fn_b,
                      o_ref, sattn_ref, cattn_ref,
                      x_scr, *, nhead):
    l = pl.program_id(1)
    n_layers = pl.num_programs(1)

    @pl.when(l == 0)
    def _():
        x_scr[...] = tgt_ref[0] + pe_ref[...]

    x = x_scr[...]                                 # (Lt, E) f32
    mem = mem_ref[0]                               # (Ls, E) f32 (resident)
    E = x.shape[-1]

    # pre-norm self-attention + residual
    x1 = _ln(x, n1_g[0], n1_b[0])
    qkv = _proj(x1, sa_qkv_w[0], sa_qkv_b[0]).astype(jnp.bfloat16)
    so, sattn = _mha(qkv[:, :E], qkv[:, E:2 * E], qkv[:, 2 * E:],
                     sa_out_w[0], sa_out_b[0], nhead=nhead)
    x = x + so

    # pre-norm cross-attention + residual (memory is used un-normalized)
    x1 = _ln(x, n2_g[0], n2_b[0])
    q = _proj(x1, ca_q_w[0], ca_q_b[0]).astype(jnp.bfloat16)
    kv = _proj(mem, ca_kv_w[0], ca_kv_b[0]).astype(jnp.bfloat16)
    co, cattn = _mha(q, kv[:, :E], kv[:, E:],
                     ca_out_w[0], ca_out_b[0], nhead=nhead)
    x = x + co

    # pre-norm FFN + residual
    x1 = _ln(x, n3_g[0], n3_b[0])
    h = jnp.maximum(_proj(x1, w1[0], b1[0]), 0.0)
    y = x + _proj(h, w2[0], b2[0])

    x_scr[...] = y
    sattn_ref[0, 0] = sattn
    cattn_ref[0, 0] = cattn

    @pl.when(l == n_layers - 1)
    def _():
        o_ref[0] = _ln(y, fn_g[...], fn_b[...])


# ------------------------------ host wrappers --------------------------------

def _stacked_spec(arr):
    """Per-layer-stacked weight: block (1, ...) indexed by the layer grid axis."""
    n_rest = arr.ndim - 1
    return pl.BlockSpec((1,) + arr.shape[1:],
                        lambda b, l, _n=n_rest: (l,) + (0,) * _n)


def _shared_spec(arr):
    """Shared (layer-independent) array: resident across the whole grid."""
    nd = arr.ndim
    return pl.BlockSpec(arr.shape, lambda b, l, _n=nd: (0,) * _n)


def encoder_forward(src, pe_src, p, *, nhead):
    B, L, E = src.shape
    NL = p["qkv_w"].shape[0]
    weights = [p["qkv_w"], p["qkv_b"], p["out_w"], p["out_b"],
               p["ffn_w1"], p["ffn_b1"], p["ffn_w2"], p["ffn_b2"],
               p["n1_g"], p["n1_b"], p["n2_g"], p["n2_b"]]
    return pl.pallas_call(
        functools.partial(_enc_stack_kernel, nhead=nhead),
        out_shape=(jax.ShapeDtypeStruct((B, L, E), jnp.float32),
                   jax.ShapeDtypeStruct((NL, B, L, L), jnp.float32)),
        grid=(B, NL),
        in_specs=[pl.BlockSpec((1, L, E), lambda b, l: (b, 0, 0)),
                  pl.BlockSpec((L, E), lambda b, l: (0, 0))]
                 + [_stacked_spec(w) for w in weights]
                 + [_shared_spec(p["norm_g"]), _shared_spec(p["norm_b"])],
        out_specs=(pl.BlockSpec((1, L, E), lambda b, l: (b, 0, 0)),
                   pl.BlockSpec((1, 1, L, L), lambda b, l: (l, b, 0, 0))),
        scratch_shapes=[pltpu.VMEM((L, E), jnp.float32)],
        compiler_params=pltpu.CompilerParams(
            dimension_semantics=("parallel", "arbitrary")),
    )(src, pe_src, *weights, p["norm_g"], p["norm_b"])


def decoder_forward(tgt, memory, pe_tgt, p, *, nhead):
    B, Lt, E = tgt.shape
    Ls = memory.shape[1]
    NL = p["sa_qkv_w"].shape[0]
    weights = [p["sa_qkv_w"], p["sa_qkv_b"], p["sa_out_w"], p["sa_out_b"],
               p["ca_q_w"], p["ca_q_b"], p["ca_kv_w"], p["ca_kv_b"],
               p["ca_out_w"], p["ca_out_b"],
               p["ffn_w1"], p["ffn_b1"], p["ffn_w2"], p["ffn_b2"],
               p["n1_g"], p["n1_b"], p["n2_g"], p["n2_b"],
               p["n3_g"], p["n3_b"]]
    return pl.pallas_call(
        functools.partial(_dec_stack_kernel, nhead=nhead),
        out_shape=(jax.ShapeDtypeStruct((B, Lt, E), jnp.float32),
                   jax.ShapeDtypeStruct((NL, B, Lt, Lt), jnp.float32),
                   jax.ShapeDtypeStruct((NL, B, Lt, Ls), jnp.float32)),
        grid=(B, NL),
        in_specs=[pl.BlockSpec((1, Lt, E), lambda b, l: (b, 0, 0)),
                  pl.BlockSpec((1, Ls, E), lambda b, l: (b, 0, 0)),
                  pl.BlockSpec((Lt, E), lambda b, l: (0, 0))]
                 + [_stacked_spec(w) for w in weights]
                 + [_shared_spec(p["norm_g"]), _shared_spec(p["norm_b"])],
        out_specs=(pl.BlockSpec((1, Lt, E), lambda b, l: (b, 0, 0)),
                   pl.BlockSpec((1, 1, Lt, Lt), lambda b, l: (l, b, 0, 0)),
                   pl.BlockSpec((1, 1, Lt, Ls), lambda b, l: (l, b, 0, 0))),
        scratch_shapes=[pltpu.VMEM((Lt, E), jnp.float32)],
        compiler_params=pltpu.CompilerParams(
            dimension_semantics=("parallel", "arbitrary")),
    )(tgt, memory, pe_tgt, *weights, p["norm_g"], p["norm_b"])


# ------------------------------- model forward -------------------------------

def positional_encoding(d_model, max_len):
    pos = jnp.arange(max_len, dtype=jnp.float32)[:, None]
    denom = jnp.exp(jnp.arange(0, d_model, 2, dtype=jnp.float32)
                    * (-math.log(10000.0) / d_model))
    pe = jnp.zeros((max_len, d_model), jnp.float32)
    pe = pe.at[:, 0::2].set(jnp.sin(pos * denom))
    pe = pe.at[:, 1::2].set(jnp.cos(pos * denom))
    return pe                                      # (max_len, d_model)


def transformer_base_forward(src, tgt, pe, params, *, nhead):
    pe_src = pe[: src.shape[1]]
    pe_tgt = pe[: tgt.shape[1]]
    # one fused pallas_call for the whole encoder stack (+pos-enc, +final LN)
    enc_out, enc_attns = encoder_forward(src, pe_src, params["encoder"],
                                         nhead=nhead)
    # one fused pallas_call for the whole decoder stack (+pos-enc, +final LN)
    dec_out, self_attns, cross_attns = decoder_forward(
        tgt, enc_out, pe_tgt, params["decoder"], nhead=nhead)
    # per-layer attention maps come back stacked along a leading layer dim.
    return enc_out, dec_out, enc_attns, self_attns, cross_attns


# --------------------------------- param init ---------------------------------
# Weights are pre-packed into the fused, layer-stacked layouts the kernels use:
#   qkv_w  (NL, E, 3E) bf16, ca_kv_w (NL, E, 2E) bf16, out/ffn weights bf16,
#   biases / LayerNorm params f32 stored as (NL, 1, D) rows,
#   final-norm gamma/beta as (1, E) f32.

def _winit(key, shape):
    return (0.05 * jax.random.normal(key, shape, jnp.float32)).astype(jnp.bfloat16)


def init_params(key, d_model, d_ffn, num_enc, num_dec):
    E, F = d_model, d_ffn

    def zeros(nl, d):
        return jnp.zeros((nl, 1, d), jnp.float32)

    def ones(nl, d):
        return jnp.ones((nl, 1, d), jnp.float32)

    ke = jax.random.split(key, 4)
    kd = jax.random.split(jax.random.fold_in(key, 1), 7)

    enc = {
        "qkv_w": _winit(ke[0], (num_enc, E, 3 * E)), "qkv_b": zeros(num_enc, 3 * E),
        "out_w": _winit(ke[1], (num_enc, E, E)),     "out_b": zeros(num_enc, E),
        "ffn_w1": _winit(ke[2], (num_enc, E, F)),    "ffn_b1": zeros(num_enc, F),
        "ffn_w2": _winit(ke[3], (num_enc, F, E)),    "ffn_b2": zeros(num_enc, E),
        "n1_g": ones(num_enc, E), "n1_b": zeros(num_enc, E),
        "n2_g": ones(num_enc, E), "n2_b": zeros(num_enc, E),
        "norm_g": jnp.ones((1, E), jnp.float32),
        "norm_b": jnp.zeros((1, E), jnp.float32),
    }
    dec = {
        "sa_qkv_w": _winit(kd[0], (num_dec, E, 3 * E)), "sa_qkv_b": zeros(num_dec, 3 * E),
        "sa_out_w": _winit(kd[1], (num_dec, E, E)),     "sa_out_b": zeros(num_dec, E),
        "ca_q_w": _winit(kd[2], (num_dec, E, E)),       "ca_q_b": zeros(num_dec, E),
        "ca_kv_w": _winit(kd[3], (num_dec, E, 2 * E)),  "ca_kv_b": zeros(num_dec, 2 * E),
        "ca_out_w": _winit(kd[4], (num_dec, E, E)),     "ca_out_b": zeros(num_dec, E),
        "ffn_w1": _winit(kd[5], (num_dec, E, F)),       "ffn_b1": zeros(num_dec, F),
        "ffn_w2": _winit(kd[6], (num_dec, F, E)),       "ffn_b2": zeros(num_dec, E),
        "n1_g": ones(num_dec, E), "n1_b": zeros(num_dec, E),
        "n2_g": ones(num_dec, E), "n2_b": zeros(num_dec, E),
        "n3_g": ones(num_dec, E), "n3_b": zeros(num_dec, E),
        "norm_g": jnp.ones((1, E), jnp.float32),
        "norm_b": jnp.zeros((1, E), jnp.float32),
    }
    return {"encoder": enc, "decoder": dec}


# ------------------------------------ main ------------------------------------

if __name__ == "__main__":
    d_model, nhead, d_ffn = 32, 4, 64
    num_encoder_layers, num_decoder_layers = 2, 2
    max_len = 64
    B, Ls, Lt = 2, 8, 8

    key = jax.random.PRNGKey(0)
    kp, ks, kt = jax.random.split(key, 3)
    params = init_params(kp, d_model, d_ffn, num_encoder_layers, num_decoder_layers)
    src = jax.random.normal(ks, (B, Ls, d_model), jnp.float32)
    tgt = jax.random.normal(kt, (B, Lt, d_model), jnp.float32)

    # positional encoding is shape-static: built once, outside the jit.
    pe = positional_encoding(d_model, max_len)

    fwd = jax.jit(functools.partial(transformer_base_forward, nhead=nhead))
    enc_out, dec_out, enc_attns, self_attns, cross_attns = fwd(src, tgt, pe, params)
    for arr in (enc_out, dec_out, enc_attns, self_attns, cross_attns):
        jax.block_until_ready(arr)

    assert enc_out.shape == (B, Ls, d_model)
    assert dec_out.shape == (B, Lt, d_model)
    assert enc_attns.shape == (num_encoder_layers, B, Ls, Ls)
    assert self_attns.shape == (num_decoder_layers, B, Lt, Lt)
    assert cross_attns.shape == (num_decoder_layers, B, Lt, Ls)
    assert bool(jnp.all(jnp.isfinite(enc_out))) and bool(jnp.all(jnp.isfinite(dec_out)))
    # softmax rows (head-averaged) should sum to ~1
    assert bool(jnp.allclose(jnp.sum(enc_attns, axis=-1), 1.0, atol=1e-2))
    assert bool(jnp.allclose(jnp.sum(cross_attns, axis=-1), 1.0, atol=1e-2))
    print("KERNEL_OK")
</pallas_src>

<mosaic_0001>
module attributes {stable_mosaic.version = 11 : i64} {
  func.func @_enc_stack_kernel(%arg0: i32, %arg1: i32, %arg2: memref<1x8x32xf32, #tpu.memory_space<vmem>>, %arg3: memref<8x32xf32, #tpu.memory_space<vmem>>, %arg4: memref<1x32x96xbf16, #tpu.memory_space<vmem>>, %arg5: memref<1x1x96xf32, #tpu.memory_space<vmem>>, %arg6: memref<1x32x32xbf16, #tpu.memory_space<vmem>>, %arg7: memref<1x1x32xf32, #tpu.memory_space<vmem>>, %arg8: memref<1x32x64xbf16, #tpu.memory_space<vmem>>, %arg9: memref<1x1x64xf32, #tpu.memory_space<vmem>>, %arg10: memref<1x64x32xbf16, #tpu.memory_space<vmem>>, %arg11: memref<1x1x32xf32, #tpu.memory_space<vmem>>, %arg12: memref<1x1x32xf32, #tpu.memory_space<vmem>>, %arg13: memref<1x1x32xf32, #tpu.memory_space<vmem>>, %arg14: memref<1x1x32xf32, #tpu.memory_space<vmem>>, %arg15: memref<1x1x32xf32, #tpu.memory_space<vmem>>, %arg16: memref<1x32xf32, #tpu.memory_space<vmem>>, %arg17: memref<1x32xf32, #tpu.memory_space<vmem>>, %arg18: memref<1x8x32xf32, #tpu.memory_space<vmem>>, %arg19: memref<1x1x8x8xf32, #tpu.memory_space<vmem>>, %arg20: memref<8x32xf32, #tpu.memory_space<vmem>>) attributes {dimension_semantics = [#tpu.dimension_semantics<parallel>, #tpu.dimension_semantics<arbitrary>], iteration_bounds = array<i64: 2, 2>, scalar_prefetch = 0 : i64, scratch_operands = 1 : i64, tpu.core_type = #tpu.core_type<tc>, window_params = [{transform_indices = @transform_0, window_bounds = array<i64: 1, 8, 32>}, {pipeline_mode = #tpu.pipeline_mode<synchronous>, transform_indices = @transform_1, window_bounds = array<i64: 8, 32>}, {transform_indices = @transform_2, window_bounds = array<i64: 1, 32, 96>}, {transform_indices = @transform_3, window_bounds = array<i64: 1, 1, 96>}, {transform_indices = @transform_4, window_bounds = array<i64: 1, 32, 32>}, {transform_indices = @transform_5, window_bounds = array<i64: 1, 1, 32>}, {transform_indices = @transform_6, window_bounds = array<i64: 1, 32, 64>}, {transform_indices = @transform_7, window_bounds = array<i64: 1, 1, 64>}, {transform_indices = @transform_8, window_bounds = array<i64: 1, 64, 32>}, {transform_indices = @transform_9, window_bounds = array<i64: 1, 1, 32>}, {transform_indices = @transform_10, window_bounds = array<i64: 1, 1, 32>}, {transform_indices = @transform_11, window_bounds = array<i64: 1, 1, 32>}, {transform_indices = @transform_12, window_bounds = array<i64: 1, 1, 32>}, {transform_indices = @transform_13, window_bounds = array<i64: 1, 1, 32>}, {pipeline_mode = #tpu.pipeline_mode<synchronous>, transform_indices = @transform_14, window_bounds = array<i64: 1, 32>}, {pipeline_mode = #tpu.pipeline_mode<synchronous>, transform_indices = @transform_15, window_bounds = array<i64: 1, 32>}, {transform_indices = @transform_16, window_bounds = array<i64: 1, 8, 32>}, {transform_indices = @transform_17, window_bounds = array<i64: 1, 1, 8, 8>}]} {
    %c0_i32 = arith.constant 0 : i32
    %0 = arith.cmpi eq, %arg1, %c0_i32 : i32
    %1 = arith.extui %0 : i1 to i32
    %c0_i32_0 = arith.constant 0 : i32
    %2 = arith.cmpi ne, %1, %c0_i32_0 : i32
    scf.if %2 {
      %c0_66 = arith.constant 0 : index
      %c0_67 = arith.constant 0 : index
      %c0_68 = arith.constant 0 : index
      %152 = vector.load %arg2[%c0_66, %c0_67, %c0_68] : memref<1x8x32xf32, #tpu.memory_space<vmem>>, vector<1x8x32xf32>
      %153 = vector.shape_cast %152 : vector<1x8x32xf32> to vector<8x32xf32>
      %c0_69 = arith.constant 0 : index
      %c0_70 = arith.constant 0 : index
      %154 = vector.load %arg3[%c0_69, %c0_70] : memref<8x32xf32, #tpu.memory_space<vmem>>, vector<8x32xf32>
      %155 = arith.addf %153, %154 : vector<8x32xf32>
      %c0_71 = arith.constant 0 : index
      %c0_72 = arith.constant 0 : index
      %156 = vector.load %arg20[%c0_71, %c0_72] : memref<8x32xf32, #tpu.memory_space<vmem>>, vector<8x32xf32>
      tpu.vector_store %arg20[%c0_71, %c0_72], %155 {strides = array<i32>} : memref<8x32xf32, #tpu.memory_space<vmem>>, vector<8x32xf32>,
    } else {
    }
    %c0 = arith.constant 0 : index
    %c0_1 = arith.constant 0 : index
    %3 = vector.load %arg20[%c0, %c0_1] : memref<8x32xf32, #tpu.memory_space<vmem>>, vector<8x32xf32>
    %c0_2 = arith.constant 0 : index
    %c0_3 = arith.constant 0 : index
    %c0_4 = arith.constant 0 : index
    %4 = vector.load %arg12[%c0_2, %c0_3, %c0_4] : memref<1x1x32xf32, #tpu.memory_space<vmem>>, vector<1x1x32xf32>
    %5 = vector.shape_cast %4 : vector<1x1x32xf32> to vector<1x32xf32>
    %c0_5 = arith.constant 0 : index
    %c0_6 = arith.constant 0 : index
    %c0_7 = arith.constant 0 : index
    %6 = vector.load %arg13[%c0_5, %c0_6, %c0_7] : memref<1x1x32xf32, #tpu.memory_space<vmem>>, vector<1x1x32xf32>
    %7 = vector.shape_cast %6 : vector<1x1x32xf32> to vector<1x32xf32>
    %cst = arith.constant dense<0.000000e+00> : vector<8xf32>
    %8 = vector.multi_reduction <add>, %3, %cst [1] : vector<8x32xf32> to vector<8xf32>
    %9 = vector.shape_cast %8 : vector<8xf32> to vector<8x1xf32>
    %cst_8 = arith.constant 3.200000e+01 : f32
    %10 = vector.broadcast %cst_8 : f32 to vector<8x1xf32>
    %11 = arith.divf %9, %10 : vector<8x1xf32>
    %12 = vector.broadcast %11 : vector<8x1xf32> to vector<8x32xf32>
    %13 = arith.subf %3, %12 : vector<8x32xf32>
    %14 = arith.mulf %13, %13 : vector<8x32xf32>
    %cst_9 = arith.constant dense<0.000000e+00> : vector<8xf32>
    %15 = vector.multi_reduction <add>, %14, %cst_9 [1] : vector<8x32xf32> to vector<8xf32>
    %16 = vector.shape_cast %15 : vector<8xf32> to vector<8x1xf32>
    %cst_10 = arith.constant 3.200000e+01 : f32
    %17 = vector.broadcast %cst_10 : f32 to vector<8x1xf32>
    %18 = arith.divf %16, %17 : vector<8x1xf32>
    %cst_11 = arith.constant 9.99999997E-7 : f32
    %19 = vector.broadcast %cst_11 : f32 to vector<8x1xf32>
    %20 = arith.addf %18, %19 : vector<8x1xf32>
    %21 = math.rsqrt %20 : vector<8x1xf32>
    %22 = vector.broadcast %21 : vector<8x1xf32> to vector<8x32xf32>
    %23 = arith.mulf %13, %22 : vector<8x32xf32>
    %24 = vector.broadcast %5 : vector<1x32xf32> to vector<8x32xf32>
    %25 = arith.mulf %23, %24 : vector<8x32xf32>
    %26 = vector.broadcast %7 : vector<1x32xf32> to vector<8x32xf32>
    %27 = arith.addf %25, %26 : vector<8x32xf32>
    %c0_12 = arith.constant 0 : index
    %c0_13 = arith.constant 0 : index
    %c0_14 = arith.constant 0 : index
    %28 = vector.load %arg4[%c0_12, %c0_13, %c0_14] : memref<1x32x96xbf16, #tpu.memory_space<vmem>>, vector<1x32x96xbf16>
    %29 = vector.shape_cast %28 : vector<1x32x96xbf16> to vector<32x96xbf16>
    %c0_15 = arith.constant 0 : index
    %c0_16 = arith.constant 0 : index
    %c0_17 = arith.constant 0 : index
    %30 = vector.load %arg5[%c0_15, %c0_16, %c0_17] : memref<1x1x96xf32, #tpu.memory_space<vmem>>, vector<1x1x96xf32>
    %31 = vector.shape_cast %30 : vector<1x1x96xf32> to vector<1x96xf32>
    %32 = arith.truncf %27 : vector<8x32xf32> to vector<8x32xbf16>
    %cst_18 = arith.constant dense<0.000000e+00> : vector<8x96xf32>
    %33 = tpu.matmul %32, %29, %cst_18 {dimension_numbers = #tpu.dot_dimension_numbers<[1], [0], [0], [1], [0, 0, 1, 1], [], []>} : vector<8x32xbf16>, vector<32x96xbf16>, vector<8x96xf32> -> vector<8x96xf32>
    %34 = vector.broadcast %31 : vector<1x96xf32> to vector<8x96xf32>
    %35 = arith.addf %33, %34 : vector<8x96xf32>
    %36 = arith.truncf %35 : vector<8x96xf32> to vector<8x96xbf16>
    %37 = vector.extract_strided_slice %36 {offsets = [0, 0], sizes = [8, 32], strides = [1, 1]} : vector<8x96xbf16> to vector<8x32xbf16>
    %38 = vector.extract_strided_slice %36 {offsets = [0, 32], sizes = [8, 32], strides = [1, 1]} : vector<8x96xbf16> to vector<8x32xbf16>
    %39 = vector.extract_strided_slice %36 {offsets = [0, 64], sizes = [8, 32], strides = [1, 1]} : vector<8x96xbf16> to vector<8x32xbf16>
    %c0_19 = arith.constant 0 : index
    %c0_20 = arith.constant 0 : index
    %c0_21 = arith.constant 0 : index
    %40 = vector.load %arg6[%c0_19, %c0_20, %c0_21] : memref<1x32x32xbf16, #tpu.memory_space<vmem>>, vector<1x32x32xbf16>
    %41 = vector.shape_cast %40 : vector<1x32x32xbf16> to vector<32x32xbf16>
    %c0_22 = arith.constant 0 : index
    %c0_23 = arith.constant 0 : index
    %c0_24 = arith.constant 0 : index
    %42 = vector.load %arg7[%c0_22, %c0_23, %c0_24] : memref<1x1x32xf32, #tpu.memory_space<vmem>>, vector<1x1x32xf32>
    %43 = vector.shape_cast %42 : vector<1x1x32xf32> to vector<1x32xf32>
    %44 = vector.extract_strided_slice %37 {offsets = [0, 0], sizes = [8, 8], strides = [1, 1]} : vector<8x32xbf16> to vector<8x8xbf16>
    %45 = vector.extract_strided_slice %37 {offsets = [0, 8], sizes = [8, 8], strides = [1, 1]} : vector<8x32xbf16> to vector<8x8xbf16>
    %46 = vector.extract_strided_slice %37 {offsets = [0, 16], sizes = [8, 8], strides = [1, 1]} : vector<8x32xbf16> to vector<8x8xbf16>
    %47 = vector.extract_strided_slice %37 {offsets = [0, 24], sizes = [8, 8], strides = [1, 1]} : vector<8x32xbf16> to vector<8x8xbf16>
    %48 = vector.shape_cast %44 : vector<8x8xbf16> to vector<1x8x8xbf16>
    %49 = vector.shape_cast %45 : vector<8x8xbf16> to vector<1x8x8xbf16>
    %50 = vector.shape_cast %46 : vector<8x8xbf16> to vector<1x8x8xbf16>
    %51 = vector.shape_cast %47 : vector<8x8xbf16> to vector<1x8x8xbf16>
    %52 = tpu.concatenate %48, %49, %50, %51 in 0 : vector<1x8x8xbf16>, vector<1x8x8xbf16>, vector<1x8x8xbf16>, vector<1x8x8xbf16> -> vector<4x8x8xbf16>
    %53 = vector.extract_strided_slice %38 {offsets = [0, 0], sizes = [8, 8], strides = [1, 1]} : vector<8x32xbf16> to vector<8x8xbf16>
    %54 = vector.extract_strided_slice %38 {offsets = [0, 8], sizes = [8, 8], strides = [1, 1]} : vector<8x32xbf16> to vector<8x8xbf16>
    %55 = vector.extract_strided_slice %38 {offsets = [0, 16], sizes = [8, 8], strides = [1, 1]} : vector<8x32xbf16> to vector<8x8xbf16>
    %56 = vector.extract_strided_slice %38 {offsets = [0, 24], sizes = [8, 8], strides = [1, 1]} : vector<8x32xbf16> to vector<8x8xbf16>
    %57 = vector.shape_cast %53 : vector<8x8xbf16> to vector<1x8x8xbf16>
    %58 = vector.shape_cast %54 : vector<8x8xbf16> to vector<1x8x8xbf16>
    %59 = vector.shape_cast %55 : vector<8x8xbf16> to vector<1x8x8xbf16>
    %60 = vector.shape_cast %56 : vector<8x8xbf16> to vector<1x8x8xbf16>
    %61 = tpu.concatenate %57, %58, %59, %60 in 0 : vector<1x8x8xbf16>, vector<1x8x8xbf16>, vector<1x8x8xbf16>, vector<1x8x8xbf16> -> vector<4x8x8xbf16>
    %62 = vector.extract_strided_slice %39 {offsets = [0, 0], sizes = [8, 8], strides = [1, 1]} : vector<8x32xbf16> to vector<8x8xbf16>
    %63 = vector.extract_strided_slice %39 {offsets = [0, 8], sizes = [8, 8], strides = [1, 1]} : vector<8x32xbf16> to vector<8x8xbf16>
    %64 = vector.extract_strided_slice %39 {offsets = [0, 16], sizes = [8, 8], strides = [1, 1]} : vector<8x32xbf16> to vector<8x8xbf16>
    %65 = vector.extract_strided_slice %39 {offsets = [0, 24], sizes = [8, 8], strides = [1, 1]} : vector<8x32xbf16> to vector<8x8xbf16>
    %66 = vector.shape_cast %62 : vector<8x8xbf16> to vector<1x8x8xbf16>
    %67 = vector.shape_cast %63 : vector<8x8xbf16> to vector<1x8x8xbf16>
    %68 = vector.shape_cast %64 : vector<8x8xbf16> to vector<1x8x8xbf16>
    %69 = vector.shape_cast %65 : vector<8x8xbf16> to vector<1x8x8xbf16>
    %70 = tpu.concatenate %66, %67, %68, %69 in 0 : vector<1x8x8xbf16>, vector<1x8x8xbf16>, vector<1x8x8xbf16>, vector<1x8x8xbf16> -> vector<4x8x8xbf16>
    "tpu.trace_start"() <{level = 10 : i32, message = "hqd,hkd->hqk"}> : () -> ()
    %cst_25 = arith.constant dense<0.000000e+00> : vector<4x8x8xf32>
    %71 = tpu.matmul %52, %61, %cst_25 {dimension_numbers = #tpu.dot_dimension_numbers<[2], [2], [1], [1], [0, 0, 0, 1, 1, 1], [0], [0]>} : vector<4x8x8xbf16>, vector<4x8x8xbf16>, vector<4x8x8xf32> -> vector<4x8x8xf32>
    "tpu.trace_stop"() : () -> ()
    %cst_26 = arith.constant 0.353553385 : f32
    %72 = vector.broadcast %cst_26 : f32 to vector<4x8x8xf32>
    %73 = arith.mulf %71, %72 : vector<4x8x8xf32>
    %cst_27 = arith.constant dense<0xFF800000> : vector<4x8xf32>
    %74 = vector.multi_reduction <maximumf>, %73, %cst_27 [2] : vector<4x8x8xf32> to vector<4x8xf32>
    %75 = vector.shape_cast %74 : vector<4x8xf32> to vector<4x8x1xf32>
    %76 = vector.broadcast %75 : vector<4x8x1xf32> to vector<4x8x8xf32>
    %77 = arith.subf %73, %76 : vector<4x8x8xf32>
    %78 = math.exp %77 : vector<4x8x8xf32>
    %cst_28 = arith.constant dense<0.000000e+00> : vector<4x8xf32>
    %79 = vector.multi_reduction <add>, %78, %cst_28 [2] : vector<4x8x8xf32> to vector<4x8xf32>
    %80 = vector.shape_cast %79 : vector<4x8xf32> to vector<4x8x1xf32>
    %81 = vector.broadcast %80 : vector<4x8x1xf32> to vector<4x8x8xf32>
    %82 = arith.divf %78, %81 : vector<4x8x8xf32>
    %83 = arith.truncf %82 : vector<4x8x8xf32> to vector<4x8x8xbf16>
    "tpu.trace_start"() <{level = 10 : i32, message = "hqk,hkd->hqd"}> : () -> ()
    %cst_29 = arith.constant dense<0.000000e+00> : vector<4x8x8xf32>
    %84 = tpu.matmul %83, %70, %cst_29 {dimension_numbers = #tpu.dot_dimension_numbers<[2], [1], [1], [2], [0, 0, 0, 1, 1, 2], [0], [0]>} : vector<4x8x8xbf16>, vector<4x8x8xbf16>, vector<4x8x8xf32> -> vector<4x8x8xf32>
    "tpu.trace_stop"() : () -> ()
    %85 = vector.extract_strided_slice %84 {offsets = [0, 0, 0], sizes = [1, 8, 8], strides = [1, 1, 1]} : vector<4x8x8xf32> to vector<1x8x8xf32>
    %86 = vector.shape_cast %85 : vector<1x8x8xf32> to vector<8x8xf32>
    %87 = vector.extract_strided_slice %84 {offsets = [1, 0, 0], sizes = [1, 8, 8], strides = [1, 1, 1]} : vector<4x8x8xf32> to vector<1x8x8xf32>
    %88 = vector.shape_cast %87 : vector<1x8x8xf32> to vector<8x8xf32>
    %89 = vector.extract_strided_slice %84 {offsets = [2, 0, 0], sizes = [1, 8, 8], strides = [1, 1, 1]} : vector<4x8x8xf32> to vector<1x8x8xf32>
    %90 = vector.shape_cast %89 : vector<1x8x8xf32> to vector<8x8xf32>
    %91 = vector.extract_strided_slice %84 {offsets = [3, 0, 0], sizes = [1, 8, 8], strides = [1, 1, 1]} : vector<4x8x8xf32> to vector<1x8x8xf32>
    %92 = vector.shape_cast %91 : vector<1x8x8xf32> to vector<8x8xf32>
    %93 = tpu.concatenate %86, %88, %90, %92 in 1 : vector<8x8xf32>, vector<8x8xf32>, vector<8x8xf32>, vector<8x8xf32> -> vector<8x32xf32>
    %94 = arith.truncf %93 : vector<8x32xf32> to vector<8x32xbf16>
    %cst_30 = arith.constant dense<0.000000e+00> : vector<8x32xf32>
    %95 = tpu.matmul %94, %41, %cst_30 {dimension_numbers = #tpu.dot_dimension_numbers<[1], [0], [0], [1], [0, 0, 1, 1], [], []>} : vector<8x32xbf16>, vector<32x32xbf16>, vector<8x32xf32> -> vector<8x32xf32>
    %96 = vector.broadcast %43 : vector<1x32xf32> to vector<8x32xf32>
    %97 = arith.addf %95, %96 : vector<8x32xf32>
    %cst_31 = arith.constant dense<0.000000e+00> : vector<8x8xf32>
    %98 = vector.multi_reduction <add>, %82, %cst_31 [0] : vector<4x8x8xf32> to vector<8x8xf32>
    %cst_32 = arith.constant 2.500000e-01 : f32
    %99 = vector.broadcast %cst_32 : f32 to vector<8x8xf32>
    %100 = arith.mulf %98, %99 : vector<8x8xf32>
    %101 = arith.addf %3, %97 : vector<8x32xf32>
    %c0_33 = arith.constant 0 : index
    %c0_34 = arith.constant 0 : index
    %c0_35 = arith.constant 0 : index
    %102 = vector.load %arg14[%c0_33, %c0_34, %c0_35] : memref<1x1x32xf32, #tpu.memory_space<vmem>>, vector<1x1x32xf32>
    %103 = vector.shape_cast %102 : vector<1x1x32xf32> to vector<1x32xf32>
    %c0_36 = arith.constant 0 : index
    %c0_37 = arith.constant 0 : index
    %c0_38 = arith.constant 0 : index
    %104 = vector.load %arg15[%c0_36, %c0_37, %c0_38] : memref<1x1x32xf32, #tpu.memory_space<vmem>>, vector<1x1x32xf32>
    %105 = vector.shape_cast %104 : vector<1x1x32xf32> to vector<1x32xf32>
    %cst_39 = arith.constant dense<0.000000e+00> : vector<8xf32>
    %106 = vector.multi_reduction <add>, %101, %cst_39 [1] : vector<8x32xf32> to vector<8xf32>
    %107 = vector.shape_cast %106 : vector<8xf32> to vector<8x1xf32>
    %cst_40 = arith.constant 3.200000e+01 : f32
    %108 = vector.broadcast %cst_40 : f32 to vector<8x1xf32>
    %109 = arith.divf %107, %108 : vector<8x1xf32>
    %110 = vector.broadcast %109 : vector<8x1xf32> to vector<8x32xf32>
    %111 = arith.subf %101, %110 : vector<8x32xf32>
    %112 = arith.mulf %111, %111 : vector<8x32xf32>
    %cst_41 = arith.constant dense<0.000000e+00> : vector<8xf32>
    %113 = vector.multi_reduction <add>, %112, %cst_41 [1] : vector<8x32xf32> to vector<8xf32>
    %114 = vector.shape_cast %113 : vector<8xf32> to vector<8x1xf32>
    %cst_42 = arith.constant 3.200000e+01 : f32
    %115 = vector.broadcast %cst_42 : f32 to vector<8x1xf32>
    %116 = arith.divf %114, %115 : vector<8x1xf32>
    %cst_43 = arith.constant 9.99999997E-7 : f32
    %117 = vector.broadcast %cst_43 : f32 to vector<8x1xf32>
    %118 = arith.addf %116, %117 : vector<8x1xf32>
    %119 = math.rsqrt %118 : vector<8x1xf32>
    %120 = vector.broadcast %119 : vector<8x1xf32> to vector<8x32xf32>
    %121 = arith.mulf %111, %120 : vector<8x32xf32>
    %122 = vector.broadcast %103 : vector<1x32xf32> to vector<8x32xf32>
    %123 = arith.mulf %121, %122 : vector<8x32xf32>
    %124 = vector.broadcast %105 : vector<1x32xf32> to vector<8x32xf32>
    %125 = arith.addf %123, %124 : vector<8x32xf32>
    %c0_44 = arith.constant 0 : index
    %c0_45 = arith.constant 0 : index
    %c0_46 = arith.constant 0 : index
    %126 = vector.load %arg8[%c0_44, %c0_45, %c0_46] : memref<1x32x64xbf16, #tpu.memory_space<vmem>>, vector<1x32x64xbf16>
    %127 = vector.shape_cast %126 : vector<1x32x64xbf16> to vector<32x64xbf16>
    %c0_47 = arith.constant 0 : index
    %c0_48 = arith.constant 0 : index
    %c0_49 = arith.constant 0 : index
    %128 = vector.load %arg9[%c0_47, %c0_48, %c0_49] : memref<1x1x64xf32, #tpu.memory_space<vmem>>, vector<1x1x64xf32>
    %129 = vector.shape_cast %128 : vector<1x1x64xf32> to vector<1x64xf32>
    %130 = arith.truncf %125 : vector<8x32xf32> to vector<8x32xbf16>
    %cst_50 = arith.constant dense<0.000000e+00> : vector<8x64xf32>
    %131 = tpu.matmul %130, %127, %cst_50 {dimension_numbers = #tpu.dot_dimension_numbers<[1], [0], [0], [1], [0, 0, 1, 1], [], []>} : vector<8x32xbf16>, vector<32x64xbf16>, vector<8x64xf32> -> vector<8x64xf32>
    %132 = vector.broadcast %129 : vector<1x64xf32> to vector<8x64xf32>
    %133 = arith.addf %131, %132 : vector<8x64xf32>
    %cst_51 = arith.constant 0.000000e+00 : f32
    %134 = vector.broadcast %cst_51 : f32 to vector<8x64xf32>
    %135 = arith.maximumf %133, %134 : vector<8x64xf32>
    %c0_52 = arith.constant 0 : index
    %c0_53 = arith.constant 0 : index
    %c0_54 = arith.constant 0 : index
    %136 = vector.load %arg10[%c0_52, %c0_53, %c0_54] : memref<1x64x32xbf16, #tpu.memory_space<vmem>>, vector<1x64x32xbf16>
    %137 = vector.shape_cast %136 : vector<1x64x32xbf16> to vector<64x32xbf16>
    %c0_55 = arith.constant 0 : index
    %c0_56 = arith.constant 0 : index
    %c0_57 = arith.constant 0 : index
    %138 = vector.load %arg11[%c0_55, %c0_56, %c0_57] : memref<1x1x32xf32, #tpu.memory_space<vmem>>, vector<1x1x32xf32>
    %139 = vector.shape_cast %138 : vector<1x1x32xf32> to vector<1x32xf32>
    %140 = arith.truncf %135 : vector<8x64xf32> to vector<8x64xbf16>
    %cst_58 = arith.constant dense<0.000000e+00> : vector<8x32xf32>
    %141 = tpu.matmul %140, %137, %cst_58 {dimension_numbers = #tpu.dot_dimension_numbers<[1], [0], [0], [1], [0, 0, 1, 1], [], []>} : vector<8x64xbf16>, vector<64x32xbf16>, vector<8x32xf32> -> vector<8x32xf32>
    %142 = vector.broadcast %139 : vector<1x32xf32> to vector<8x32xf32>
    %143 = arith.addf %141, %142 : vector<8x32xf32>
    %144 = arith.addf %101, %143 : vector<8x32xf32>
    %c0_59 = arith.constant 0 : index
    %c0_60 = arith.constant 0 : index
    %145 = vector.load %arg20[%c0_59, %c0_60] : memref<8x32xf32, #tpu.memory_space<vmem>>, vector<8x32xf32>
    tpu.vector_store %arg20[%c0_59, %c0_60], %144 {strides = array<i32>} : memref<8x32xf32, #tpu.memory_space<vmem>>, vector<8x32xf32>,
    %c0_61 = arith.constant 0 : index
    %c0_62 = arith.constant 0 : index
    %c0_63 = arith.constant 0 : index
    %c0_64 = arith.constant 0 : index
    %146 = vector.load %arg19[%c0_61, %c0_62, %c0_63, %c0_64] : memref<1x1x8x8xf32, #tpu.memory_space<vmem>>, vector<1x1x8x8xf32>
    %147 = vector.shape_cast %146 : vector<1x1x8x8xf32> to vector<8x8xf32>
    %148 = vector.shape_cast %100 : vector<8x8xf32> to vector<1x1x8x8xf32>
    tpu.vector_store %arg19[%c0_61, %c0_62, %c0_63, %c0_64], %148 {strides = array<i32>} : memref<1x1x8x8xf32, #tpu.memory_space<vmem>>, vector<1x1x8x8xf32>,
    %c1_i32 = arith.constant 1 : i32
    %149 = arith.cmpi eq, %arg1, %c1_i32 : i32
    %150 = arith.extui %149 : i1 to i32
    %c0_i32_65 = arith.constant 0 : i32
    %151 = arith.cmpi ne, %150, %c0_i32_65 : i32
    scf.if %151 {
      %c0_66 = arith.constant 0 : index
      %c0_67 = arith.constant 0 : index
      %152 = vector.load %arg16[%c0_66, %c0_67] : memref<1x32xf32, #tpu.memory_space<vmem>>, vector<1x32xf32>
      %c0_68 = arith.constant 0 : index
      %c0_69 = arith.constant 0 : index
      %153 = vector.load %arg17[%c0_68, %c0_69] : memref<1x32xf32, #tpu.memory_space<vmem>>, vector<1x32xf32>
      %cst_70 = arith.constant dense<0.000000e+00> : vector<8xf32>
      %154 = vector.multi_reduction <add>, %144, %cst_70 [1] : vector<8x32xf32> to vector<8xf32>
      %155 = vector.shape_cast %154 : vector<8xf32> to vector<8x1xf32>
      %cst_71 = arith.constant 3.200000e+01 : f32
      %156 = vector.broadcast %cst_71 : f32 to vector<8x1xf32>
      %157 = arith.divf %155, %156 : vector<8x1xf32>
      %158 = vector.broadcast %157 : vector<8x1xf32> to vector<8x32xf32>
      %159 = arith.subf %144, %158 : vector<8x32xf32>
      %160 = arith.mulf %159, %159 : vector<8x32xf32>
      %cst_72 = arith.constant dense<0.000000e+00> : vector<8xf32>
      %161 = vector.multi_reduction <add>, %160, %cst_72 [1] : vector<8x32xf32> to vector<8xf32>
      %162 = vector.shape_cast %161 : vector<8xf32> to vector<8x1xf32>
      %cst_73 = arith.constant 3.200000e+01 : f32
      %163 = vector.broadcast %cst_73 : f32 to vector<8x1xf32>
      %164 = arith.divf %162, %163 : vector<8x1xf32>
      %cst_74 = arith.constant 9.99999997E-7 : f32
      %165 = vector.broadcast %cst_74 : f32 to vector<8x1xf32>
      %166 = arith.addf %164, %165 : vector<8x1xf32>
      %167 = math.rsqrt %166 : vector<8x1xf32>
      %168 = vector.broadcast %167 : vector<8x1xf32> to vector<8x32xf32>
      %169 = arith.mulf %159, %168 : vector<8x32xf32>
      %170 = vector.broadcast %152 : vector<1x32xf32> to vector<8x32xf32>
      %171 = arith.mulf %169, %170 : vector<8x32xf32>
      %172 = vector.broadcast %153 : vector<1x32xf32> to vector<8x32xf32>
      %173 = arith.addf %171, %172 : vector<8x32xf32>
      %c0_75 = arith.constant 0 : index
      %c0_76 = arith.constant 0 : index
      %c0_77 = arith.constant 0 : index
      %174 = vector.load %arg18[%c0_75, %c0_76, %c0_77] : memref<1x8x32xf32, #tpu.memory_space<vmem>>, vector<1x8x32xf32>
      %175 = vector.shape_cast %174 : vector<1x8x32xf32> to vector<8x32xf32>
      %176 = vector.shape_cast %173 : vector<8x32xf32> to vector<1x8x32xf32>
      tpu.vector_store %arg18[%c0_75, %c0_76, %c0_77], %176 {strides = array<i32>} : memref<1x8x32xf32, #tpu.memory_space<vmem>>, vector<1x8x32xf32>,
    } else {
    }
    return
  }
  func.func @transform_0(%arg0: i32, %arg1: i32) -> (i32, i32, i32) {
    %c0_i32 = arith.constant 0 : i32
    %c0_i32_0 = arith.constant 0 : i32
    %c0_i32_1 = arith.constant 0 : i32
    return %arg0, %c0_i32, %c0_i32_0 : i32, i32, i32
  }
  func.func @transform_1(%arg0: i32, %arg1: i32) -> (i32, i32) {
    %c0_i32 = arith.constant 0 : i32
    %c0_i32_0 = arith.constant 0 : i32
    %c0_i32_1 = arith.constant 0 : i32
    return %c0_i32, %c0_i32_0 : i32, i32
  }
  func.func @transform_2(%arg0: i32, %arg1: i32) -> (i32, i32, i32) {
    %c0_i32 = arith.constant 0 : i32
    %c0_i32_0 = arith.constant 0 : i32
    %c0_i32_1 = arith.constant 0 : i32
    return %arg1, %c0_i32, %c0_i32_0 : i32, i32, i32
  }
  func.func @transform_3(%arg0: i32, %arg1: i32) -> (i32, i32, i32) {
    %c0_i32 = arith.constant 0 : i32
    %c0_i32_0 = arith.constant 0 : i32
    %c0_i32_1 = arith.constant 0 : i32
    return %arg1, %c0_i32, %c0_i32_0 : i32, i32, i32
  }
  func.func @transform_4(%arg0: i32, %arg1: i32) -> (i32, i32, i32) {
    %c0_i32 = arith.constant 0 : i32
    %c0_i32_0 = arith.constant 0 : i32
    %c0_i32_1 = arith.constant 0 : i32
    return %arg1, %c0_i32, %c0_i32_0 : i32, i32, i32
  }
  func.func @transform_5(%arg0: i32, %arg1: i32) -> (i32, i32, i32) {
    %c0_i32 = arith.constant 0 : i32
    %c0_i32_0 = arith.constant 0 : i32
    %c0_i32_1 = arith.constant 0 : i32
    return %arg1, %c0_i32, %c0_i32_0 : i32, i32, i32
  }
  func.func @transform_6(%arg0: i32, %arg1: i32) -> (i32, i32, i32) {
    %c0_i32 = arith.constant 0 : i32
    %c0_i32_0 = arith.constant 0 : i32
    %c0_i32_1 = arith.constant 0 : i32
    return %arg1, %c0_i32, %c0_i32_0 : i32, i32, i32
  }
  func.func @transform_7(%arg0: i32, %arg1: i32) -> (i32, i32, i32) {
    %c0_i32 = arith.constant 0 : i32
    %c0_i32_0 = arith.constant 0 : i32
    %c0_i32_1 = arith.constant 0 : i32
    return %arg1, %c0_i32, %c0_i32_0 : i32, i32, i32
  }
  func.func @transform_8(%arg0: i32, %arg1: i32) -> (i32, i32, i32) {
    %c0_i32 = arith.constant 0 : i32
    %c0_i32_0 = arith.constant 0 : i32
    %c0_i32_1 = arith.constant 0 : i32
    return %arg1, %c0_i32, %c0_i32_0 : i32, i32, i32
  }
  func.func @transform_9(%arg0: i32, %arg1: i32) -> (i32, i32, i32) {
    %c0_i32 = arith.constant 0 : i32
    %c0_i32_0 = arith.constant 0 : i32
    %c0_i32_1 = arith.constant 0 : i32
    return %arg1, %c0_i32, %c0_i32_0 : i32, i32, i32
  }
  func.func @transform_10(%arg0: i32, %arg1: i32) -> (i32, i32, i32) {
    %c0_i32 = arith.constant 0 : i32
    %c0_i32_0 = arith.constant 0 : i32
    %c0_i32_1 = arith.constant 0 : i32
    return %arg1, %c0_i32, %c0_i32_0 : i32, i32, i32
  }
  func.func @transform_11(%arg0: i32, %arg1: i32) -> (i32, i32, i32) {
    %c0_i32 = arith.constant 0 : i32
    %c0_i32_0 = arith.constant 0 : i32
    %c0_i32_1 = arith.constant 0 : i32
    return %arg1, %c0_i32, %c0_i32_0 : i32, i32, i32
  }
  func.func @transform_12(%arg0: i32, %arg1: i32) -> (i32, i32, i32) {
    %c0_i32 = arith.constant 0 : i32
    %c0_i32_0 = arith.constant 0 : i32
    %c0_i32_1 = arith.constant 0 : i32
    return %arg1, %c0_i32, %c0_i32_0 : i32, i32, i32
  }
  func.func @transform_13(%arg0: i32, %arg1: i32) -> (i32, i32, i32) {
    %c0_i32 = arith.constant 0 : i32
    %c0_i32_0 = arith.constant 0 : i32
    %c0_i32_1 = arith.constant 0 : i32
    return %arg1, %c0_i32, %c0_i32_0 : i32, i32, i32
  }
  func.func @transform_14(%arg0: i32, %arg1: i32) -> (i32, i32) {
    %c0_i32 = arith.constant 0 : i32
    %c0_i32_0 = arith.constant 0 : i32
    %c0_i32_1 = arith.constant 0 : i32
    return %c0_i32, %c0_i32_0 : i32, i32
  }
  func.func @transform_15(%arg0: i32, %arg1: i32) -> (i32, i32) {
    %c0_i32 = arith.constant 0 : i32
    %c0_i32_0 = arith.constant 0 : i32
    %c0_i32_1 = arith.constant 0 : i32
    return %c0_i32, %c0_i32_0 : i32, i32
  }
  func.func @transform_16(%arg0: i32, %arg1: i32) -> (i32, i32, i32) {
    %c0_i32 = arith.constant 0 : i32
    %c0_i32_0 = arith.constant 0 : i32
    %c0_i32_1 = arith.constant 0 : i32
    return %arg0, %c0_i32, %c0_i32_0 : i32, i32, i32
  }
  func.func @transform_17(%arg0: i32, %arg1: i32) -> (i32, i32, i32, i32) {
    %c0_i32 = arith.constant 0 : i32
    %c0_i32_0 = arith.constant 0 : i32
    %c0_i32_1 = arith.constant 0 : i32
    return %arg1, %arg0, %c0_i32, %c0_i32_0 : i32, i32, i32, i32
  }
}

module attributes {stable_mosaic.version = 11 : i64} {
  func.func @_dec_stack_kernel(%arg0: i32, %arg1: i32, %arg2: memref<1x8x32xf32, #tpu.memory_space<vmem>>, %arg3: memref<1x8x32xf32, #tpu.memory_space<vmem>>, %arg4: memref<8x32xf32, #tpu.memory_space<vmem>>, %arg5: memref<1x32x96xbf16, #tpu.memory_space<vmem>>, %arg6: memref<1x1x96xf32, #tpu.memory_space<vmem>>, %arg7: memref<1x32x32xbf16, #tpu.memory_space<vmem>>, %arg8: memref<1x1x32xf32, #tpu.memory_space<vmem>>, %arg9: memref<1x32x32xbf16, #tpu.memory_space<vmem>>, %arg10: memref<1x1x32xf32, #tpu.memory_space<vmem>>, %arg11: memref<1x32x64xbf16, #tpu.memory_space<vmem>>, %arg12: memref<1x1x64xf32, #tpu.memory_space<vmem>>, %arg13: memref<1x32x32xbf16, #tpu.memory_space<vmem>>, %arg14: memref<1x1x32xf32, #tpu.memory_space<vmem>>, %arg15: memref<1x32x64xbf16, #tpu.memory_space<vmem>>, %arg16: memref<1x1x64xf32, #tpu.memory_space<vmem>>, %arg17: memref<1x64x32xbf16, #tpu.memory_space<vmem>>, %arg18: memref<1x1x32xf32, #tpu.memory_space<vmem>>, %arg19: memref<1x1x32xf32, #tpu.memory_space<vmem>>, %arg20: memref<1x1x32xf32, #tpu.memory_space<vmem>>, %arg21: memref<1x1x32xf32, #tpu.memory_space<vmem>>, %arg22: memref<1x1x32xf32, #tpu.memory_space<vmem>>, %arg23: memref<1x1x32xf32, #tpu.memory_space<vmem>>, %arg24: memref<1x1x32xf32, #tpu.memory_space<vmem>>, %arg25: memref<1x32xf32, #tpu.memory_space<vmem>>, %arg26: memref<1x32xf32, #tpu.memory_space<vmem>>, %arg27: memref<1x8x32xf32, #tpu.memory_space<vmem>>, %arg28: memref<1x1x8x8xf32, #tpu.memory_space<vmem>>, %arg29: memref<1x1x8x8xf32, #tpu.memory_space<vmem>>, %arg30: memref<8x32xf32, #tpu.memory_space<vmem>>) attributes {dimension_semantics = [#tpu.dimension_semantics<parallel>, #tpu.dimension_semantics<arbitrary>], iteration_bounds = array<i64: 2, 2>, scalar_prefetch = 0 : i64, scratch_operands = 1 : i64, tpu.core_type = #tpu.core_type<tc>, window_params = [{transform_indices = @transform_0, window_bounds = array<i64: 1, 8, 32>}, {transform_indices = @transform_1, window_bounds = array<i64: 1, 8, 32>}, {pipeline_mode = #tpu.pipeline_mode<synchronous>, transform_indices = @transform_2, window_bounds = array<i64: 8, 32>}, {transform_indices = @transform_3, window_bounds = array<i64: 1, 32, 96>}, {transform_indices = @transform_4, window_bounds = array<i64: 1, 1, 96>}, {transform_indices = @transform_5, window_bounds = array<i64: 1, 32, 32>}, {transform_indices = @transform_6, window_bounds = array<i64: 1, 1, 32>}, {transform_indices = @transform_7, window_bounds = array<i64: 1, 32, 32>}, {transform_indices = @transform_8, window_bounds = array<i64: 1, 1, 32>}, {transform_indices = @transform_9, window_bounds = array<i64: 1, 32, 64>}, {transform_indices = @transform_10, window_bounds = array<i64: 1, 1, 64>}, {transform_indices = @transform_11, window_bounds = array<i64: 1, 32, 32>}, {transform_indices = @transform_12, window_bounds = array<i64: 1, 1, 32>}, {transform_indices = @transform_13, window_bounds = array<i64: 1, 32, 64>}, {transform_indices = @transform_14, window_bounds = array<i64: 1, 1, 64>}, {transform_indices = @transform_15, window_bounds = array<i64: 1, 64, 32>}, {transform_indices = @transform_16, window_bounds = array<i64: 1, 1, 32>}, {transform_indices = @transform_17, window_bounds = array<i64: 1, 1, 32>}, {transform_indices = @transform_18, window_bounds = array<i64: 1, 1, 32>}, {transform_indices = @transform_19, window_bounds = array<i64: 1, 1, 32>}, {transform_indices = @transform_20, window_bounds = array<i64: 1, 1, 32>}, {transform_indices = @transform_21, window_bounds = array<i64: 1, 1, 32>}, {transform_indices = @transform_22, window_bounds = array<i64: 1, 1, 32>}, {pipeline_mode = #tpu.pipeline_mode<synchronous>, transform_indices = @transform_23, window_bounds = array<i64: 1, 32>}, {pipeline_mode = #tpu.pipeline_mode<synchronous>, transform_indices = @transform_24, window_bounds = array<i64: 1, 32>}, {transform_indices = @transform_25, window_bounds = array<i64: 1, 8, 32>}, {transform_indices = @transform_26, window_bounds = array<i64: 1, 1, 8, 8>}, {transform_indices = @transform_27, window_bounds = array<i64: 1, 1, 8, 8>}]} {
    %c0_i32 = arith.constant 0 : i32
    %0 = arith.cmpi eq, %arg1, %c0_i32 : i32
    %1 = arith.extui %0 : i1 to i32
    %c0_i32_0 = arith.constant 0 : i32
    %2 = arith.cmpi ne, %1, %c0_i32_0 : i32
    scf.if %2 {
      %c0_112 = arith.constant 0 : index
      %c0_113 = arith.constant 0 : index
      %c0_114 = arith.constant 0 : index
      %263 = vector.load %arg2[%c0_112, %c0_113, %c0_114] : memref<1x8x32xf32, #tpu.memory_space<vmem>>, vector<1x8x32xf32>
      %264 = vector.shape_cast %263 : vector<1x8x32xf32> to vector<8x32xf32>
      %c0_115 = arith.constant 0 : index
      %c0_116 = arith.constant 0 : index
      %265 = vector.load %arg4[%c0_115, %c0_116] : memref<8x32xf32, #tpu.memory_space<vmem>>, vector<8x32xf32>
      %266 = arith.addf %264, %265 : vector<8x32xf32>
      %c0_117 = arith.constant 0 : index
      %c0_118 = arith.constant 0 : index
      %267 = vector.load %arg30[%c0_117, %c0_118] : memref<8x32xf32, #tpu.memory_space<vmem>>, vector<8x32xf32>
      tpu.vector_store %arg30[%c0_117, %c0_118], %266 {strides = array<i32>} : memref<8x32xf32, #tpu.memory_space<vmem>>, vector<8x32xf32>,
    } else {
    }
    %c0 = arith.constant 0 : index
    %c0_1 = arith.constant 0 : index
    %3 = vector.load %arg30[%c0, %c0_1] : memref<8x32xf32, #tpu.memory_space<vmem>>, vector<8x32xf32>
    %c0_2 = arith.constant 0 : index
    %c0_3 = arith.constant 0 : index
    %c0_4 = arith.constant 0 : index
    %4 = vector.load %arg3[%c0_2, %c0_3, %c0_4] : memref<1x8x32xf32, #tpu.memory_space<vmem>>, vector<1x8x32xf32>
    %5 = vector.shape_cast %4 : vector<1x8x32xf32> to vector<8x32xf32>
    %c0_5 = arith.constant 0 : index
    %c0_6 = arith.constant 0 : index
    %c0_7 = arith.constant 0 : index
    %6 = vector.load %arg19[%c0_5, %c0_6, %c0_7] : memref<1x1x32xf32, #tpu.memory_space<vmem>>, vector<1x1x32xf32>
    %7 = vector.shape_cast %6 : vector<1x1x32xf32> to vector<1x32xf32>
    %c0_8 = arith.constant 0 : index
    %c0_9 = arith.constant 0 : index
    %c0_10 = arith.constant 0 : index
    %8 = vector.load %arg20[%c0_8, %c0_9, %c0_10] : memref<1x1x32xf32, #tpu.memory_space<vmem>>, vector<1x1x32xf32>
    %9 = vector.shape_cast %8 : vector<1x1x32xf32> to vector<1x32xf32>
    %cst = arith.constant dense<0.000000e+00> : vector<8xf32>
    %10 = vector.multi_reduction <add>, %3, %cst [1] : vector<8x32xf32> to vector<8xf32>
    %11 = vector.shape_cast %10 : vector<8xf32> to vector<8x1xf32>
    %cst_11 = arith.constant 3.200000e+01 : f32
    %12 = vector.broadcast %cst_11 : f32 to vector<8x1xf32>
    %13 = arith.divf %11, %12 : vector<8x1xf32>
    %14 = vector.broadcast %13 : vector<8x1xf32> to vector<8x32xf32>
    %15 = arith.subf %3, %14 : vector<8x32xf32>
    %16 = arith.mulf %15, %15 : vector<8x32xf32>
    %cst_12 = arith.constant dense<0.000000e+00> : vector<8xf32>
    %17 = vector.multi_reduction <add>, %16, %cst_12 [1] : vector<8x32xf32> to vector<8xf32>
    %18 = vector.shape_cast %17 : vector<8xf32> to vector<8x1xf32>
    %cst_13 = arith.constant 3.200000e+01 : f32
    %19 = vector.broadcast %cst_13 : f32 to vector<8x1xf32>
    %20 = arith.divf %18, %19 : vector<8x1xf32>
    %cst_14 = arith.constant 9.99999997E-7 : f32
    %21 = vector.broadcast %cst_14 : f32 to vector<8x1xf32>
    %22 = arith.addf %20, %21 : vector<8x1xf32>
    %23 = math.rsqrt %22 : vector<8x1xf32>
    %24 = vector.broadcast %23 : vector<8x1xf32> to vector<8x32xf32>
    %25 = arith.mulf %15, %24 : vector<8x32xf32>
    %26 = vector.broadcast %7 : vector<1x32xf32> to vector<8x32xf32>
    %27 = arith.mulf %25, %26 : vector<8x32xf32>
    %28 = vector.broadcast %9 : vector<1x32xf32> to vector<8x32xf32>
    %29 = arith.addf %27, %28 : vector<8x32xf32>
    %c0_15 = arith.constant 0 : index
    %c0_16 = arith.constant 0 : index
    %c0_17 = arith.constant 0 : index
    %30 = vector.load %arg5[%c0_15, %c0_16, %c0_17] : memref<1x32x96xbf16, #tpu.memory_space<vmem>>, vector<1x32x96xbf16>
    %31 = vector.shape_cast %30 : vector<1x32x96xbf16> to vector<32x96xbf16>
    %c0_18 = arith.constant 0 : index
    %c0_19 = arith.constant 0 : index
    %c0_20 = arith.constant 0 : index
    %32 = vector.load %arg6[%c0_18, %c0_19, %c0_20] : memref<1x1x96xf32, #tpu.memory_space<vmem>>, vector<1x1x96xf32>
    %33 = vector.shape_cast %32 : vector<1x1x96xf32> to vector<1x96xf32>
    %34 = arith.truncf %29 : vector<8x32xf32> to vector<8x32xbf16>
    %cst_21 = arith.constant dense<0.000000e+00> : vector<8x96xf32>
    %35 = tpu.matmul %34, %31, %cst_21 {dimension_numbers = #tpu.dot_dimension_numbers<[1], [0], [0], [1], [0, 0, 1, 1], [], []>} : vector<8x32xbf16>, vector<32x96xbf16>, vector<8x96xf32> -> vector<8x96xf32>
    %36 = vector.broadcast %33 : vector<1x96xf32> to vector<8x96xf32>
    %37 = arith.addf %35, %36 : vector<8x96xf32>
    %38 = arith.truncf %37 : vector<8x96xf32> to vector<8x96xbf16>
    %39 = vector.extract_strided_slice %38 {offsets = [0, 0], sizes = [8, 32], strides = [1, 1]} : vector<8x96xbf16> to vector<8x32xbf16>
    %40 = vector.extract_strided_slice %38 {offsets = [0, 32], sizes = [8, 32], strides = [1, 1]} : vector<8x96xbf16> to vector<8x32xbf16>
    %41 = vector.extract_strided_slice %38 {offsets = [0, 64], sizes = [8, 32], strides = [1, 1]} : vector<8x96xbf16> to vector<8x32xbf16>
    %c0_22 = arith.constant 0 : index
    %c0_23 = arith.constant 0 : index
    %c0_24 = arith.constant 0 : index
    %42 = vector.load %arg7[%c0_22, %c0_23, %c0_24] : memref<1x32x32xbf16, #tpu.memory_space<vmem>>, vector<1x32x32xbf16>
    %43 = vector.shape_cast %42 : vector<1x32x32xbf16> to vector<32x32xbf16>
    %c0_25 = arith.constant 0 : index
    %c0_26 = arith.constant 0 : index
    %c0_27 = arith.constant 0 : index
    %44 = vector.load %arg8[%c0_25, %c0_26, %c0_27] : memref<1x1x32xf32, #tpu.memory_space<vmem>>, vector<1x1x32xf32>
    %45 = vector.shape_cast %44 : vector<1x1x32xf32> to vector<1x32xf32>
    %46 = vector.extract_strided_slice %39 {offsets = [0, 0], sizes = [8, 8], strides = [1, 1]} : vector<8x32xbf16> to vector<8x8xbf16>
    %47 = vector.extract_strided_slice %39 {offsets = [0, 8], sizes = [8, 8], strides = [1, 1]} : vector<8x32xbf16> to vector<8x8xbf16>
    %48 = vector.extract_strided_slice %39 {offsets = [0, 16], sizes = [8, 8], strides = [1, 1]} : vector<8x32xbf16> to vector<8x8xbf16>
    %49 = vector.extract_strided_slice %39 {offsets = [0, 24], sizes = [8, 8], strides = [1, 1]} : vector<8x32xbf16> to vector<8x8xbf16>
    %50 = vector.shape_cast %46 : vector<8x8xbf16> to vector<1x8x8xbf16>
    %51 = vector.shape_cast %47 : vector<8x8xbf16> to vector<1x8x8xbf16>
    %52 = vector.shape_cast %48 : vector<8x8xbf16> to vector<1x8x8xbf16>
    %53 = vector.shape_cast %49 : vector<8x8xbf16> to vector<1x8x8xbf16>
    %54 = tpu.concatenate %50, %51, %52, %53 in 0 : vector<1x8x8xbf16>, vector<1x8x8xbf16>, vector<1x8x8xbf16>, vector<1x8x8xbf16> -> vector<4x8x8xbf16>
    %55 = vector.extract_strided_slice %40 {offsets = [0, 0], sizes = [8, 8], strides = [1, 1]} : vector<8x32xbf16> to vector<8x8xbf16>
    %56 = vector.extract_strided_slice %40 {offsets = [0, 8], sizes = [8, 8], strides = [1, 1]} : vector<8x32xbf16> to vector<8x8xbf16>
    %57 = vector.extract_strided_slice %40 {offsets = [0, 16], sizes = [8, 8], strides = [1, 1]} : vector<8x32xbf16> to vector<8x8xbf16>
    %58 = vector.extract_strided_slice %40 {offsets = [0, 24], sizes = [8, 8], strides = [1, 1]} : vector<8x32xbf16> to vector<8x8xbf16>
    %59 = vector.shape_cast %55 : vector<8x8xbf16> to vector<1x8x8xbf16>
    %60 = vector.shape_cast %56 : vector<8x8xbf16> to vector<1x8x8xbf16>
    %61 = vector.shape_cast %57 : vector<8x8xbf16> to vector<1x8x8xbf16>
    %62 = vector.shape_cast %58 : vector<8x8xbf16> to vector<1x8x8xbf16>
    %63 = tpu.concatenate %59, %60, %61, %62 in 0 : vector<1x8x8xbf16>, vector<1x8x8xbf16>, vector<1x8x8xbf16>, vector<1x8x8xbf16> -> vector<4x8x8xbf16>
    %64 = vector.extract_strided_slice %41 {offsets = [0, 0], sizes = [8, 8], strides = [1, 1]} : vector<8x32xbf16> to vector<8x8xbf16>
    %65 = vector.extract_strided_slice %41 {offsets = [0, 8], sizes = [8, 8], strides = [1, 1]} : vector<8x32xbf16> to vector<8x8xbf16>
    %66 = vector.extract_strided_slice %41 {offsets = [0, 16], sizes = [8, 8], strides = [1, 1]} : vector<8x32xbf16> to vector<8x8xbf16>
    %67 = vector.extract_strided_slice %41 {offsets = [0, 24], sizes = [8, 8], strides = [1, 1]} : vector<8x32xbf16> to vector<8x8xbf16>
    %68 = vector.shape_cast %64 : vector<8x8xbf16> to vector<1x8x8xbf16>
    %69 = vector.shape_cast %65 : vector<8x8xbf16> to vector<1x8x8xbf16>
    %70 = vector.shape_cast %66 : vector<8x8xbf16> to vector<1x8x8xbf16>
    %71 = vector.shape_cast %67 : vector<8x8xbf16> to vector<1x8x8xbf16>
    %72 = tpu.concatenate %68, %69, %70, %71 in 0 : vector<1x8x8xbf16>, vector<1x8x8xbf16>, vector<1x8x8xbf16>, vector<1x8x8xbf16> -> vector<4x8x8xbf16>
    "tpu.trace_start"() <{level = 10 : i32, message = "hqd,hkd->hqk"}> : () -> ()
    %cst_28 = arith.constant dense<0.000000e+00> : vector<4x8x8xf32>
    %73 = tpu.matmul %54, %63, %cst_28 {dimension_numbers = #tpu.dot_dimension_numbers<[2], [2], [1], [1], [0, 0, 0, 1, 1, 1], [0], [0]>} : vector<4x8x8xbf16>, vector<4x8x8xbf16>, vector<4x8x8xf32> -> vector<4x8x8xf32>
    "tpu.trace_stop"() : () -> ()
    %cst_29 = arith.constant 0.353553385 : f32
    %74 = vector.broadcast %cst_29 : f32 to vector<4x8x8xf32>
    %75 = arith.mulf %73, %74 : vector<4x8x8xf32>
    %cst_30 = arith.constant dense<0xFF800000> : vector<4x8xf32>
    %76 = vector.multi_reduction <maximumf>, %75, %cst_30 [2] : vector<4x8x8xf32> to vector<4x8xf32>
    %77 = vector.shape_cast %76 : vector<4x8xf32> to vector<4x8x1xf32>
    %78 = vector.broadcast %77 : vector<4x8x1xf32> to vector<4x8x8xf32>
    %79 = arith.subf %75, %78 : vector<4x8x8xf32>
    %80 = math.exp %79 : vector<4x8x8xf32>
    %cst_31 = arith.constant dense<0.000000e+00> : vector<4x8xf32>
    %81 = vector.multi_reduction <add>, %80, %cst_31 [2] : vector<4x8x8xf32> to vector<4x8xf32>
    %82 = vector.shape_cast %81 : vector<4x8xf32> to vector<4x8x1xf32>
    %83 = vector.broadcast %82 : vector<4x8x1xf32> to vector<4x8x8xf32>
    %84 = arith.divf %80, %83 : vector<4x8x8xf32>
    %85 = arith.truncf %84 : vector<4x8x8xf32> to vector<4x8x8xbf16>
    "tpu.trace_start"() <{level = 10 : i32, message = "hqk,hkd->hqd"}> : () -> ()
    %cst_32 = arith.constant dense<0.000000e+00> : vector<4x8x8xf32>
    %86 = tpu.matmul %85, %72, %cst_32 {dimension_numbers = #tpu.dot_dimension_numbers<[2], [1], [1], [2], [0, 0, 0, 1, 1, 2], [0], [0]>} : vector<4x8x8xbf16>, vector<4x8x8xbf16>, vector<4x8x8xf32> -> vector<4x8x8xf32>
    "tpu.trace_stop"() : () -> ()
    %87 = vector.extract_strided_slice %86 {offsets = [0, 0, 0], sizes = [1, 8, 8], strides = [1, 1, 1]} : vector<4x8x8xf32> to vector<1x8x8xf32>
    %88 = vector.shape_cast %87 : vector<1x8x8xf32> to vector<8x8xf32>
    %89 = vector.extract_strided_slice %86 {offsets = [1, 0, 0], sizes = [1, 8, 8], strides = [1, 1, 1]} : vector<4x8x8xf32> to vector<1x8x8xf32>
    %90 = vector.shape_cast %89 : vector<1x8x8xf32> to vector<8x8xf32>
    %91 = vector.extract_strided_slice %86 {offsets = [2, 0, 0], sizes = [1, 8, 8], strides = [1, 1, 1]} : vector<4x8x8xf32> to vector<1x8x8xf32>
    %92 = vector.shape_cast %91 : vector<1x8x8xf32> to vector<8x8xf32>
    %93 = vector.extract_strided_slice %86 {offsets = [3, 0, 0], sizes = [1, 8, 8], strides = [1, 1, 1]} : vector<4x8x8xf32> to vector<1x8x8xf32>
    %94 = vector.shape_cast %93 : vector<1x8x8xf32> to vector<8x8xf32>
    %95 = tpu.concatenate %88, %90, %92, %94 in 1 : vector<8x8xf32>, vector<8x8xf32>, vector<8x8xf32>, vector<8x8xf32> -> vector<8x32xf32>
    %96 = arith.truncf %95 : vector<8x32xf32> to vector<8x32xbf16>
    %cst_33 = arith.constant dense<0.000000e+00> : vector<8x32xf32>
    %97 = tpu.matmul %96, %43, %cst_33 {dimension_numbers = #tpu.dot_dimension_numbers<[1], [0], [0], [1], [0, 0, 1, 1], [], []>} : vector<8x32xbf16>, vector<32x32xbf16>, vector<8x32xf32> -> vector<8x32xf32>
    %98 = vector.broadcast %45 : vector<1x32xf32> to vector<8x32xf32>
    %99 = arith.addf %97, %98 : vector<8x32xf32>
    %cst_34 = arith.constant dense<0.000000e+00> : vector<8x8xf32>
    %100 = vector.multi_reduction <add>, %84, %cst_34 [0] : vector<4x8x8xf32> to vector<8x8xf32>
    %cst_35 = arith.constant 2.500000e-01 : f32
    %101 = vector.broadcast %cst_35 : f32 to vector<8x8xf32>
    %102 = arith.mulf %100, %101 : vector<8x8xf32>
    %103 = arith.addf %3, %99 : vector<8x32xf32>
    %c0_36 = arith.constant 0 : index
    %c0_37 = arith.constant 0 : index
    %c0_38 = arith.constant 0 : index
    %104 = vector.load %arg21[%c0_36, %c0_37, %c0_38] : memref<1x1x32xf32, #tpu.memory_space<vmem>>, vector<1x1x32xf32>
    %105 = vector.shape_cast %104 : vector<1x1x32xf32> to vector<1x32xf32>
    %c0_39 = arith.constant 0 : index
    %c0_40 = arith.constant 0 : index
    %c0_41 = arith.constant 0 : index
    %106 = vector.load %arg22[%c0_39, %c0_40, %c0_41] : memref<1x1x32xf32, #tpu.memory_space<vmem>>, vector<1x1x32xf32>
    %107 = vector.shape_cast %106 : vector<1x1x32xf32> to vector<1x32xf32>
    %cst_42 = arith.constant dense<0.000000e+00> : vector<8xf32>
    %108 = vector.multi_reduction <add>, %103, %cst_42 [1] : vector<8x32xf32> to vector<8xf32>
    %109 = vector.shape_cast %108 : vector<8xf32> to vector<8x1xf32>
    %cst_43 = arith.constant 3.200000e+01 : f32
    %110 = vector.broadcast %cst_43 : f32 to vector<8x1xf32>
    %111 = arith.divf %109, %110 : vector<8x1xf32>
    %112 = vector.broadcast %111 : vector<8x1xf32> to vector<8x32xf32>
    %113 = arith.subf %103, %112 : vector<8x32xf32>
    %114 = arith.mulf %113, %113 : vector<8x32xf32>
    %cst_44 = arith.constant dense<0.000000e+00> : vector<8xf32>
    %115 = vector.multi_reduction <add>, %114, %cst_44 [1] : vector<8x32xf32> to vector<8xf32>
    %116 = vector.shape_cast %115 : vector<8xf32> to vector<8x1xf32>
    %cst_45 = arith.constant 3.200000e+01 : f32
    %117 = vector.broadcast %cst_45 : f32 to vector<8x1xf32>
    %118 = arith.divf %116, %117 : vector<8x1xf32>
    %cst_46 = arith.constant 9.99999997E-7 : f32
    %119 = vector.broadcast %cst_46 : f32 to vector<8x1xf32>
    %120 = arith.addf %118, %119 : vector<8x1xf32>
    %121 = math.rsqrt %120 : vector<8x1xf32>
    %122 = vector.broadcast %121 : vector<8x1xf32> to vector<8x32xf32>
    %123 = arith.mulf %113, %122 : vector<8x32xf32>
    %124 = vector.broadcast %105 : vector<1x32xf32> to vector<8x32xf32>
    %125 = arith.mulf %123, %124 : vector<8x32xf32>
    %126 = vector.broadcast %107 : vector<1x32xf32> to vector<8x32xf32>
    %127 = arith.addf %125, %126 : vector<8x32xf32>
    %c0_47 = arith.constant 0 : index
    %c0_48 = arith.constant 0 : index
    %c0_49 = arith.constant 0 : index
    %128 = vector.load %arg9[%c0_47, %c0_48, %c0_49] : memref<1x32x32xbf16, #tpu.memory_space<vmem>>, vector<1x32x32xbf16>
    %129 = vector.shape_cast %128 : vector<1x32x32xbf16> to vector<32x32xbf16>
    %c0_50 = arith.constant 0 : index
    %c0_51 = arith.constant 0 : index
    %c0_52 = arith.constant 0 : index
    %130 = vector.load %arg10[%c0_50, %c0_51, %c0_52] : memref<1x1x32xf32, #tpu.memory_space<vmem>>, vector<1x1x32xf32>
    %131 = vector.shape_cast %130 : vector<1x1x32xf32> to vector<1x32xf32>
    %132 = arith.truncf %127 : vector<8x32xf32> to vector<8x32xbf16>
    %cst_53 = arith.constant dense<0.000000e+00> : vector<8x32xf32>
    %133 = tpu.matmul %132, %129, %cst_53 {dimension_numbers = #tpu.dot_dimension_numbers<[1], [0], [0], [1], [0, 0, 1, 1], [], []>} : vector<8x32xbf16>, vector<32x32xbf16>, vector<8x32xf32> -> vector<8x32xf32>
    %134 = vector.broadcast %131 : vector<1x32xf32> to vector<8x32xf32>
    %135 = arith.addf %133, %134 : vector<8x32xf32>
    %136 = arith.truncf %135 : vector<8x32xf32> to vector<8x32xbf16>
    %c0_54 = arith.constant 0 : index
    %c0_55 = arith.constant 0 : index
    %c0_56 = arith.constant 0 : index
    %137 = vector.load %arg11[%c0_54, %c0_55, %c0_56] : memref<1x32x64xbf16, #tpu.memory_space<vmem>>, vector<1x32x64xbf16>
    %138 = vector.shape_cast %137 : vector<1x32x64xbf16> to vector<32x64xbf16>
    %c0_57 = arith.constant 0 : index
    %c0_58 = arith.constant 0 : index
    %c0_59 = arith.constant 0 : index
    %139 = vector.load %arg12[%c0_57, %c0_58, %c0_59] : memref<1x1x64xf32, #tpu.memory_space<vmem>>, vector<1x1x64xf32>
    %140 = vector.shape_cast %139 : vector<1x1x64xf32> to vector<1x64xf32>
    %141 = arith.truncf %5 : vector<8x32xf32> to vector<8x32xbf16>
    %cst_60 = arith.constant dense<0.000000e+00> : vector<8x64xf32>
    %142 = tpu.matmul %141, %138, %cst_60 {dimension_numbers = #tpu.dot_dimension_numbers<[1], [0], [0], [1], [0, 0, 1, 1], [], []>} : vector<8x32xbf16>, vector<32x64xbf16>, vector<8x64xf32> -> vector<8x64xf32>
    %143 = vector.broadcast %140 : vector<1x64xf32> to vector<8x64xf32>
    %144 = arith.addf %142, %143 : vector<8x64xf32>
    %145 = arith.truncf %144 : vector<8x64xf32> to vector<8x64xbf16>
    %146 = vector.extract_strided_slice %145 {offsets = [0, 0], sizes = [8, 32], strides = [1, 1]} : vector<8x64xbf16> to vector<8x32xbf16>
    %147 = vector.extract_strided_slice %145 {offsets = [0, 32], sizes = [8, 32], strides = [1, 1]} : vector<8x64xbf16> to vector<8x32xbf16>
    %c0_61 = arith.constant 0 : index
    %c0_62 = arith.constant 0 : index
    %c0_63 = arith.constant 0 : index
    %148 = vector.load %arg13[%c0_61, %c0_62, %c0_63] : memref<1x32x32xbf16, #tpu.memory_space<vmem>>, vector<1x32x32xbf16>
    %149 = vector.shape_cast %148 : vector<1x32x32xbf16> to vector<32x32xbf16>
    %c0_64 = arith.constant 0 : index
    %c0_65 = arith.constant 0 : index
    %c0_66 = arith.constant 0 : index
    %150 = vector.load %arg14[%c0_64, %c0_65, %c0_66] : memref<1x1x32xf32, #tpu.memory_space<vmem>>, vector<1x1x32xf32>
    %151 = vector.shape_cast %150 : vector<1x1x32xf32> to vector<1x32xf32>
    %152 = vector.extract_strided_slice %136 {offsets = [0, 0], sizes = [8, 8], strides = [1, 1]} : vector<8x32xbf16> to vector<8x8xbf16>
    %153 = vector.extract_strided_slice %136 {offsets = [0, 8], sizes = [8, 8], strides = [1, 1]} : vector<8x32xbf16> to vector<8x8xbf16>
    %154 = vector.extract_strided_slice %136 {offsets = [0, 16], sizes = [8, 8], strides = [1, 1]} : vector<8x32xbf16> to vector<8x8xbf16>
    %155 = vector.extract_strided_slice %136 {offsets = [0, 24], sizes = [8, 8], strides = [1, 1]} : vector<8x32xbf16> to vector<8x8xbf16>
    %156 = vector.shape_cast %152 : vector<8x8xbf16> to vector<1x8x8xbf16>
    %157 = vector.shape_cast %153 : vector<8x8xbf16> to vector<1x8x8xbf16>
    %158 = vector.shape_cast %154 : vector<8x8xbf16> to vector<1x8x8xbf16>
    %159 = vector.shape_cast %155 : vector<8x8xbf16> to vector<1x8x8xbf16>
    %160 = tpu.concatenate %156, %157, %158, %159 in 0 : vector<1x8x8xbf16>, vector<1x8x8xbf16>, vector<1x8x8xbf16>, vector<1x8x8xbf16> -> vector<4x8x8xbf16>
    %161 = vector.extract_strided_slice %146 {offsets = [0, 0], sizes = [8, 8], strides = [1, 1]} : vector<8x32xbf16> to vector<8x8xbf16>
    %162 = vector.extract_strided_slice %146 {offsets = [0, 8], sizes = [8, 8], strides = [1, 1]} : vector<8x32xbf16> to vector<8x8xbf16>
    %163 = vector.extract_strided_slice %146 {offsets = [0, 16], sizes = [8, 8], strides = [1, 1]} : vector<8x32xbf16> to vector<8x8xbf16>
    %164 = vector.extract_strided_slice %146 {offsets = [0, 24], sizes = [8, 8], strides = [1, 1]} : vector<8x32xbf16> to vector<8x8xbf16>
    %165 = vector.shape_cast %161 : vector<8x8xbf16> to vector<1x8x8xbf16>
    %166 = vector.shape_cast %162 : vector<8x8xbf16> to vector<1x8x8xbf16>
    %167 = vector.shape_cast %163 : vector<8x8xbf16> to vector<1x8x8xbf16>
    %168 = vector.shape_cast %164 : vector<8x8xbf16> to vector<1x8x8xbf16>
    %169 = tpu.concatenate %165, %166, %167, %168 in 0 : vector<1x8x8xbf16>, vector<1x8x8xbf16>, vector<1x8x8xbf16>, vector<1x8x8xbf16> -> vector<4x8x8xbf16>
    %170 = vector.extract_strided_slice %147 {offsets = [0, 0], sizes = [8, 8], strides = [1, 1]} : vector<8x32xbf16> to vector<8x8xbf16>
    %171 = vector.extract_strided_slice %147 {offsets = [0, 8], sizes = [8, 8], strides = [1, 1]} : vector<8x32xbf16> to vector<8x8xbf16>
    %172 = vector.extract_strided_slice %147 {offsets = [0, 16], sizes = [8, 8], strides = [1, 1]} : vector<8x32xbf16> to vector<8x8xbf16>
    %173 = vector.extract_strided_slice %147 {offsets = [0, 24], sizes = [8, 8], strides = [1, 1]} : vector<8x32xbf16> to vector<8x8xbf16>
    %174 = vector.shape_cast %170 : vector<8x8xbf16> to vector<1x8x8xbf16>
    %175 = vector.shape_cast %171 : vector<8x8xbf16> to vector<1x8x8xbf16>
    %176 = vector.shape_cast %172 : vector<8x8xbf16> to vector<1x8x8xbf16>
    %177 = vector.shape_cast %173 : vector<8x8xbf16> to vector<1x8x8xbf16>
    %178 = tpu.concatenate %174, %175, %176, %177 in 0 : vector<1x8x8xbf16>, vector<1x8x8xbf16>, vector<1x8x8xbf16>, vector<1x8x8xbf16> -> vector<4x8x8xbf16>
    "tpu.trace_start"() <{level = 10 : i32, message = "hqd,hkd->hqk"}> : () -> ()
    %cst_67 = arith.constant dense<0.000000e+00> : vector<4x8x8xf32>
    %179 = tpu.matmul %160, %169, %cst_67 {dimension_numbers = #tpu.dot_dimension_numbers<[2], [2], [1], [1], [0, 0, 0, 1, 1, 1], [0], [0]>} : vector<4x8x8xbf16>, vector<4x8x8xbf16>, vector<4x8x8xf32> -> vector<4x8x8xf32>
    "tpu.trace_stop"() : () -> ()
    %cst_68 = arith.constant 0.353553385 : f32
    %180 = vector.broadcast %cst_68 : f32 to vector<4x8x8xf32>
    %181 = arith.mulf %179, %180 : vector<4x8x8xf32>
    %cst_69 = arith.constant dense<0xFF800000> : vector<4x8xf32>
    %182 = vector.multi_reduction <maximumf>, %181, %cst_69 [2] : vector<4x8x8xf32> to vector<4x8xf32>
    %183 = vector.shape_cast %182 : vector<4x8xf32> to vector<4x8x1xf32>
    %184 = vector.broadcast %183 : vector<4x8x1xf32> to vector<4x8x8xf32>
    %185 = arith.subf %181, %184 : vector<4x8x8xf32>
    %186 = math.exp %185 : vector<4x8x8xf32>
    %cst_70 = arith.constant dense<0.000000e+00> : vector<4x8xf32>
    %187 = vector.multi_reduction <add>, %186, %cst_70 [2] : vector<4x8x8xf32> to vector<4x8xf32>
    %188 = vector.shape_cast %187 : vector<4x8xf32> to vector<4x8x1xf32>
    %189 = vector.broadcast %188 : vector<4x8x1xf32> to vector<4x8x8xf32>
    %190 = arith.divf %186, %189 : vector<4x8x8xf32>
    %191 = arith.truncf %190 : vector<4x8x8xf32> to vector<4x8x8xbf16>
    "tpu.trace_start"() <{level = 10 : i32, message = "hqk,hkd->hqd"}> : () -> ()
    %cst_71 = arith.constant dense<0.000000e+00> : vector<4x8x8xf32>
    %192 = tpu.matmul %191, %178, %cst_71 {dimension_numbers = #tpu.dot_dimension_numbers<[2], [1], [1], [2], [0, 0, 0, 1, 1, 2], [0], [0]>} : vector<4x8x8xbf16>, vector<4x8x8xbf16>, vector<4x8x8xf32> -> vector<4x8x8xf32>
    "tpu.trace_stop"() : () -> ()
    %193 = vector.extract_strided_slice %192 {offsets = [0, 0, 0], sizes = [1, 8, 8], strides = [1, 1, 1]} : vector<4x8x8xf32> to vector<1x8x8xf32>
    %194 = vector.shape_cast %193 : vector<1x8x8xf32> to vector<8x8xf32>
    %195 = vector.extract_strided_slice %192 {offsets = [1, 0, 0], sizes = [1, 8, 8], strides = [1, 1, 1]} : vector<4x8x8xf32> to vector<1x8x8xf32>
    %196 = vector.shape_cast %195 : vector<1x8x8xf32> to vector<8x8xf32>
    %197 = vector.extract_strided_slice %192 {offsets = [2, 0, 0], sizes = [1, 8, 8], strides = [1, 1, 1]} : vector<4x8x8xf32> to vector<1x8x8xf32>
    %198 = vector.shape_cast %197 : vector<1x8x8xf32> to vector<8x8xf32>
    %199 = vector.extract_strided_slice %192 {offsets = [3, 0, 0], sizes = [1, 8, 8], strides = [1, 1, 1]} : vector<4x8x8xf32> to vector<1x8x8xf32>
    %200 = vector.shape_cast %199 : vector<1x8x8xf32> to vector<8x8xf32>
    %201 = tpu.concatenate %194, %196, %198, %200 in 1 : vector<8x8xf32>, vector<8x8xf32>, vector<8x8xf32>, vector<8x8xf32> -> vector<8x32xf32>
    %202 = arith.truncf %201 : vector<8x32xf32> to vector<8x32xbf16>
    %cst_72 = arith.constant dense<0.000000e+00> : vector<8x32xf32>
    %203 = tpu.matmul %202, %149, %cst_72 {dimension_numbers = #tpu.dot_dimension_numbers<[1], [0], [0], [1], [0, 0, 1, 1], [], []>} : vector<8x32xbf16>, vector<32x32xbf16>, vector<8x32xf32> -> vector<8x32xf32>
    %204 = vector.broadcast %151 : vector<1x32xf32> to vector<8x32xf32>
    %205 = arith.addf %203, %204 : vector<8x32xf32>
    %cst_73 = arith.constant dense<0.000000e+00> : vector<8x8xf32>
    %206 = vector.multi_reduction <add>, %190, %cst_73 [0] : vector<4x8x8xf32> to vector<8x8xf32>
    %cst_74 = arith.constant 2.500000e-01 : f32
    %207 = vector.broadcast %cst_74 : f32 to vector<8x8xf32>
    %208 = arith.mulf %206, %207 : vector<8x8xf32>
    %209 = arith.addf %103, %205 : vector<8x32xf32>
    %c0_75 = arith.constant 0 : index
    %c0_76 = arith.constant 0 : index
    %c0_77 = arith.constant 0 : index
    %210 = vector.load %arg23[%c0_75, %c0_76, %c0_77] : memref<1x1x32xf32, #tpu.memory_space<vmem>>, vector<1x1x32xf32>
    %211 = vector.shape_cast %210 : vector<1x1x32xf32> to vector<1x32xf32>
    %c0_78 = arith.constant 0 : index
    %c0_79 = arith.constant 0 : index
    %c0_80 = arith.constant 0 : index
    %212 = vector.load %arg24[%c0_78, %c0_79, %c0_80] : memref<1x1x32xf32, #tpu.memory_space<vmem>>, vector<1x1x32xf32>
    %213 = vector.shape_cast %212 : vector<1x1x32xf32> to vector<1x32xf32>
    %cst_81 = arith.constant dense<0.000000e+00> : vector<8xf32>
    %214 = vector.multi_reduction <add>, %209, %cst_81 [1] : vector<8x32xf32> to vector<8xf32>
    %215 = vector.shape_cast %214 : vector<8xf32> to vector<8x1xf32>
    %cst_82 = arith.constant 3.200000e+01 : f32
    %216 = vector.broadcast %cst_82 : f32 to vector<8x1xf32>
    %217 = arith.divf %215, %216 : vector<8x1xf32>
    %218 = vector.broadcast %217 : vector<8x1xf32> to vector<8x32xf32>
    %219 = arith.subf %209, %218 : vector<8x32xf32>
    %220 = arith.mulf %219, %219 : vector<8x32xf32>
    %cst_83 = arith.constant dense<0.000000e+00> : vector<8xf32>
    %221 = vector.multi_reduction <add>, %220, %cst_83 [1] : vector<8x32xf32> to vector<8xf32>
    %222 = vector.shape_cast %221 : vector<8xf32> to vector<8x1xf32>
    %cst_84 = arith.constant 3.200000e+01 : f32
    %223 = vector.broadcast %cst_84 : f32 to vector<8x1xf32>
    %224 = arith.divf %222, %223 : vector<8x1xf32>
    %cst_85 = arith.constant 9.99999997E-7 : f32
    %225 = vector.broadcast %cst_85 : f32 to vector<8x1xf32>
    %226 = arith.addf %224, %225 : vector<8x1xf32>
    %227 = math.rsqrt %226 : vector<8x1xf32>
    %228 = vector.broadcast %227 : vector<8x1xf32> to vector<8x32xf32>
    %229 = arith.mulf %219, %228 : vector<8x32xf32>
    %230 = vector.broadcast %211 : vector<1x32xf32> to vector<8x32xf32>
    %231 = arith.mulf %229, %230 : vector<8x32xf32>
    %232 = vector.broadcast %213 : vector<1x32xf32> to vector<8x32xf32>
    %233 = arith.addf %231, %232 : vector<8x32xf32>
    %c0_86 = arith.constant 0 : index
    %c0_87 = arith.constant 0 : index
    %c0_88 = arith.constant 0 : index
    %234 = vector.load %arg15[%c0_86, %c0_87, %c0_88] : memref<1x32x64xbf16, #tpu.memory_space<vmem>>, vector<1x32x64xbf16>
    %235 = vector.shape_cast %234 : vector<1x32x64xbf16> to vector<32x64xbf16>
    %c0_89 = arith.constant 0 : index
    %c0_90 = arith.constant 0 : index
    %c0_91 = arith.constant 0 : index
    %236 = vector.load %arg16[%c0_89, %c0_90, %c0_91] : memref<1x1x64xf32, #tpu.memory_space<vmem>>, vector<1x1x64xf32>
    %237 = vector.shape_cast %236 : vector<1x1x64xf32> to vector<1x64xf32>
    %238 = arith.truncf %233 : vector<8x32xf32> to vector<8x32xbf16>
    %cst_92 = arith.constant dense<0.000000e+00> : vector<8x64xf32>
    %239 = tpu.matmul %238, %235, %cst_92 {dimension_numbers = #tpu.dot_dimension_numbers<[1], [0], [0], [1], [0, 0, 1, 1], [], []>} : vector<8x32xbf16>, vector<32x64xbf16>, vector<8x64xf32> -> vector<8x64xf32>
    %240 = vector.broadcast %237 : vector<1x64xf32> to vector<8x64xf32>
    %241 = arith.addf %239, %240 : vector<8x64xf32>
    %cst_93 = arith.constant 0.000000e+00 : f32
    %242 = vector.broadcast %cst_93 : f32 to vector<8x64xf32>
    %243 = arith.maximumf %241, %242 : vector<8x64xf32>
    %c0_94 = arith.constant 0 : index
    %c0_95 = arith.constant 0 : index
    %c0_96 = arith.constant 0 : index
    %244 = vector.load %arg17[%c0_94, %c0_95, %c0_96] : memref<1x64x32xbf16, #tpu.memory_space<vmem>>, vector<1x64x32xbf16>
    %245 = vector.shape_cast %244 : vector<1x64x32xbf16> to vector<64x32xbf16>
    %c0_97 = arith.constant 0 : index
    %c0_98 = arith.constant 0 : index
    %c0_99 = arith.constant 0 : index
    %246 = vector.load %arg18[%c0_97, %c0_98, %c0_99] : memref<1x1x32xf32, #tpu.memory_space<vmem>>, vector<1x1x32xf32>
    %247 = vector.shape_cast %246 : vector<1x1x32xf32> to vector<1x32xf32>
    %248 = arith.truncf %243 : vector<8x64xf32> to vector<8x64xbf16>
    %cst_100 = arith.constant dense<0.000000e+00> : vector<8x32xf32>
    %249 = tpu.matmul %248, %245, %cst_100 {dimension_numbers = #tpu.dot_dimension_numbers<[1], [0], [0], [1], [0, 0, 1, 1], [], []>} : vector<8x64xbf16>, vector<64x32xbf16>, vector<8x32xf32> -> vector<8x32xf32>
    %250 = vector.broadcast %247 : vector<1x32xf32> to vector<8x32xf32>
    %251 = arith.addf %249, %250 : vector<8x32xf32>
    %252 = arith.addf %209, %251 : vector<8x32xf32>
    %c0_101 = arith.constant 0 : index
    %c0_102 = arith.constant 0 : index
    %253 = vector.load %arg30[%c0_101, %c0_102] : memref<8x32xf32, #tpu.memory_space<vmem>>, vector<8x32xf32>
    tpu.vector_store %arg30[%c0_101, %c0_102], %252 {strides = array<i32>} : memref<8x32xf32, #tpu.memory_space<vmem>>, vector<8x32xf32>,
    %c0_103 = arith.constant 0 : index
    %c0_104 = arith.constant 0 : index
    %c0_105 = arith.constant 0 : index
    %c0_106 = arith.constant 0 : index
    %254 = vector.load %arg28[%c0_103, %c0_104, %c0_105, %c0_106] : memref<1x1x8x8xf32, #tpu.memory_space<vmem>>, vector<1x1x8x8xf32>
    %255 = vector.shape_cast %254 : vector<1x1x8x8xf32> to vector<8x8xf32>
    %256 = vector.shape_cast %102 : vector<8x8xf32> to vector<1x1x8x8xf32>
    tpu.vector_store %arg28[%c0_103, %c0_104, %c0_105, %c0_106], %256 {strides = array<i32>} : memref<1x1x8x8xf32, #tpu.memory_space<vmem>>, vector<1x1x8x8xf32>,
    %c0_107 = arith.constant 0 : index
    %c0_108 = arith.constant 0 : index
    %c0_109 = arith.constant 0 : index
    %c0_110 = arith.constant 0 : index
    %257 = vector.load %arg29[%c0_107, %c0_108, %c0_109, %c0_110] : memref<1x1x8x8xf32, #tpu.memory_space<vmem>>, vector<1x1x8x8xf32>
    %258 = vector.shape_cast %257 : vector<1x1x8x8xf32> to vector<8x8xf32>
    %259 = vector.shape_cast %208 : vector<8x8xf32> to vector<1x1x8x8xf32>
    tpu.vector_store %arg29[%c0_107, %c0_108, %c0_109, %c0_110], %259 {strides = array<i32>} : memref<1x1x8x8xf32, #tpu.memory_space<vmem>>, vector<1x1x8x8xf32>,
    %c1_i32 = arith.constant 1 : i32
    %260 = arith.cmpi eq, %arg1, %c1_i32 : i32
    %261 = arith.extui %260 : i1 to i32
    %c0_i32_111 = arith.constant 0 : i32
    %262 = arith.cmpi ne, %261, %c0_i32_111 : i32
    scf.if %262 {
      %c0_112 = arith.constant 0 : index
      %c0_113 = arith.constant 0 : index
      %263 = vector.load %arg25[%c0_112, %c0_113] : memref<1x32xf32, #tpu.memory_space<vmem>>, vector<1x32xf32>
      %c0_114 = arith.constant 0 : index
      %c0_115 = arith.constant 0 : index
      %264 = vector.load %arg26[%c0_114, %c0_115] : memref<1x32xf32, #tpu.memory_space<vmem>>, vector<1x32xf32>
      %cst_116 = arith.constant dense<0.000000e+00> : vector<8xf32>
      %265 = vector.multi_reduction <add>, %252, %cst_116 [1] : vector<8x32xf32> to vector<8xf32>
      %266 = vector.shape_cast %265 : vector<8xf32> to vector<8x1xf32>
      %cst_117 = arith.constant 3.200000e+01 : f32
      %267 = vector.broadcast %cst_117 : f32 to vector<8x1xf32>
      %268 = arith.divf %266, %267 : vector<8x1xf32>
      %269 = vector.broadcast %268 : vector<8x1xf32> to vector<8x32xf32>
      %270 = arith.subf %252, %269 : vector<8x32xf32>
      %271 = arith.mulf %270, %270 : vector<8x32xf32>
      %cst_118 = arith.constant dense<0.000000e+00> : vector<8xf32>
      %272 = vector.multi_reduction <add>, %271, %cst_118 [1] : vector<8x32xf32> to vector<8xf32>
      %273 = vector.shape_cast %272 : vector<8xf32> to vector<8x1xf32>
      %cst_119 = arith.constant 3.200000e+01 : f32
      %274 = vector.broadcast %cst_119 : f32 to vector<8x1xf32>
      %275 = arith.divf %273, %274 : vector<8x1xf32>
      %cst_120 = arith.constant 9.99999997E-7 : f32
      %276 = vector.broadcast %cst_120 : f32 to vector<8x1xf32>
      %277 = arith.addf %275, %276 : vector<8x1xf32>
      %278 = math.rsqrt %277 : vector<8x1xf32>
      %279 = vector.broadcast %278 : vector<8x1xf32> to vector<8x32xf32>
      %280 = arith.mulf %270, %279 : vector<8x32xf32>
      %281 = vector.broadcast %263 : vector<1x32xf32> to vector<8x32xf32>
      %282 = arith.mulf %280, %281 : vector<8x32xf32>
      %283 = vector.broadcast %264 : vector<1x32xf32> to vector<8x32xf32>
      %284 = arith.addf %282, %283 : vector<8x32xf32>
      %c0_121 = arith.constant 0 : index
      %c0_122 = arith.constant 0 : index
      %c0_123 = arith.constant 0 : index
      %285 = vector.load %arg27[%c0_121, %c0_122, %c0_123] : memref<1x8x32xf32, #tpu.memory_space<vmem>>, vector<1x8x32xf32>
      %286 = vector.shape_cast %285 : vector<1x8x32xf32> to vector<8x32xf32>
      %287 = vector.shape_cast %284 : vector<8x32xf32> to vector<1x8x32xf32>
      tpu.vector_store %arg27[%c0_121, %c0_122, %c0_123], %287 {strides = array<i32>} : memref<1x8x32xf32, #tpu.memory_space<vmem>>, vector<1x8x32xf32>,
    } else {
    }
    return
  }
  func.func @transform_0(%arg0: i32, %arg1: i32) -> (i32, i32, i32) {
    %c0_i32 = arith.constant 0 : i32
    %c0_i32_0 = arith.constant 0 : i32
    %c0_i32_1 = arith.constant 0 : i32
    return %arg0, %c0_i32, %c0_i32_0 : i32, i32, i32
  }
  func.func @transform_1(%arg0: i32, %arg1: i32) -> (i32, i32, i32) {
    %c0_i32 = arith.constant 0 : i32
    %c0_i32_0 = arith.constant 0 : i32
    %c0_i32_1 = arith.constant 0 : i32
    return %arg0, %c0_i32, %c0_i32_0 : i32, i32, i32
  }
  func.func @transform_2(%arg0: i32, %arg1: i32) -> (i32, i32) {
    %c0_i32 = arith.constant 0 : i32
    %c0_i32_0 = arith.constant 0 : i32
    %c0_i32_1 = arith.constant 0 : i32
    return %c0_i32, %c0_i32_0 : i32, i32
  }
  func.func @transform_3(%arg0: i32, %arg1: i32) -> (i32, i32, i32) {
    %c0_i32 = arith.constant 0 : i32
    %c0_i32_0 = arith.constant 0 : i32
    %c0_i32_1 = arith.constant 0 : i32
    return %arg1, %c0_i32, %c0_i32_0 : i32, i32, i32
  }
  func.func @transform_4(%arg0: i32, %arg1: i32) -> (i32, i32, i32) {
    %c0_i32 = arith.constant 0 : i32
    %c0_i32_0 = arith.constant 0 : i32
    %c0_i32_1 = arith.constant 0 : i32
    return %arg1, %c0_i32, %c0_i32_0 : i32, i32, i32
  }
  func.func @transform_5(%arg0: i32, %arg1: i32) -> (i32, i32, i32) {
    %c0_i32 = arith.constant 0 : i32
    %c0_i32_0 = arith.constant 0 : i32
    %c0_i32_1 = arith.constant 0 : i32
    return %arg1, %c0_i32, %c0_i32_0 : i32, i32, i32
  }
  func.func @transform_6(%arg0: i32, %arg1: i32) -> (i32, i32, i32) {
    %c0_i32 = arith.constant 0 : i32
    %c0_i32_0 = arith.constant 0 : i32
    %c0_i32_1 = arith.constant 0 : i32
    return %arg1, %c0_i32, %c0_i32_0 : i32, i32, i32
  }
  func.func @transform_7(%arg0: i32, %arg1: i32) -> (i32, i32, i32) {
    %c0_i32 = arith.constant 0 : i32
    %c0_i32_0 = arith.constant 0 : i32
    %c0_i32_1 = arith.constant 0 : i32
    return %arg1, %c0_i32, %c0_i32_0 : i32, i32, i32
  }
  func.func @transform_8(%arg0: i32, %arg1: i32) -> (i32, i32, i32) {
    %c0_i32 = arith.constant 0 : i32
    %c0_i32_0 = arith.constant 0 : i32
    %c0_i32_1 = arith.constant 0 : i32
    return %arg1, %c0_i32, %c0_i32_0 : i32, i32, i32
  }
  func.func @transform_9(%arg0: i32, %arg1: i32) -> (i32, i32, i32) {
    %c0_i32 = arith.constant 0 : i32
    %c0_i32_0 = arith.constant 0 : i32
    %c0_i32_1 = arith.constant 0 : i32
    return %arg1, %c0_i32, %c0_i32_0 : i32, i32, i32
  }
  func.func @transform_10(%arg0: i32, %arg1: i32) -> (i32, i32, i32) {
    %c0_i32 = arith.constant 0 : i32
    %c0_i32_0 = arith.constant 0 : i32
    %c0_i32_1 = arith.constant 0 : i32
    return %arg1, %c0_i32, %c0_i32_0 : i32, i32, i32
  }
  func.func @transform_11(%arg0: i32, %arg1: i32) -> (i32, i32, i32) {
    %c0_i32 = arith.constant 0 : i32
    %c0_i32_0 = arith.constant 0 : i32
    %c0_i32_1 = arith.constant 0 : i32
    return %arg1, %c0_i32, %c0_i32_0 : i32, i32, i32
  }
  func.func @transform_12(%arg0: i32, %arg1: i32) -> (i32, i32, i32) {
    %c0_i32 = arith.constant 0 : i32
    %c0_i32_0 = arith.constant 0 : i32
    %c0_i32_1 = arith.constant 0 : i32
    return %arg1, %c0_i32, %c0_i32_0 : i32, i32, i32
  }
  func.func @transform_13(%arg0: i32, %arg1: i32) -> (i32, i32, i32) {
    %c0_i32 = arith.constant 0 : i32
    %c0_i32_0 = arith.constant 0 : i32
    %c0_i32_1 = arith.constant 0 : i32
    return %arg1, %c0_i32, %c0_i32_0 : i32, i32, i32
  }
  func.func @transform_14(%arg0: i32, %arg1: i32) -> (i32, i32, i32) {
    %c0_i32 = arith.constant 0 : i32
    %c0_i32_0 = arith.constant 0 : i32
    %c0_i32_1 = arith.constant 0 : i32
    return %arg1, %c0_i32, %c0_i32_0 : i32, i32, i32
  }
  func.func @transform_15(%arg0: i32, %arg1: i32) -> (i32, i32, i32) {
    %c0_i32 = arith.constant 0 : i32
    %c0_i32_0 = arith.constant 0 : i32
    %c0_i32_1 = arith.constant 0 : i32
    return %arg1, %c0_i32, %c0_i32_0 : i32, i32, i32
  }
  func.func @transform_16(%arg0: i32, %arg1: i32) -> (i32, i32, i32) {
    %c0_i32 = arith.constant 0 : i32
    %c0_i32_0 = arith.constant 0 : i32
    %c0_i32_1 = arith.constant 0 : i32
    return %arg1, %c0_i32, %c0_i32_0 : i32, i32, i32
  }
  func.func @transform_17(%arg0: i32, %arg1: i32) -> (i32, i32, i32) {
    %c0_i32 = arith.constant 0 : i32
    %c0_i32_0 = arith.constant 0 : i32
    %c0_i32_1 = arith.constant 0 : i32
    return %arg1, %c0_i32, %c0_i32_0 : i32, i32, i32
  }
  func.func @transform_18(%arg0: i32, %arg1: i32) -> (i32, i32, i32) {
    %c0_i32 = arith.constant 0 : i32
    %c0_i32_0 = arith.constant 0 : i32
    %c0_i32_1 = arith.constant 0 : i32
    return %arg1, %c0_i32, %c0_i32_0 : i32, i32, i32
  }
  func.func @transform_19(%arg0: i32, %arg1: i32) -> (i32, i32, i32) {
    %c0_i32 = arith.constant 0 : i32
    %c0_i32_0 = arith.constant 0 : i32
    %c0_i32_1 = arith.constant 0 : i32
    return %arg1, %c0_i32, %c0_i32_0 : i32, i32, i32
  }
  func.func @transform_20(%arg0: i32, %arg1: i32) -> (i32, i32, i32) {
    %c0_i32 = arith.constant 0 : i32
    %c0_i32_0 = arith.constant 0 : i32
    %c0_i32_1 = arith.constant 0 : i32
    return %arg1, %c0_i32, %c0_i32_0 : i32, i32, i32
  }
  func.func @transform_21(%arg0: i32, %arg1: i32) -> (i32, i32, i32) {
    %c0_i32 = arith.constant 0 : i32
    %c0_i32_0 = arith.constant 0 : i32
    %c0_i32_1 = arith.constant 0 : i32
    return %arg1, %c0_i32, %c0_i32_0 : i32, i32, i32
  }
  func.func @transform_22(%arg0: i32, %arg1: i32) -> (i32, i32, i32) {
    %c0_i32 = arith.constant 0 : i32
    %c0_i32_0 = arith.constant 0 : i32
    %c0_i32_1 = arith.constant 0 : i32
    return %arg1, %c0_i32, %c0_i32_0 : i32, i32, i32
  }
  func.func @transform_23(%arg0: i32, %arg1: i32) -> (i32, i32) {
    %c0_i32 = arith.constant 0 : i32
    %c0_i32_0 = arith.constant 0 : i32
    %c0_i32_1 = arith.constant 0 : i32
    return %c0_i32, %c0_i32_0 : i32, i32
  }
  func.func @transform_24(%arg0: i32, %arg1: i32) -> (i32, i32) {
    %c0_i32 = arith.constant 0 : i32
    %c0_i32_0 = arith.constant 0 : i32
    %c0_i32_1 = arith.constant 0 : i32
    return %c0_i32, %c0_i32_0 : i32, i32
  }
  func.func @transform_25(%arg0: i32, %arg1: i32) -> (i32, i32, i32) {
    %c0_i32 = arith.constant 0 : i32
    %c0_i32_0 = arith.constant 0 : i32
    %c0_i32_1 = arith.constant 0 : i32
    return %arg0, %c0_i32, %c0_i32_0 : i32, i32, i32
  }
  func.func @transform_26(%arg0: i32, %arg1: i32) -> (i32, i32, i32, i32) {
    %c0_i32 = arith.constant 0 : i32
    %c0_i32_0 = arith.constant 0 : i32
    %c0_i32_1 = arith.constant 0 : i32
    return %arg1, %arg0, %c0_i32, %c0_i32_0 : i32, i32, i32, i32
  }
  func.func @transform_27(%arg0: i32, %arg1: i32) -> (i32, i32, i32, i32) {
    %c0_i32 = arith.constant 0 : i32
    %c0_i32_0 = arith.constant 0 : i32
    %c0_i32_1 = arith.constant 0 : i32
    return %arg1, %arg0, %c0_i32, %c0_i32_0 : i32, i32, i32, i32
  }
}

</mosaic_0001>

<bundles_post_ra>
// kernel: transformer_base_forward.2
= control target key start
LH: loop header
LB: loop body
LE: loop exit
PB: predicated region body
PF: predicated region fallthrough
CT: control target
= control target key end

     0   :  { %s2728_s0 = inlined_call_operand.vmem [shape: f32[2,8,32], index: 0, kind: input, shape index: {}]   ;;  %s2729_s1 = inlined_call_operand.vmem [shape: f32[8,32], index: 1, kind: input, shape index: {}]   ;;  %s2730_s2 = inlined_call_operand.vmem [shape: bf16[2,32,96], index: 2, kind: input, shape index: {}]   ;;  %s2731_s3 = inlined_call_operand.vmem [shape: f32[2,1,96], index: 3, kind: input, shape index: {}]   ;;  %s2732_s4 = inlined_call_operand.vmem [shape: bf16[2,32,32], index: 4, kind: input, shape index: {}]   ;;  %s2733_s5 = inlined_call_operand.vmem [shape: f32[2,1,32], index: 5, kind: input, shape index: {}]   ;;  %s2734_s6 = inlined_call_operand.vmem [shape: bf16[2,32,64], index: 6, kind: input, shape index: {}]   ;;  %s2735_s7 = inlined_call_operand.vmem [shape: f32[2,1,64], index: 7, kind: input, shape index: {}]   ;;  %s2736_s8 = inlined_call_operand.vmem [shape: bf16[2,64,32], index: 8, kind: input, shape index: {}]   ;;  %s2737_s9 = inlined_call_operand.vmem [shape: f32[2,1,32], index: 9, kind: input, shape index: {}]   ;;  %s2738_s10 = inlined_call_operand.vmem [shape: f32[2,1,32], index: 10, kind: input, shape index: {}]   ;;  %s2739_s11 = inlined_call_operand.vmem [shape: f32[2,1,32], index: 11, kind: input, shape index: {}]   ;;  %s2740_s12 = inlined_call_operand.vmem [shape: f32[2,1,32], index: 12, kind: input, shape index: {}]   ;;  %s2741_s13 = inlined_call_operand.vmem [shape: f32[2,1,32], index: 13, kind: input, shape index: {}]   ;;  %s2742_s14 = inlined_call_operand.vmem [shape: f32[1,32], index: 14, kind: input, shape index: {}]   ;;  %s2743_s15 = inlined_call_operand.vmem [shape: f32[1,32], index: 15, kind: input, shape index: {}]   ;;  %s2744_s16 = inlined_call_operand.vmem [shape: f32[2,8,32], index: 16, kind: output, shape index: {0}]   ;;  %s2745_s17 = inlined_call_operand.hbm [shape: f32[2,2,8,8], index: 17, kind: output, shape index: {1}]  }
   0x1   :  { %2763 = sst [smem:[#allocation20_spill]] %s2728_s0 }
   0x2   :  { %2764 = sst [smem:[#allocation21_spill]] %s2729_s1 }
   0x3   :  { %2765 = sst [smem:[#allocation22_spill]] %s2730_s2 }
   0x4   :  { %2766 = sst [smem:[#allocation23_spill]] %s2732_s4 }
   0x5   :  { %2767 = sst [smem:[#allocation24_spill]] %s2734_s6 }
   0x6   :  { %2768 = sst [smem:[#allocation25_spill]] %s2736_s8 }
   0x7   :  { %2769 = sst [smem:[#allocation26_spill]] %s2737_s9 }
   0x8   :  { %2770 = sst [smem:[#allocation27_spill]] %s2741_s13 }
   0x9   :  { %2771 = sst [smem:[#allocation28_spill]] %s2742_s14 }
   0xa   :  { %2772 = sst [smem:[#allocation29_spill]] %s2743_s15 }
   0xb   :  { %2773 = sst [smem:[#allocation30_spill]] %s2744_s16 }
   0xc   :  { %2774 = sst [smem:[#allocation31_spill]] %s2745_s17 }
   0xd   :  { %23 = vsyncpa [#allocation4], 0 }
   0xe   :  { %25 = vsyncpa [#allocation4 + $0x1], 0  ;;  %s2349_s24 = smov 0   ;;  %s2351_s25 = smov 0  }
   0xf   :  { %s2353_s26 = smov 0   ;;  %s2355_s27 = smov 0  }
  0x10   :  { %s2357_s28 = smov 0   ;;  %s2359_s29 = smov 0  }
  0x11   :  { %s2361_s0 = smov 0   ;;  %s2363_s30 = smov 0  }
  0x12 LB: > { %2775 = sst [smem:[#allocation6_spill]] %s2218_s24  ;;  %s1866_s18 = sadd.s32 4294967295, %s2246_s30   ;;  %s2246_s30 = sphi %s2363_s30, %s31_s30   ;;  %s2242_s0 = sphi %s2361_s0, %s2826_s0   ;;  %s2238_s29 = sphi %s2359_s29, %s2825_s29   ;;  %s2234_s28 = sphi %s2357_s28, %s2824_s28   ;;  %s2230_s27 = sphi %s2355_s27, %s2823_s27   ;;  %s2226_s26 = sphi %s2353_s26, %s2822_s26   ;;  %s2222_s25 = sphi %s2351_s25, %s2821_s25   ;;  %s2218_s24 = sphi %s2349_s24, %s2820_s24  }
  0x13   : > { %2776 = sst [smem:[#allocation7_spill]] %s2222_s25  ;;  %s1867_s19 = sadd.s32 4294967294, %s2246_s30  }
  0x14   : > { %2777 = sst [smem:[#allocation8_spill]] %s2226_s26  ;;  %s40_s1 = sadd.s32 1, %s2238_s29 }
  0x15   : > { %2778 = sst [smem:[#allocation9_spill]] %s2230_s27  ;;  %p41_p0 = scmp.ge.s32.totalorder %s40_s1, 2 }
  0x16   : > { %2779 = sst [smem:[#allocation10_spill]] %s2234_s28  ;;  %s43_s20 = sadd.s32 1, %s2242_s0 }
  0x17   : > { %2780 = sst [smem:[#allocation11_spill]] %s2238_s29  ;;  %p489_p1 = scmp.ne.s32.totalorder %s2226_s26, %s2222_s25 }
  0x18   : > { %2781 = sst [smem:[#allocation12_spill]] %s2242_s0  ;;  %p490_p2 = scmp.eq.s32.totalorder %s1866_s18, 3 }
  0x19   : > { %2782 = sst [smem:[#allocation13_spill]] %s2246_s30  ;;  %s2828_s1 = smov (%p41_p0, %s40_s1), 0 }
  0x1a   : > { %2783 = sst [smem:[#allocation14_spill]] %s2828_s1  ;;  %s2830_s20 = smov (!%p41_p0, %s43_s20), %s2242_s0 }
  0x1b   : > { %s474_s21 = ssub.s32 %s2238_s29, %s2828_s1  ;;  %p2400_p3 = por %p490_p2, %p489_p1 }
  0x1c   : > { %p45_p4 = scmp.ge.s32.totalorder %s2830_s20, 2  ;;  %p495_p5 = scmp.ne.s32.totalorder %s2222_s25, %s2218_s24 }
  0x1d   : > { %s2784_s22 = scalar_select %p2400_p3, 1, 0 }
  0x1e   : > { %p496_p6 = scmp.eq.s32.totalorder %s1867_s19, 3  ;;  %p1870_p7 = scmp.ge.s32.totalorder %s2246_s30, 1 }
  0x1f   : > { %2785 = sst [smem:[#allocation15_spill]] %s2784_s22  ;;  %s2832_s20 = smov (%p45_p4, %s2830_s20), 0 }
  0x20   : > { %2786 = sst [smem:[#allocation16_spill]] %s2832_s20  ;;  %p2409_p8 = por %p496_p6, %p495_p5 }
  0x21   : > { %p610_p9 = scmp.lt.s32.totalorder %s2246_s30, 5  ;;  %s475_s18 = ssub.s32 %s2242_s0, %s2832_s20 }
  0x22   : > { %s2787_s23 = scalar_select %p2409_p8, 1, 0 }
  0x23   : > { %s479_s17 = sadd.s32 1, %s2226_s26  ;;  %s476_s15 = sor.u32 %s475_s18, %s474_s21 }
  0x24   : > { %2788 = sst [smem:[#allocation17_spill]] %s2787_s23  ;;  %p611_p10 = pnand %p1870_p7, %p610_p9 }
  0x25   : > { %p477_p11 = scmp.eq.s32.totalorder %s476_s15, 0 }
  0x26   : > { %614 = sbr.rel (%p611_p10) target bundleno = 3024 (0xbd0), region = 84 }
  0x27   : > { %s2418_s1 = scalar_select %p477_p11, %s2226_s26, %s479_s17  }
  0x29   : > { %2789 = sst [smem:[#allocation18_spill]] %s2418_s1 }
  0x2d   : > { %s2751_s19 = sand.u32 1, %s2222_s25   ;;  %p709_p12 = scmp.lt.s32.totalorder %s2234_s28, 1 }
  0x2e   : > { %s2424_s29 = sshll.u32 %s2751_s19, 3  ;;  %p713_p13 = scmp.lt.s32.totalorder %s2230_s27, 1 }
  0x2f   : > { %s710_s20 = scalar_select %p709_p12, %s2234_s28, 1 }
  0x30   : > { %s2429_s0 = scalar_select %p713_p13, %s2230_s27, 1 }
  0x31   : > { %s1872_s15 = sshll.u32 %s710_s20, 3  ;;  %s2790_s18 = sld [smem:[#allocation20_spill]] }
  0x32   : > { %s1921_s1 = sshll.u32 %s2429_s0, 4  ;;  %s2791_s2 = sld [smem:[#allocation22_spill]] }
  0x33   : > { %s2792_s4 = sld [smem:[#allocation23_spill]]  ;;  %s2794_s6 = sld [smem:[#allocation24_spill]] }
  0x34   : > { %s1924_s30 = sshll.u32 %s2429_s0, 5  ;;  %s2796_s8 = sld [smem:[#allocation25_spill]] }
  0x35   : > { %s747_s21 = scalar_lea.vmem %s2738_s10, %s2429_s0  ;;  %s750_s17 = scalar_lea.vmem %s2739_s11, %s2429_s0 }
  0x36   : > { %s2797_s22 = sld [smem:[#allocation27_spill]]  ;;  %s2799_s16 = sld [smem:[#allocation9_spill]] }
  0x37   : > { %s712_s19 = scalar_lea.vmem %s2790_s18, %s1872_s15 }
  0x38   : > { %s2438_s24 = scalar_lea.vmem %s2791_s2, %s1921_s1  ;;  %s753_s2 = scalar_lea.vmem %s2740_s12, %s2429_s0 }
  0x39   : > { %s2447_s27 = scalar_lea.vmem %s2792_s4, %s1921_s1  ;;  %s2456_s13 = scalar_lea.vmem %s2794_s6, %s1921_s1 }
  0x3a   : > { %2793 = sst [smem:[#allocation19_spill]] %s2447_s27  ;;  %s2470_s27 = scalar_lea.vmem %s2796_s8, %s1924_s30 }
  0x3b   : > { %s2798_s30 = sld [smem:[#allocation30_spill]]  ;;  %s708_s8 = scalar_lea.vmem [#allocation3], %s2424_s29 }
  0x3c   : > { %s756_s14 = scalar_lea.vmem %s2797_s22, %s2429_s0  ;;  %p1882_p0 = scmp.ne.s32.totalorder %s2799_s16, 0 }
  0x3d   : > { %v766_v0 = vld [vmem:[%s712_s19] sm:$0xff] (!%p1882_p0)  ;;  %s2800_s18 = sld [smem:[#allocation21_spill]] (!%p1882_p0)  ;;  %vm769_vm0 = vcmask (!%p1882_p0), 261120  }
  0x3e   : > { %765 = sbr.rel (%p1882_p0) target bundleno = 71 (0x47), region = 88 }
  0x41   : > { %s2491_s28 = scalar_lea.vmem %s2798_s30, %s1872_s15 }
  0x43   : > { %v767_v1 = vld [vmem:[%s2800_s18] sm:$0xff] (!%p1882_p0) }
  0x44   : > { %v768_v2 = vadd.f32 (!%p1882_p0), %v767_v1, %v766_v0 }
  0x46   : > { %770 = vst.msk [vmem:[#allocation2] sm:$0xff] %vm769_vm0, %v768_v2 }
  0x47 PF: > { %vm774_vm1 = vcmask 261120   ;;  %v2120_v10 = vld [vmem:[%s2438_s24] sm:$0xff]   ;;  %v2248_v11 = vmov 0.0   ;;  %vm2249_vm2 = vmmov 0   ;;  %v2121_v12 = vld [vmem:[%s2438_s24 + $0x8] sm:$0xff]   ;;  %s2801_s23 = scalar_lea.vmem %s2731_s3, %s2429_s0  ;;  %s2252_s25 = smov 112  }
  0x48   : > { %1955 = vmatprep.subr.bf16.mxu0 %v2248_v11  ;;  %1959 = vmatprep.mubr.msk.bf16.mxu0 %vm2249_vm2, %v2248_v11  ;;  %v1883_v17 = vld [vmem:[%s747_s21] ss:$0 sm:$0xff]  ;;  %s2251_s21 = smov 120   ;;  %s2253_s22 = smov 96   ;;  %vm885_vm3 = vcmask 64512   ;;  %vm1133_vm4 = vcmask 1043456  }
  0x49   : > { %1956 = vmatpush3.bf16.msra.mxu0 %v2120_v10  ;;  %1963 = vmatprep.subr.bf16.mxu1 %v2248_v11  ;;  %v1884_v19 = vld [vmem:[%s750_s17] ss:$0 sm:$0xff]  ;;  %s2250_s17 = smov 104   ;;  %s2254_s4 = smov 64   ;;  %vm1334_vm5 = vcmask 130048   ;;  %vm1336_vm6 = vcmask 195584  }
  0x4a   : > { %1957 = vmatprep.subr.bf16.mxu0 %v2248_v11  ;;  %1965 = vmatprep.mubr.msk.bf16.mxu1 %vm2249_vm2, %v2248_v11  ;;  %v1885_v23 = vld [vmem:[%s2801_s23] ss:$0 sm:$0xff]  ;;  %s2802_s30 = sld [smem:[#allocation19_spill]]  ;;  %s2255_s16 = smov 8   ;;  %vm1546_vm7 = vcmask 523264  }
  0x4b   : > { %s2256_s20 = smov 16   ;;  %s2257_s1 = smov 24  }
  0x4c   : > { %s2803_s9 = scalar_lea.vmem %s2733_s5, %s2429_s0 }
  0x4d   : > { %v2498_v3 = vld [vmem:[#allocation2] sm:$0xff]  ;;  %1958 = vmatpush3.bf16.msra.mxu0 %v2121_v12 }
  0x4e   : > { %v775_v4 = vsel %vm774_vm1, %v2498_v3, 0.0  ;;  %1969 = vmatprep.subr.bf16.mxu0 %v2248_v11 }
  0x4f   : > { %776 = vadd.xlane.f32.xlu0 %v775_v4 }
  0xdc   : > { %v777_v5 = vpop.xlane.xlu0 %776 }
  0xdd   : > { %v779_v6 = vmul.f32 0.03125, %v777_v5 }
  0xdf   : > { %v780_v7 = vsub.f32 %v2498_v3, %v779_v6 }
  0xe1   : > { %v781_v8 = vmul.f32 %v780_v7, %v780_v7 }
  0xe3   : > { %v782_v9 = vsel %vm774_vm1, %v781_v8, 0.0 }
  0xe4   : > { %783 = vadd.xlane.f32.xlu0 %v782_v9 }
 0x171   : > { %v784_v13 = vpop.xlane.xlu0 %783 }
 0x172   : > { %v785_v14 = vmul.f32 0.03125, %v784_v13 }
 0x174   : > { %v786_v15 = vadd.f32 1e-06, %v785_v14 }
 0x176   : > { %2130 = vrsqrt.f32 %v786_v15 }
 0x180   : > { %v2131_v16 = vpop.eup %2130 }
 0x181   : > { %v788_v18 = vmul.f32 %v2131_v16, %v780_v7 }
 0x183   : > { %v795_v20 = vmul.f32 %v1883_v17, %v788_v18 }
 0x185   : > { %v802_v21 = vadd.f32 %v1884_v19, %v795_v20 }
 0x187   : > { %v808_v22 = vpack.c.bf16 %v802_v21, %v802_v21 }
 0x189   : > { %1960 = vmatmul.mubr.msk.bf16.vlgmr.msra.gmra.mrb[0].mxu0 %vm774_vm1, %v808_v22 }
 0x18a   : > { %1971 = vmatprep.mubr.msk.bf16.mxu0 %vm2249_vm2, %v2248_v11 }
 0x25c   : > { %v864_v24 = vpop.f32.mrb[0].mxu0 }
 0x25d   : > { %v865_v25 = vadd.f32 %v1885_v23, %v864_v24  ;;  %v1961_v26 = vpop.f32.mrb[1].mxu0 }
 0x25e   : > { %v867_v27 = vpop.f32.mrb[2].mxu0 }
 0x25f   : > { %v2532_v28 = vpack.c.bf16 %v865_v25, %v865_v25  ;;  %v1962_v29 = vpop.f32.mrb[3].mxu0 }
 0x261   : > { %881 = vrot.lane.b32.xlu0 %v2532_v28, %s2250_s17  ;;  %877 = vrot.lane.b32.xlu1 %v2532_v28, %s2251_s21  ;;  %s2805_s17 = scalar_lea.vmem %s2735_s7, %s2429_s0 }
 0x265   : > { %879 = vrot.lane.b32.xlu1 %v2532_v28, %s2252_s25  ;;  %s2806_s25 = sld [smem:[#allocation26_spill]] }
 0x269   : > { %883 = vrot.lane.b32.xlu1 %v2532_v28, %s2253_s22 }
 0x2d3   : > { %v2538_v30 = vpop.permute.xlu1 %877  ;;  %v2544_v32 = vpop.permute.xlu0 %881 }
 0x2d4   : > { %932 = vrot.lane.b32.xlu1 %v2538_v30, %s2253_s22 }
 0x2d7   : > { %v2541_v31 = vpop.permute.xlu1 %879 }
 0x2d8   : > { %980 = vrot.lane.b32.xlu1 %v2541_v31, %s2253_s22 }
 0x2db   : > { %v884_v33 = vpop.permute.xlu1 %883 }
 0x2dc   : > { %1028 = vrot.lane.b32.xlu1 %v2544_v32, %s2253_s22  ;;  %v890_v34 = vsel %vm885_vm3, %v884_v33, 0  ;;  %s2807_s22 = scalar_lea.vmem %s2806_s25, %s2429_s0 }
 0x2dd   : > { %1964 = vmatpush3.bf16.xpose.msra.mxu1 %v890_v34 }
 0x2de   : > { %1975 = vmatprep.subr.bf16.mxu1 %v2248_v11 }
 0x2e4   : > { %1966 = vmatmul.mubr.msk.bf16.vlgmr.msra.gmra.mrb[0].mxu1 %vm885_vm3, %v2532_v28 }
 0x2e5   : > { %1977 = vmatprep.mubr.msk.bf16.mxu1 %vm2249_vm2, %v2248_v11 }
 0x346   : > { %v933_v35 = vpop.permute.xlu1 %932 }
 0x347   : > { %v938_v36 = vsel %vm885_vm3, %v933_v35, 0 }
 0x348   : > { %1970 = vmatpush3.bf16.xpose.msra.mxu0 %v938_v36 }
 0x349   : > { %1981 = vmatprep.subr.bf16.mxu0 %v2248_v11 }
 0x34a   : > { %v981_v37 = vpop.permute.xlu1 %980 }
 0x34b   : > { %v986_v38 = vsel %vm885_vm3, %v981_v37, 0 }
 0x34c   : > { %1976 = vmatpush3.bf16.xpose.msra.mxu1 %v986_v38 }
 0x34d   : > { %1987 = vmatprep.subr.bf16.mxu1 %v2248_v11 }
 0x34e   : > { %v1029_v39 = vpop.permute.xlu1 %1028 }
 0x34f   : > { %v1034_v40 = vsel %vm885_vm3, %v1029_v39, 0  ;;  %1972 = vmatmul.mubr.msk.bf16.vlgmr.msra.gmra.mrb[4].mxu0 %vm885_vm3, %v2538_v30 }
 0x350   : > { %1982 = vmatpush3.bf16.xpose.msra.mxu0 %v1034_v40  ;;  %1983 = vmatprep.mubr.msk.bf16.mxu0 %vm2249_vm2, %v2248_v11 }
 0x351   : > { %1993 = vmatprep.subr.bf16.mxu0 %v2248_v11 }
 0x353   : > { %1978 = vmatmul.mubr.msk.bf16.vlgmr.msra.gmra.mrb[4].mxu1 %vm885_vm3, %v2541_v31 }
 0x354   : > { %1989 = vmatprep.mubr.msk.bf16.mxu1 %vm2249_vm2, %v2248_v11 }
 0x357   : > { %1984 = vmatmul.mubr.msk.bf16.vlgmr.msra.gmra.mrb[8].mxu0 %vm885_vm3, %v2544_v32 }
 0x358   : > { %1995 = vmatprep.mubr.msk.bf16.mxu0 %vm2249_vm2, %v2248_v11 }
 0x3b7   : > { %v926_v41 = vpop.f32.mrb[0].mxu1 }
 0x3b8   : > { %v1076_v42 = vmul.f32 0.35355338, %v926_v41  ;;  %v1967_v43 = vpop.f32.mrb[1].mxu1 }
 0x3b9   : > { %v929_v44 = vpop.f32.mrb[2].mxu1 }
 0x3ba   : > { %v1968_v45 = vpop.f32.mrb[3].mxu1  ;;  %v1080_v46 = vsel %vm885_vm3, %v1076_v42, -inf }
 0x3bb   : > { %1081 = vmax.xlane.f32.xlu1 %v1080_v46 }
 0x422   : > { %v974_v47 = vpop.f32.mrb[4].mxu0 }
 0x423   : > { %v1077_v48 = vmul.f32 0.35355338, %v974_v47  ;;  %v1973_v49 = vpop.f32.mrb[5].mxu0 }
 0x424   : > { %v977_v50 = vpop.f32.mrb[6].mxu0 }
 0x425   : > { %v1974_v51 = vpop.f32.mrb[7].mxu0  ;;  %v1083_v52 = vsel %vm885_vm3, %v1077_v48, -inf }
 0x426   : > { %v1022_v53 = vpop.f32.mrb[4].mxu1  ;;  %1084 = vmax.xlane.f32.xlu0 %v1083_v52 }
 0x427   : > { %v1078_v54 = vmul.f32 0.35355338, %v1022_v53  ;;  %v1979_v55 = vpop.f32.mrb[5].mxu1 }
 0x428   : > { %v1025_v56 = vpop.f32.mrb[6].mxu1 }
 0x429   : > { %v1980_v57 = vpop.f32.mrb[7].mxu1  ;;  %v1086_v58 = vsel %vm885_vm3, %v1078_v54, -inf }
 0x42a   : > { %1087 = vmax.xlane.f32.xlu1 %v1086_v58  ;;  %v1070_v59 = vpop.f32.mrb[8].mxu0 }
 0x42b   : > { %v1079_v60 = vmul.f32 0.35355338, %v1070_v59  ;;  %v1985_v61 = vpop.f32.mrb[9].mxu0  ;;  %v2122_v59 = vld [vmem:[%s2802_s30] sm:$0xff]  }
 0x42c   : > { %v1073_v62 = vpop.f32.mrb[10].mxu0 }
 0x42d   : > { %v1986_v63 = vpop.f32.mrb[11].mxu0  ;;  %v1089_v0 = vsel %vm885_vm3, %v1079_v60, -inf }
 0x42e   : > { %1090 = vmax.xlane.f32.xlu0 %v1089_v0 }
 0x43b   : > { %1128 = vrot.lane.b32.xlu1 %v2532_v28, %s2254_s4 }
 0x448   : > { %v1082_v1 = vpop.xlane.xlu1 %1081 }
 0x449   : > { %v1092_v2 = vsub.f32 %v1076_v42, %v1082_v1 }
 0x44b   : > { %v1096_v4 = vmul.f32 1.442695, %v1092_v2 }
 0x44d   : > { %2132 = vpow2.f32 %v1096_v4 }
 0x457   : > { %v2133_v5 = vpop.eup %2132 }
 0x458   : > { %v1104_v6 = vsel %vm885_vm3, %v2133_v5, 0.0 }
 0x45f   : > { %1105 = vadd.xlane.f32.xlu1 %v1104_v6 }
 0x4b3   : > { %v1085_v7 = vpop.xlane.xlu0 %1084 }
 0x4b4   : > { %v1093_v8 = vsub.f32 %v1077_v48, %v1085_v7 }
 0x4b6   : > { %v1098_v9 = vmul.f32 1.442695, %v1093_v8 }
 0x4b7   : > { %v1088_v10 = vpop.xlane.xlu1 %1087 }
 0x4b8   : > { %2134 = vpow2.f32 %v1098_v9  ;;  %v1094_v12 = vsub.f32 %v1078_v54, %v1088_v10 }
 0x4ba   : > { %v1100_v13 = vmul.f32 1.442695, %v1094_v12 }
 0x4bb   : > { %v1129_v14 = vpop.permute.xlu1 %1128  ;;  %v1091_v15 = vpop.xlane.xlu0 %1090 }
 0x4bc   : > { %2136 = vpow2.f32 %v1100_v13  ;;  %v1135_v16 = vsel %vm1133_vm4, %v1129_v14, 0  ;;  %v1095_v17 = vsub.f32 %v1079_v60, %v1091_v15  ;;  %v2123_v60 = vld [vmem:[%s2802_s30 + $0x8] sm:$0xff]  }
 0x4bd   : > { %1988 = vmatpush3.bf16.msra.mxu1 %v1135_v16 }
 0x4be   : > { %v1102_v18 = vmul.f32 1.442695, %v1095_v17  ;;  %1999 = vmatprep.subr.bf16.mxu1 %v2248_v11 }
 0x4c0   : > { %2138 = vpow2.f32 %v1102_v18  ;;  %v1897_v18 = vld [vmem:[%s2803_s9] ss:$0 sm:$0xff] }
 0x4c2   : > { %v2135_v19 = vpop.eup %2134 }
 0x4c3   : > { %v1107_v20 = vsel %vm885_vm3, %v2135_v19, 0.0 }
 0x4c4   : > { %1108 = vadd.xlane.f32.xlu0 %v1107_v20 }
 0x4c6   : > { %v2137_v21 = vpop.eup %2136 }
 0x4c7   : > { %v1110_v22 = vsel %vm885_vm3, %v2137_v21, 0.0 }
 0x4c8   : > { %1111 = vadd.xlane.f32.xlu1 %v1110_v22 }
 0x4ca   : > { %v2139_v23 = vpop.eup %2138 }
 0x4cb   : > { %v1113_v24 = vsel %vm885_vm3, %v2139_v23, 0.0 }
 0x4cc   : > { %1114 = vadd.xlane.f32.xlu0 %v1113_v24 }
 0x4d9   : > { %1225 = vrot.lane.b32.xlu1 %v2541_v31, %s2254_s4 }
 0x4dd   : > { %1273 = vrot.lane.b32.xlu1 %v2544_v32, %s2254_s4 }
 0x4e2   : > { %1177 = vrot.lane.b32.xlu0 %v2538_v30, %s2254_s4 }
 0x4ec   : > { %v1106_v25 = vpop.xlane.xlu1 %1105 }
 0x4ed   : > { %2140 = vrcp.f32 %v1106_v25 }
 0x4f7   : > { %v2141_v26 = vpop.eup %2140 }
 0x4f8   : > { %v1117_v27 = vmul.f32 %v2141_v26, %v2133_v5 }
 0x4fa   : > { %v1124_v28 = vpack.c.bf16 %v1117_v27, %v1117_v27  ;;  %v1400_v44 = vsel %vm885_vm3, %v1117_v27, 0.0 }
 0x4fc   : > { %1990 = vmatmul.mubr.msk.bf16.vlgmr.msra.gmra.mrb[8].mxu1 %vm885_vm3, %v1124_v28 }
 0x4fd   : > { %2001 = vmatprep.mubr.msk.bf16.mxu1 %vm2249_vm2, %v2248_v11 }
 0x551   : > { %v1109_v29 = vpop.xlane.xlu0 %1108 }
 0x552   : > { %2142 = vrcp.f32 %v1109_v29 }
 0x555   : > { %v1112_v33 = vpop.xlane.xlu1 %1111 }
 0x556   : > { %2144 = vrcp.f32 %v1112_v33 }
 0x559   : > { %v1226_v31 = vpop.permute.xlu1 %1225  ;;  %v1115_v34 = vpop.xlane.xlu0 %1114 }
 0x55a   : > { %v1231_v32 = vsel %vm1133_vm4, %v1226_v31, 0  ;;  %2146 = vrcp.f32 %v1115_v34  ;;  %v2124_v31 = vld [vmem:[%s2456_s13] sm:$0xff]   ;;  %v2125_v34 = vld [vmem:[%s2456_s13 + $0x8] sm:$0xff]  }
 0x55b   : > { %2000 = vmatpush3.bf16.msra.mxu1 %v1231_v32  ;;  %v2127_v32 = vld [vmem:[%s2470_s27 + $0x8] sm:$0xff]  }
 0x55c   : > { %v2143_v30 = vpop.eup %2142  ;;  %2011 = vmatprep.subr.bf16.mxu1 %v2248_v11 }
 0x55d   : > { %v1119_v35 = vmul.f32 %v2143_v30, %v2135_v19  ;;  %v1178_v36 = vpop.permute.xlu0 %1177  ;;  %v1274_v38 = vpop.permute.xlu1 %1273 }
 0x55e   : > { %v1183_v37 = vsel %vm1133_vm4, %v1178_v36, 0  ;;  %v1279_v43 = vsel %vm1133_vm4, %v1274_v38, 0  ;;  %v1901_v38 = vld [vmem:[%s753_s2] ss:$0 sm:$0xff] }
 0x55f   : > { %1994 = vmatpush3.bf16.msra.mxu0 %v1183_v37  ;;  %v1125_v39 = vpack.c.bf16 %v1119_v35, %v1119_v35  ;;  %v1401_v41 = vsel %vm885_vm3, %v1119_v35, 0.0 }
 0x560   : > { %v2145_v40 = vpop.eup %2144  ;;  %2005 = vmatprep.subr.bf16.mxu0 %v2248_v11  ;;  %v1402_v48 = vadd.f32 %v1401_v41, %v1400_v44  ;;  %v2128_v44 = vld [vmem:[%s2470_s27 + $0x10] sm:$0xff]  }
 0x561   : > { %v1121_v42 = vmul.f32 %v2145_v40, %v2137_v21  ;;  %v1902_v40 = vld [vmem:[%s756_s14] ss:$0 sm:$0xff] }
 0x562   : > { %1996 = vmatmul.mubr.msk.bf16.vlgmr.msra.gmra.mrb[12].mxu0 %vm885_vm3, %v1125_v39 }
 0x563   : > { %v1403_v45 = vsel %vm885_vm3, %v1121_v42, 0.0  ;;  %2006 = vmatpush3.bf16.msra.mxu0 %v1279_v43  ;;  %v1126_v46 = vpack.c.bf16 %v1121_v42, %v1121_v42  ;;  %2007 = vmatprep.mubr.msk.bf16.mxu0 %vm2249_vm2, %v2248_v11 }
 0x564   : > { %v2147_v47 = vpop.eup %2146  ;;  %2019 = vmatprep.subr.bf16.mxu0 %v2248_v11  ;;  %v1404_v50 = vadd.f32 %v1403_v45, %v1402_v48  ;;  %v2129_v45 = vld [vmem:[%s2470_s27 + $0x18] sm:$0xff]  }
 0x565   : > { %v1123_v49 = vmul.f32 %v2147_v47, %v2139_v23  ;;  %2002 = vmatmul.mubr.msk.bf16.vlgmr.msra.gmra.mrb[12].mxu1 %vm885_vm3, %v1126_v46  ;;  %v1903_v46 = vld [vmem:[%s2805_s17] ss:$0 sm:$0xff] }
 0x566   : > { %2015 = vmatprep.mubr.msk.bf16.mxu1 %vm2249_vm2, %v2248_v11  ;;  %2012 = vmatpush3.bf16.msra.mxu1 %v2122_v59 }
 0x567   : > { %v1405_v51 = vsel %vm885_vm3, %v1123_v49, 0.0  ;;  %v1127_v52 = vpack.c.bf16 %v1123_v49, %v1123_v49  ;;  %2013 = vmatprep.subr.bf16.mxu1 %v2248_v11 }
 0x568   : > { %v1406_v53 = vadd.f32 %v1405_v51, %v1404_v50 }
 0x56a   : > { %v1407_v54 = vmul.f32 0.25, %v1406_v53  ;;  %2008 = vmatmul.mubr.msk.bf16.vlgmr.msra.gmra.mrb[16].mxu0 %vm885_vm3, %v1127_v52  ;;  %2014 = vmatpush3.bf16.msra.mxu1 %v2123_v60 }
 0x56b   : > { %2023 = vmatprep.mubr.msk.bf16.mxu0 %vm2249_vm2, %v2248_v11  ;;  %2027 = vmatprep.subr.bf16.mxu1 %v2248_v11 }
 0x56c   : > { %1592 = vst.msk [vmem:[%s708_s8] sm:$0xff] %vm885_vm3, %v1407_v54  ;;  %2020 = vmatpush3.bf16.msra.mxu0 %v2124_v31 }
 0x56d   : > { %2021 = vmatprep.subr.bf16.mxu0 %v2248_v11 }
 0x570   : > { %2022 = vmatpush3.bf16.msra.mxu0 %v2125_v34 }
 0x5cf   : > { %v1171_v55 = vpop.f32.mrb[8].mxu1 }
 0x5d0   : > { %v1991_v56 = vpop.f32.mrb[9].mxu1 }
 0x5d1   : > { %v1174_v57 = vpop.f32.mrb[10].mxu1 }
 0x5d2   : > { %v1992_v58 = vpop.f32.mrb[11].mxu1 }
 0x635   : > { %v1219_v61 = vpop.f32.mrb[12].mxu0 }
 0x636   : > { %1322 = vrot.lane.b32.xlu0 %v1219_v61, %s2255_s16  ;;  %v1997_v62 = vpop.f32.mrb[13].mxu0 }
 0x637   : > { %v1222_v63 = vpop.f32.mrb[14].mxu0 }
 0x638   : > { %v1998_v0 = vpop.f32.mrb[15].mxu0  ;;  %v1267_v1 = vpop.f32.mrb[12].mxu1 }
 0x639   : > { %1326 = vrot.lane.b32.xlu1 %v1267_v1, %s2256_s20  ;;  %v2003_v2 = vpop.f32.mrb[13].mxu1 }
 0x63a   : > { %v1270_v4 = vpop.f32.mrb[14].mxu1 }
 0x63b   : > { %v2004_v5 = vpop.f32.mrb[15].mxu1 }
 0x63d   : > { %v1315_v6 = vpop.f32.mrb[16].mxu0 }
 0x63e   : > { %1330 = vrot.lane.b32.xlu0 %v1315_v6, %s2257_s1  ;;  %v2009_v7 = vpop.f32.mrb[17].mxu0 }
 0x63f   : > { %v1318_v8 = vpop.f32.mrb[18].mxu0 }
 0x640   : > { %v2010_v9 = vpop.f32.mrb[19].mxu0 }
 0x6a8   : > { %v1323_v10 = vpop.permute.xlu0 %1322 }
 0x6a9   : > { %v1333_v13 = vsel %vm885_vm3, %v1171_v55, %v1323_v10 }
 0x6ab   : > { %v1327_v12 = vpop.permute.xlu1 %1326 }
 0x6ac   : > { %v1335_v14 = vsel %vm1334_vm5, %v1333_v13, %v1327_v12 }
 0x6b0   : > { %v1331_v15 = vpop.permute.xlu0 %1330 }
 0x6b1   : > { %v1337_v16 = vsel %vm1336_vm6, %v1335_v14, %v1331_v15 }
 0x6b2   : > { %v1338_v17 = vpack.c.bf16 %v1337_v16, %v1337_v16 }
 0x6b4   : > { %2016 = vmatmul.mubr.msk.bf16.vlgmr.msra.gmra.mrb[16].mxu1 %vm774_vm1, %v1338_v17 }
 0x6b5   : > { %2035 = vmatprep.mubr.msk.bf16.mxu1 %vm2249_vm2, %v2248_v11 }
 0x787   : > { %v1394_v19 = vpop.f32.mrb[16].mxu1 }
 0x788   : > { %v1395_v20 = vadd.f32 %v1897_v18, %v1394_v19  ;;  %v2017_v21 = vpop.f32.mrb[17].mxu1 }
 0x789   : > { %v1397_v22 = vpop.f32.mrb[18].mxu1 }
 0x78a   : > { %v1408_v23 = vadd.f32 %v1395_v20, %v2498_v3  ;;  %v2018_v24 = vpop.f32.mrb[19].mxu1  ;;  %v2126_v3 = vld [vmem:[%s2470_s27] sm:$0xff]   ;;  %s2808_s27 = sld [smem:[#allocation9_spill]] }
 0x78b   : > { %2028 = vmatpush3.bf16.msra.mxu1 %v2126_v3 }
 0x78c   : > { %v1411_v25 = vsel %vm774_vm1, %v1408_v23, 0.0  ;;  %2029 = vmatprep.subr.bf16.mxu1 %v2248_v11 }
 0x78d   : > { %1412 = vadd.xlane.f32.xlu1 %v1411_v25 }
 0x78f   : > { %2030 = vmatpush3.bf16.msra.mxu1 %v2127_v32 }
 0x790   : > { %2031 = vmatprep.subr.bf16.mxu1 %v2248_v11  ;;  %p1913_p1 = scmp.ne.s32.totalorder %s2808_s27, 1 }
 0x791   : > { %s2809_s30 = sld [smem:[#allocation28_spill]] (!%p1913_p1)  ;;  %s2810_s1 = sld [smem:[#allocation29_spill]] (!%p1913_p1) }
 0x793   : > { %2032 = vmatpush3.bf16.msra.mxu1 %v2128_v44 }
 0x794   : > { %2033 = vmatprep.subr.bf16.mxu1 %v2248_v11  ;;  %v1907_v11 = vld [vmem:[%s2807_s22] ss:$0 sm:$0xff] }
 0x797   : > { %2034 = vmatpush3.bf16.msra.mxu1 %v2129_v45  ;;  %v1914_v7 = vld [vmem:[%s2809_s30] ss:$0 sm:$0xff] (!%p1913_p1) }
 0x798   : > { %v1915_v9 = vld [vmem:[%s2810_s1] ss:$0 sm:$0xff] (!%p1913_p1) }
 0x81a   : > { %v1413_v26 = vpop.xlane.xlu1 %1412 }
 0x81b   : > { %v1414_v27 = vmul.f32 0.03125, %v1413_v26 }
 0x81d   : > { %v1415_v28 = vsub.f32 %v1408_v23, %v1414_v27 }
 0x81f   : > { %v1416_v29 = vmul.f32 %v1415_v28, %v1415_v28 }
 0x821   : > { %v1417_v33 = vsel %vm774_vm1, %v1416_v29, 0.0 }
 0x822   : > { %1418 = vadd.xlane.f32.xlu0 %v1417_v33 }
 0x8af   : > { %v1419_v30 = vpop.xlane.xlu0 %1418 }
 0x8b0   : > { %v1420_v35 = vmul.f32 0.03125, %v1419_v30 }
 0x8b2   : > { %v1421_v36 = vadd.f32 1e-06, %v1420_v35 }
 0x8b4   : > { %2148 = vrsqrt.f32 %v1421_v36 }
 0x8be   : > { %v2149_v37 = vpop.eup %2148 }
 0x8bf   : > { %v1423_v39 = vmul.f32 %v2149_v37, %v1415_v28 }
 0x8c1   : > { %v1430_v41 = vmul.f32 %v1901_v38, %v1423_v39 }
 0x8c3   : > { %v1437_v42 = vadd.f32 %v1902_v40, %v1430_v41 }
 0x8c5   : > { %v1443_v43 = vpack.c.bf16 %v1437_v42, %v1437_v42 }
 0x8c7   : > { %2024 = vmatmul.mubr.msk.bf16.vlgmr.msra.gmra.mrb[20].mxu0 %vm774_vm1, %v1443_v43 }
 0x99a   : > { %v1499_v47 = vpop.f32.mrb[20].mxu0 }
 0x99b   : > { %v1500_v48 = vadd.f32 %v1903_v46, %v1499_v47  ;;  %v2025_v49 = vpop.f32.mrb[21].mxu0 }
 0x99c   : > { %v1502_v50 = vpop.f32.mrb[22].mxu0 }
 0x99d   : > { %v1505_v51 = vmax.f32 %v1500_v48, 0.0  ;;  %v2026_v52 = vpop.f32.mrb[23].mxu0 }
 0x99f   : > { %v1515_v53 = vpack.c.bf16 %v1505_v51, %v1505_v51 }
 0x9a1   : > { %2036 = vmatmul.mubr.msk.bf16.vlgmr.msra.gmra.mrb[20].mxu1 %vm1546_vm7, %v1515_v53 }
 0xa73   : > { %1596 = sbr.rel (%p1913_p1) target bundleno = 2995 (0xbb3), region = 92 }
 0xa74   : > { %v1584_v54 = vpop.f32.mrb[20].mxu1 }
 0xa75   : > { %v1585_v55 = vadd.f32 %v1907_v11, %v1584_v54  ;;  %v2037_v56 = vpop.f32.mrb[21].mxu1 }
 0xa76   : > { %v1587_v57 = vpop.f32.mrb[22].mxu1 }
 0xa77   : > { %v1590_v58 = vadd.f32 %v1585_v55, %v1408_v23  ;;  %v2038_v59 = vpop.f32.mrb[23].mxu1 }
 0xa79   : > { %1591 = vst.msk [vmem:[#allocation2] sm:$0xff] %vm774_vm1, %v1590_v58  ;;  %v1599_v60 = vsel (!%p1913_p1), %vm774_vm1, %v1590_v58, 0.0 }
 0xa7a   : > { %1600 = vadd.xlane.f32.xlu0 %v1599_v60 }
 0xb07   : > { %v1601_v61 = vpop.xlane.xlu0 %1600 }
 0xb08   : > { %v1602_v62 = vmul.f32 0.03125, %v1601_v61 }
 0xb0a   : > { %v1603_v63 = vsub.f32 %v1590_v58, %v1602_v62 }
 0xb0c   : > { %v1604_v0 = vmul.f32 %v1603_v63, %v1603_v63 }
 0xb0e   : > { %v1605_v1 = vsel %vm774_vm1, %v1604_v0, 0.0 }
 0xb0f   : > { %1606 = vadd.xlane.f32.xlu0 %v1605_v1 }
 0xb9c   : > { %v1607_v2 = vpop.xlane.xlu0 %1606 }
 0xb9d   : > { %v1608_v4 = vmul.f32 0.03125, %v1607_v2 }
 0xb9f   : > { %v1609_v5 = vadd.f32 1e-06, %v1608_v4 }
 0xba1   : > { %2150 = vrsqrt.f32 %v1609_v5 }
 0xbab   : > { %v2151_v6 = vpop.eup %2150 }
 0xbac   : > { %v1611_v8 = vmul.f32 %v2151_v6, %v1603_v63 }
 0xbae   : > { %v1618_v10 = vmul.f32 %v1914_v7, %v1611_v8 }
 0xbb0   : > { %v1625_v12 = vadd.f32 %v1915_v9, %v1618_v10 }
 0xbb2   : > { %1626 = vst.msk [vmem:[%s2491_s28] sm:$0xff] %vm774_vm1, %v1625_v12 }
 0xbb3 PF: > { %s2811_s18 = sld [smem:[#allocation9_spill]]  ;;  %s2812_s6 = sld [smem:[#allocation10_spill]] }
 0xbb4   : > { %s2813_s9 = sld [smem:[#allocation7_spill]]  ;;  %s1650_s15 = sshll.u32 %s708_s8, 4  ;;  %s2677_s15 = int_to_ptr.vmem [resolvable:$true] %s1650_s15 }
 0xbb5   : > { %s2815_s17 = sld [smem:[#allocation31_spill]]  ;;  %s2152_s25 = scalar_lea.vmem %s2677_s15, 128 }
 0xbb6   : > { %p2153_p2 = scmp.ne.s32.totalorder %s2677_s15, %s2152_s25  ;;  %s2258_s22 = smov [#allocation3]  }
 0xbb7   : > { %s2156_s29 = sshll.u32 %s2258_s22, 4  ;;  %s2157_s29 = int_to_ptr.vmem [resolvable:$false] %s2156_s29 }
 0xbb8   : > { %p2154_p4 = pnand %p2153_p2, %p2400_p3  ;;  %s2158_s8 = scalar_lea.vmem %s2157_s29, 256 }
 0xbb9   : > { %s1917_s19 = sshll.u32 %s2811_s18, 1  ;;  %p2159_p6 = scmp.lt.s32.totalorder %s2677_s15, %s2157_s29 }
 0xbba   : > { %s1646_s13 = sadd.s32 %s2812_s6, %s1917_s19  ;;  %s2816_s14 = sand.u32 1, %s2813_s9  }
 0xbbb   : > { %s1918_s26 = sshll.u32 %s1646_s13, 7  ;;  %s1632_s21 = scalar_lea.sflag [#allocation4], %s2816_s14 }
 0xbbc   : > { %s1648_s28 = scalar_lea.hbm %s2815_s17, %s1918_s26  ;;  %p2155_p5 = pneg %p2154_p4 }
 0xbbd   : > { %p2160_p7 = scmp.lt.s32.totalorder %s2158_s8, %s2152_s25 }
 0xbbf   : > { %p2161_p9 = por %p2160_p7, %p2159_p6 }
 0xbc1   : > { %p2162_p10 = pnand %p2161_p9, %p2155_p5 }
 0xbc3   : > { %2165 = shalt.err (!%p2162_p10)
}
 0xbc4   : > { %s2166_s27 = scalar_lea.hbm %s1648_s28, 128  ;;  %s2170_s30 = scalar_lea.hbm %s2815_s17, 512 }
 0xbc5   : > { %p2167_p11 = scmp.ne.s32.totalorder %s1648_s28, %s2166_s27  ;;  %p2171_p0 = scmp.lt.u32.totalorder %s1648_s28, %s2815_s17 }
 0xbc6   : > { %p2172_p1 = scmp.lt.u32.totalorder %s2170_s30, %s2166_s27  ;;  %p2174_p4 = scmp.lt.u32.totalorder %s2166_s27, %s1648_s28 }
 0xbc7   : > { %p2168_p12 = pnand %p2167_p11, %p2400_p3 }
 0xbc8   : > { %p2173_p2 = por %p2172_p1, %p2171_p0 }
 0xbc9   : > { %p2169_p13 = pneg %p2168_p12 }
 0xbca   : > { %p2175_p6 = por %p2174_p4, %p2173_p2 }
 0xbcc   : > { %p2176_p5 = pnand %p2175_p6, %p2169_p13 }
 0xbce   : > { %2179 = shalt.err (!%p2176_p5)
}
 0xbcf   : > { %2039 = dma.vmem_to_hbm [thread:$0]  (%p2400_p3), %s2677_s15, 128, %s1648_s28, %s1632_s21  }
 0xbd0 PF: > { %s2817_s1 = sld [smem:[#allocation13_spill]]  ;;  %s2818_s18 = sld [smem:[#allocation6_spill]] }
 0xbd6   : > { %p2045_p7 = scmp.ge.s32.totalorder %s2817_s1, 2  ;;  %s1669_s9 = sand.u32 1, %s2818_s18  }
 0xbd7   : > { %s1670_s19 = scalar_lea.sflag [#allocation4], %s1669_s9 }
 0xbd8   : > { %p2042_p9 = pnand %p2045_p7, %p2409_p8 }
 0xbda   : > { %2213 = dma.done.wait (!%p2042_p9), %s1670_s19, 128  }
 0xbdb   : > { %2215 = vsyncadd (!%p2042_p9), %s1670_s19, 4294967168  ;;  %s31_s30 = sadd.s32 1, %s2817_s1   ;;  %s2820_s24 = sld [smem:[#allocation7_spill]] }
 0xbdc   : > { %p28_p10 = scmp.ge.s32.totalorder %s31_s30, 6   ;;  %s2821_s25 = sld [smem:[#allocation8_spill]] }
 0xbdd   : > { %s2822_s26 = sld [smem:[#allocation18_spill]]  ;;  %s2823_s27 = sld [smem:[#allocation11_spill]] }
 0xbde   : > { %s2824_s28 = sld [smem:[#allocation12_spill]]  ;;  %s2825_s29 = sld [smem:[#allocation14_spill]] }
 0xbdf   : > { %s2826_s0 = sld [smem:[#allocation16_spill]]  ;;  %30 = sbr.rel (!%p28_p10) target bundleno = 18 (0x12), region = 175 }
 0xbe6   :  { %1675 = vsyncpa [#allocation4], 1 }
 0xbe7   :  { %1677 = vsyncpa [#allocation4 + $0x1], 1 }

// kernel: transformer_base_forward.3
= control target key start
LH: loop header
LB: loop body
LE: loop exit
PB: predicated region body
PF: predicated region fallthrough
CT: control target
= control target key end

     0   :  { %s4675_s0 = inlined_call_operand.vmem [shape: f32[2,8,32], index: 0, kind: input, shape index: {}]   ;;  %s4676_s1 = inlined_call_operand.vmem [shape: f32[2,8,32], index: 1, kind: input, shape index: {}]   ;;  %s4677_s2 = inlined_call_operand.vmem [shape: f32[8,32], index: 2, kind: input, shape index: {}]   ;;  %s4678_s3 = inlined_call_operand.vmem [shape: bf16[2,32,96], index: 3, kind: input, shape index: {}]   ;;  %s4679_s4 = inlined_call_operand.vmem [shape: f32[2,1,96], index: 4, kind: input, shape index: {}]   ;;  %s4680_s5 = inlined_call_operand.vmem [shape: bf16[2,32,32], index: 5, kind: input, shape index: {}]   ;;  %s4681_s6 = inlined_call_operand.vmem [shape: f32[2,1,32], index: 6, kind: input, shape index: {}]   ;;  %s4682_s7 = inlined_call_operand.vmem [shape: bf16[2,32,32], index: 7, kind: input, shape index: {}]   ;;  %s4683_s8 = inlined_call_operand.vmem [shape: f32[2,1,32], index: 8, kind: input, shape index: {}]   ;;  %s4684_s9 = inlined_call_operand.vmem [shape: bf16[2,32,64], index: 9, kind: input, shape index: {}]   ;;  %s4685_s10 = inlined_call_operand.vmem [shape: f32[2,1,64], index: 10, kind: input, shape index: {}]   ;;  %s4686_s11 = inlined_call_operand.vmem [shape: bf16[2,32,32], index: 11, kind: input, shape index: {}]   ;;  %s4687_s12 = inlined_call_operand.vmem [shape: f32[2,1,32], index: 12, kind: input, shape index: {}]   ;;  %s4688_s13 = inlined_call_operand.vmem [shape: bf16[2,32,64], index: 13, kind: input, shape index: {}]   ;;  %s4689_s14 = inlined_call_operand.vmem [shape: f32[2,1,64], index: 14, kind: input, shape index: {}]   ;;  %s4690_s15 = inlined_call_operand.vmem [shape: bf16[2,64,32], index: 15, kind: input, shape index: {}]   ;;  %s4691_s16 = inlined_call_operand.vmem [shape: f32[2,1,32], index: 16, kind: input, shape index: {}]   ;;  %s4692_s17 = inlined_call_operand.vmem [shape: f32[2,1,32], index: 17, kind: input, shape index: {}]   ;;  %s4693_s18 = inlined_call_operand.vmem [shape: f32[2,1,32], index: 18, kind: input, shape index: {}]   ;;  %s4694_s19 = inlined_call_operand.vmem [shape: f32[2,1,32], index: 19, kind: input, shape index: {}]   ;;  %s4695_s20 = inlined_call_operand.vmem [shape: f32[2,1,32], index: 20, kind: input, shape index: {}]   ;;  %s4696_s21 = inlined_call_operand.vmem [shape: f32[2,1,32], index: 21, kind: input, shape index: {}]   ;;  %s4697_s22 = inlined_call_operand.vmem [shape: f32[2,1,32], index: 22, kind: input, shape index: {}]   ;;  %s4698_s23 = inlined_call_operand.vmem [shape: f32[1,32], index: 23, kind: input, shape index: {}]   ;;  %s4699_s24 = inlined_call_operand.vmem [shape: f32[1,32], index: 24, kind: input, shape index: {}]   ;;  %s4700_s25 = inlined_call_operand.hbm [shape: f32[2,8,32], index: 25, kind: output, shape index: {0}]   ;;  %s4701_s26 = inlined_call_operand.hbm [shape: f32[2,2,8,8], index: 26, kind: output, shape index: {1}]   ;;  %s4702_s27 = inlined_call_operand.hbm [shape: f32[2,2,8,8], index: 27, kind: output, shape index: {2}]  }
   0x1   :  { %4734 = sst [smem:[#allocation33_spill]] %s4675_s0 }
   0x2   :  { %4735 = sst [smem:[#allocation34_spill]] %s4676_s1 }
   0x3   :  { %4736 = sst [smem:[#allocation35_spill]] %s4677_s2 }
   0x4   :  { %4737 = sst [smem:[#allocation36_spill]] %s4678_s3 }
   0x5   :  { %4738 = sst [smem:[#allocation37_spill]] %s4679_s4 }
   0x6   :  { %4739 = sst [smem:[#allocation38_spill]] %s4680_s5 }
   0x7   :  { %4740 = sst [smem:[#allocation39_spill]] %s4681_s6 }
   0x8   :  { %4741 = sst [smem:[#allocation40_spill]] %s4682_s7 }
   0x9   :  { %4742 = sst [smem:[#allocation41_spill]] %s4683_s8 }
   0xa   :  { %4743 = sst [smem:[#allocation42_spill]] %s4684_s9 }
   0xb   :  { %4744 = sst [smem:[#allocation43_spill]] %s4685_s10 }
   0xc   :  { %4745 = sst [smem:[#allocation44_spill]] %s4686_s11 }
   0xd   :  { %4746 = sst [smem:[#allocation45_spill]] %s4688_s13 }
   0xe   :  { %4747 = sst [smem:[#allocation46_spill]] %s4689_s14 }
   0xf   :  { %4748 = sst [smem:[#allocation47_spill]] %s4690_s15 }
  0x10   :  { %4749 = sst [smem:[#allocation48_spill]] %s4691_s16 }
  0x11   :  { %4750 = sst [smem:[#allocation49_spill]] %s4696_s21 }
  0x12   :  { %4751 = sst [smem:[#allocation50_spill]] %s4697_s22 }
  0x13   :  { %4752 = sst [smem:[#allocation51_spill]] %s4698_s23 }
  0x14   :  { %4753 = sst [smem:[#allocation52_spill]] %s4699_s24 }
  0x15   :  { %4754 = sst [smem:[#allocation53_spill]] %s4700_s25 }
  0x16   :  { %4755 = sst [smem:[#allocation54_spill]] %s4701_s26 }
  0x17   :  { %4756 = sst [smem:[#allocation55_spill]] %s4702_s27 }
  0x18   :  { %33 = vsyncpa [#allocation4], 0 }
  0x19   :  { %35 = vsyncpa [#allocation4 + $0x1], 0 }
  0x1a   :  { %36 = vsyncpa [#allocation6], 0 }
  0x1b   :  { %38 = vsyncpa [#allocation6 + $0x1], 0  ;;  %s3967_s7 = smov 0   ;;  %s3969_s4 = smov 0  }
  0x1c   :  { %s3971_s8 = smov 0   ;;  %s3973_s30 = smov 0  }
  0x1d   :  { %4757 = sst [smem:[#allocation10_spill]] %s3971_s8  ;;  %s3975_s9 = smov 0  }
  0x1e   :  { %s3977_s5 = smov 0   ;;  %s3979_s28 = smov 0  }
  0x1f   :  { %s3981_s0 = smov 0   ;;  %s3983_s10 = smov 0  }
  0x20   :  { %s3985_s29 = smov 0   ;;  %s3987_s1 = smov 0  }
  0x21 LB: > { %s4759_s8 = sld [smem:[#allocation10_spill]]  ;;  %4762 = sst [smem:[#allocation12_spill]] %s3784_s30  ;;  %s3812_s1 = sphi %s3987_s1, %s44_s1   ;;  %s3808_s29 = sphi %s3985_s29, %s4860_s29   ;;  %s3804_s10 = sphi %s3983_s10, %s4859_s10   ;;  %s3800_s0 = sphi %s3981_s0, %s4858_s0   ;;  %s3796_s28 = sphi %s3979_s28, %s4857_s28   ;;  %s3792_s5 = sphi %s3977_s5, %s4856_s5   ;;  %s3788_s9 = sphi %s3975_s9, %s4855_s9   ;;  %s3784_s30 = sphi %s3973_s30, %s4854_s30   ;;  %s3776_s4 = sphi %s3969_s4, %s4852_s4   ;;  %s3772_s7 = sphi %s3967_s7, %s4851_s7  }
  0x22   : > { %4760 = sst [smem:[#allocation10_spill]] %s3776_s4  ;;  %s4706_s6 = sadd.s32 4294967295, %s3812_s1  }
  0x23   : > { %4763 = sst [smem:[#allocation13_spill]] %s3788_s9  ;;  %s53_s2 = sadd.s32 1, %s3804_s10 }
  0x24   : > { %4764 = sst [smem:[#allocation14_spill]] %s3792_s5  ;;  %s56_s3 = sadd.s32 1, %s3808_s29 }
  0x25   : > { %4765 = sst [smem:[#allocation15_spill]] %s3800_s0  ;;  %p54_p0 = scmp.ge.s32.totalorder %s53_s2, 2 }
  0x26   : > { %4766 = sst [smem:[#allocation16_spill]] %s3804_s10  ;;  %s698_s27 = sadd.s32 1, %s3792_s5 }
  0x27   : > { %4761 = sst [smem:[#allocation11_spill]] %s4759_s8  ;;  %p708_p1 = scmp.ne.s32.totalorder %s3792_s5, %s3788_s9 }
  0x28   : > { %4767 = sst [smem:[#allocation17_spill]] %s3808_s29  ;;  %p4031_p2 = scmp.eq.s32.totalorder %s4706_s6, 3 }
  0x29   : > { %4768 = sst [smem:[#allocation18_spill]] %s3812_s1  ;;  %s4863_s2 = smov (%p54_p0, %s53_s2), 0 }
  0x2a   : > { %4770 = sst [smem:[#allocation19_spill]] %s4863_s2  ;;  %s4865_s3 = smov (!%p54_p0, %s56_s3), %s3808_s29 }
  0x2b   : > { %p4040_p3 = por %p4031_p2, %p708_p1  ;;  %p714_p4 = scmp.ne.s32.totalorder %s3788_s9, %s3784_s30 }
  0x2c   : > { %p58_p5 = scmp.ge.s32.totalorder %s4865_s3, 2  ;;  %s4773_s26 = sadd.s32 4294967294, %s3812_s1  }
  0x2d   : > { %s4771_s11 = scalar_select %p4040_p3, 1, 0 }
  0x2e   : > { %p4048_p6 = scmp.eq.s32.totalorder %s4773_s26, 3  ;;  %s721_s24 = ssub.s32 %s3804_s10, %s4863_s2 }
  0x2f   : > { %4772 = sst [smem:[#allocation20_spill]] %s4771_s11  ;;  %s726_s23 = sadd.s32 1, %s4759_s8 }
  0x30   : > { %s4867_s3 = smov (%p58_p5, %s4865_s3), 0  ;;  %p4059_p7 = por %p4048_p6, %p714_p4 }
  0x31   : > { %4775 = sst [smem:[#allocation21_spill]] %s4867_s3  ;;  %p736_p8 = scmp.ne.s32.totalorder %s4759_s8, %s3776_s4 }
  0x32   : > { %s4776_s11 = scalar_select %p4059_p7, 1, 0 }
  0x33   : > { %s695_s30 = ssub.s32 %s3808_s29, %s4867_s3  ;;  %p742_p9 = scmp.ne.s32.totalorder %s3776_s4, %s3772_s7 }
  0x34   : > { %4777 = sst [smem:[#allocation22_spill]] %s4776_s11  ;;  %p696_p10 = scmp.eq.s32.totalorder %s695_s30, 0 }
  0x35   : > { %s723_s26 = sor.u32 %s721_s24, %s695_s30  ;;  %p4071_p12 = por %p736_p8, %p4031_p2 }
  0x36   : > { %p724_p11 = scmp.eq.s32.totalorder %s723_s26, 0  ;;  %p4083_p13 = por %p742_p9, %p4048_p6 }
  0x37   : > { %s4778_s22 = scalar_select %p4071_p12, 1, 0 }
  0x38   : > { %s4076_s2 = scalar_select %p696_p10, %s3792_s5, %s698_s27  }
  0x39   : > { %4779 = sst [smem:[#allocation23_spill]] %s4778_s22  ;;  %p3159_p0 = scmp.ge.s32.totalorder %s3812_s1, 1 }
  0x3a   : > { %4780 = sst [smem:[#allocation24_spill]] %s4076_s2  ;;  %p946_p1 = scmp.lt.s32.totalorder %s3812_s1, 5 }
  0x3b   : > { %s4079_s10 = scalar_select %p724_p11, %s4759_s8, %s726_s23  }
  0x3c   : > { %s4782_s21 = scalar_select %p4083_p13, 1, 0 }
  0x3d   : > { %4781 = sst [smem:[#allocation25_spill]] %s4079_s10  ;;  %p947_p4 = pnand %p3159_p0, %p946_p1 }
  0x3e   : > { %4783 = sst [smem:[#allocation26_spill]] %s4782_s21 }
  0x3f   : > { %950 = sbr.rel (%p947_p4) target bundleno = 4836 (0x12e4), region = 120 }
  0x46   : > { %s4714_s24 = sand.u32 1, %s3788_s9   ;;  %s1095_s25 = sand.u32 1, %s3776_s4  }
  0x47   : > { %s4093_s23 = sshll.u32 %s4714_s24, 3  ;;  %s4095_s27 = sshll.u32 %s1095_s25, 3 }
  0x48   : > { %p1105_p2 = scmp.lt.s32.totalorder %s3800_s0, 1  ;;  %p1113_p5 = scmp.lt.s32.totalorder %s3796_s28, 1 }
  0x49   : > { %s4784_s29 = sld [smem:[#allocation33_spill]]  ;;  %s4785_s5 = sld [smem:[#allocation34_spill]] }
  0x4a   : > { %s1106_s7 = scalar_select %p1105_p2, %s3800_s0, 1 }
  0x4b   : > { %s4101_s30 = scalar_select %p1113_p5, %s3796_s28, 1 }
  0x4c   : > { %s3163_s6 = sshll.u32 %s1106_s7, 3  ;;  %s4788_s7 = sld [smem:[#allocation36_spill]] }
  0x4d   : > { %s3245_s8 = sshll.u32 %s4101_s30, 4  ;;  %s4790_s26 = sld [smem:[#allocation38_spill]] }
  0x4e   : > { %s4793_s11 = sld [smem:[#allocation40_spill]]  ;;  %s4800_s13 = sld [smem:[#allocation45_spill]] }
  0x4f   : > { %s1108_s24 = scalar_lea.vmem %s4784_s29, %s3163_s6  ;;  %s4109_s10 = scalar_lea.vmem %s4785_s5, %s3163_s6 }
  0x50   : > { %4786 = sst [smem:[#allocation27_spill]] %s4109_s10  ;;  %s3251_s6 = sshll.u32 %s4101_s30, 5 }
  0x51   : > { %s4802_s15 = sld [smem:[#allocation47_spill]]  ;;  %s1177_s5 = scalar_lea.vmem %s4694_s19, %s4101_s30 }
  0x52   : > { %s4119_s1 = scalar_lea.vmem %s4788_s7, %s3245_s8  ;;  %s4805_s4 = sld [smem:[#allocation49_spill]] }
  0x53   : > { %4789 = sst [smem:[#allocation28_spill]] %s4119_s1  ;;  %s4124_s2 = scalar_lea.vmem %s4790_s26, %s3245_s8 }
  0x54   : > { %4791 = sst [smem:[#allocation29_spill]] %s4124_s2  ;;  %s4133_s9 = scalar_lea.vmem %s4793_s11, %s3245_s8 }
  0x55   : > { %4794 = sst [smem:[#allocation30_spill]] %s4133_s9  ;;  %s4796_s26 = sld [smem:[#allocation42_spill]] }
  0x56   : > { %s4799_s11 = sld [smem:[#allocation44_spill]]  ;;  %s4160_s29 = scalar_lea.vmem %s4800_s13, %s3245_s8 }
  0x57   : > { %s4170_s21 = scalar_lea.vmem %s4802_s15, %s3251_s6  ;;  %s1174_s13 = scalar_lea.vmem %s4693_s18, %s4101_s30 }
  0x58   : > { %4803 = sst [smem:[#allocation32_spill]] %s4170_s21  ;;  %s1180_s6 = scalar_lea.vmem %s4695_s20, %s4101_s30 }
  0x59   : > { %s4806_s7 = sld [smem:[#allocation50_spill]]  ;;  %s1090_s1 = scalar_lea.vmem [#allocation3], %s4093_s23 }
  0x5a   : > { %s4732_s21 = scalar_lea.vmem [#allocation5], %s4095_s27  ;;  %p3179_p6 = scmp.ne.s32.totalorder %s3796_s28, 0 }
  0x5b   : > { %s4142_s2 = scalar_lea.vmem %s4796_s26, %s3245_s8  ;;  %v1192_v0 = vld [vmem:[%s1108_s24] sm:$0xff] (!%p3179_p6)  ;;  %s4807_s26 = sld [smem:[#allocation35_spill]] (!%p3179_p6)  ;;  %vm1195_vm0 = vcmask (!%p3179_p6), 261120  }
  0x5c   : > { %4797 = sst [smem:[#allocation31_spill]] %s4142_s2  ;;  %s4151_s9 = scalar_lea.vmem %s4799_s11, %s3245_s8 }
  0x5d   : > { %s1183_s11 = scalar_lea.vmem %s4805_s4, %s4101_s30  ;;  %s4733_s8 = scalar_lea.vmem [#allocation7], %s4095_s27 }
  0x5e   : > { %1191 = sbr.rel (%p3179_p6) target bundleno = 101 (0x65), region = 124 }
  0x5f   : > { %s1186_s0 = scalar_lea.vmem %s4806_s7, %s4101_s30 }
  0x61   : > { %v1193_v1 = vld [vmem:[%s4807_s26] sm:$0xff] (!%p3179_p6) }
  0x62   : > { %v1194_v2 = vadd.f32 (!%p3179_p6), %v1193_v1, %v1192_v0 }
  0x64   : > { %1196 = vst.msk [vmem:[#allocation2] sm:$0xff] (!%p3179_p6), %vm1195_vm0, %v1194_v2 }
  0x65 PF: > { %s4808_s14 = sld [smem:[#allocation28_spill]]  ;;  %vm1201_vm1 = vcmask 261120   ;;  %v3814_v11 = vmov 0.0   ;;  %vm3815_vm2 = vmmov 0   ;;  %s4809_s24 = scalar_lea.vmem %s4692_s17, %s4101_s30  ;;  %v3181_v19 = vld [vmem:[%s1174_s13] ss:$0 sm:$0xff] }
  0x66   : > { %3307 = vmatprep.subr.bf16.mxu1 %v3814_v11  ;;  %3311 = vmatprep.mubr.msk.bf16.mxu1 %vm3815_vm2, %v3814_v11  ;;  %v3180_v17 = vld [vmem:[%s4809_s24] ss:$0 sm:$0xff]  ;;  %s4810_s7 = sld [smem:[#allocation37_spill]]  ;;  %s3816_s13 = smov 104   ;;  %vm1312_vm3 = vcmask 64512   ;;  %vm1560_vm4 = vcmask 1043456  }
  0x67   : > { %3321 = vmatprep.subr.bf16.mxu0 %v3814_v11  ;;  %3323 = vmatprep.mubr.msk.bf16.mxu0 %vm3815_vm2, %v3814_v11  ;;  %s3817_s2 = smov 120   ;;  %s3818_s26 = smov 112   ;;  %vm1761_vm5 = vcmask 130048   ;;  %vm1763_vm6 = vcmask 195584   ;;  %vm2671_vm7 = vcmask 523264  }
  0x68   : > { %s3820_s15 = smov 64   ;;  %s4812_s16 = sld [smem:[#allocation29_spill]] }
  0x69   : > { %s3821_s24 = smov 8   ;;  %s3822_s22 = smov 16  }
  0x6a   : > { %s3823_s10 = smov 24   ;;  %s4820_s4 = sld [smem:[#allocation41_spill]] }
  0x6b   : > { %v4207_v3 = vld [vmem:[#allocation2] sm:$0xff]  ;;  %v3579_v12 = vld [vmem:[%s4808_s14 + $0x8] sm:$0xff]   ;;  %p3232_p8 = scmp.ne.s32.totalorder %s3796_s28, 1 }
  0x6c   : > { %v1202_v4 = vsel %vm1201_vm1, %v4207_v3, 0.0  ;;  %v3578_v10 = vld [vmem:[%s4808_s14] sm:$0xff]   ;;  %s4811_s3 = scalar_lea.vmem %s4810_s7, %s4101_s30  ;;  %s3819_s14 = smov 96  }
  0x6d   : > { %1203 = vadd.xlane.f32.xlu0 %v1202_v4  ;;  %3308 = vmatpush3.bf16.msra.mxu1 %v3578_v10  ;;  %v3182_v23 = vld [vmem:[%s4811_s3] ss:$0 sm:$0xff]  ;;  %s4813_s7 = sld [smem:[#allocation39_spill]] }
  0x6e   : > { %3309 = vmatprep.subr.bf16.mxu1 %v3814_v11 }
  0x71   : > { %3310 = vmatpush3.bf16.msra.mxu1 %v3579_v12 }
  0x72   : > { %3315 = vmatprep.subr.bf16.mxu1 %v3814_v11 }
  0x73   : > { %s4814_s3 = scalar_lea.vmem %s4813_s7, %s4101_s30  ;;  %s4821_s7 = scalar_lea.vmem %s4820_s4, %s4101_s30 }
  0xfa   : > { %v1204_v5 = vpop.xlane.xlu0 %1203 }
  0xfb   : > { %v1206_v6 = vmul.f32 0.03125, %v1204_v5 }
  0xfd   : > { %v1207_v7 = vsub.f32 %v4207_v3, %v1206_v6 }
  0xff   : > { %v1208_v8 = vmul.f32 %v1207_v7, %v1207_v7 }
 0x101   : > { %v1209_v9 = vsel %vm1201_vm1, %v1208_v8, 0.0 }
 0x102   : > { %1210 = vadd.xlane.f32.xlu0 %v1209_v9 }
 0x18f   : > { %v1211_v13 = vpop.xlane.xlu0 %1210 }
 0x190   : > { %v1212_v14 = vmul.f32 0.03125, %v1211_v13 }
 0x192   : > { %v1213_v15 = vadd.f32 1e-06, %v1212_v14 }
 0x194   : > { %3594 = vrsqrt.f32 %v1213_v15 }
 0x19e   : > { %v3595_v16 = vpop.eup %3594 }
 0x19f   : > { %v1215_v18 = vmul.f32 %v3595_v16, %v1207_v7 }
 0x1a1   : > { %v1222_v20 = vmul.f32 %v3180_v17, %v1215_v18 }
 0x1a3   : > { %v1229_v21 = vadd.f32 %v3181_v19, %v1222_v20 }
 0x1a5   : > { %v1235_v22 = vpack.c.bf16 %v1229_v21, %v1229_v21 }
 0x1a7   : > { %3312 = vmatmul.mubr.msk.bf16.vlgmr.msra.gmra.mrb[0].mxu1 %vm1201_vm1, %v1235_v22 }
 0x1a8   : > { %3317 = vmatprep.mubr.msk.bf16.mxu1 %vm3815_vm2, %v3814_v11 }
 0x27a   : > { %v1291_v24 = vpop.f32.mrb[0].mxu1 }
 0x27b   : > { %v1292_v25 = vadd.f32 %v3182_v23, %v1291_v24  ;;  %v3313_v26 = vpop.f32.mrb[1].mxu1 }
 0x27c   : > { %v1294_v27 = vpop.f32.mrb[2].mxu1 }
 0x27d   : > { %v4241_v28 = vpack.c.bf16 %v1292_v25, %v1292_v25  ;;  %v3314_v29 = vpop.f32.mrb[3].mxu1 }
 0x27f   : > { %1308 = vrot.lane.b32.xlu0 %v4241_v28, %s3816_s13  ;;  %1304 = vrot.lane.b32.xlu1 %v4241_v28, %s3817_s2 }
 0x283   : > { %1306 = vrot.lane.b32.xlu1 %v4241_v28, %s3818_s26 }
 0x287   : > { %1310 = vrot.lane.b32.xlu1 %v4241_v28, %s3819_s14 }
 0x2f1   : > { %v4251_v30 = vpop.permute.xlu1 %1304  ;;  %v4259_v32 = vpop.permute.xlu0 %1308 }
 0x2f2   : > { %1359 = vrot.lane.b32.xlu1 %v4251_v30, %s3819_s14 }
 0x2f5   : > { %v4255_v31 = vpop.permute.xlu1 %1306 }
 0x2f6   : > { %1407 = vrot.lane.b32.xlu1 %v4255_v31, %s3819_s14 }
 0x2f9   : > { %v1311_v33 = vpop.permute.xlu1 %1310 }
 0x2fa   : > { %v1317_v34 = vsel %vm1312_vm3, %v1311_v33, 0  ;;  %1455 = vrot.lane.b32.xlu1 %v4259_v32, %s3819_s14 }
 0x2fb   : > { %3316 = vmatpush3.bf16.xpose.msra.mxu1 %v1317_v34 }
 0x2fc   : > { %3327 = vmatprep.subr.bf16.mxu1 %v3814_v11 }
 0x302   : > { %3318 = vmatmul.mubr.msk.bf16.vlgmr.msra.gmra.mrb[4].mxu1 %vm1312_vm3, %v4241_v28 }
 0x303   : > { %3329 = vmatprep.mubr.msk.bf16.mxu1 %vm3815_vm2, %v3814_v11 }
 0x364   : > { %v1360_v35 = vpop.permute.xlu1 %1359 }
 0x365   : > { %v1365_v36 = vsel %vm1312_vm3, %v1360_v35, 0 }
 0x366   : > { %3322 = vmatpush3.bf16.xpose.msra.mxu0 %v1365_v36 }
 0x367   : > { %3333 = vmatprep.subr.bf16.mxu0 %v3814_v11 }
 0x368   : > { %v1408_v37 = vpop.permute.xlu1 %1407 }
 0x369   : > { %v1413_v38 = vsel %vm1312_vm3, %v1408_v37, 0 }
 0x36a   : > { %3328 = vmatpush3.bf16.xpose.msra.mxu1 %v1413_v38 }
 0x36b   : > { %3339 = vmatprep.subr.bf16.mxu1 %v3814_v11 }
 0x36c   : > { %v1456_v39 = vpop.permute.xlu1 %1455 }
 0x36d   : > { %v1461_v40 = vsel %vm1312_vm3, %v1456_v39, 0  ;;  %3324 = vmatmul.mubr.msk.bf16.vlgmr.msra.gmra.mrb[0].mxu0 %vm1312_vm3, %v4251_v30 }
 0x36e   : > { %3334 = vmatpush3.bf16.xpose.msra.mxu0 %v1461_v40  ;;  %3335 = vmatprep.mubr.msk.bf16.mxu0 %vm3815_vm2, %v3814_v11 }
 0x36f   : > { %3345 = vmatprep.subr.bf16.mxu0 %v3814_v11 }
 0x371   : > { %3330 = vmatmul.mubr.msk.bf16.vlgmr.msra.gmra.mrb[8].mxu1 %vm1312_vm3, %v4255_v31 }
 0x372   : > { %3341 = vmatprep.mubr.msk.bf16.mxu1 %vm3815_vm2, %v3814_v11 }
 0x375   : > { %3336 = vmatmul.mubr.msk.bf16.vlgmr.msra.gmra.mrb[4].mxu0 %vm1312_vm3, %v4259_v32 }
 0x376   : > { %3347 = vmatprep.mubr.msk.bf16.mxu0 %vm3815_vm2, %v3814_v11 }
 0x3d5   : > { %v1353_v41 = vpop.f32.mrb[4].mxu1 }
 0x3d6   : > { %v1503_v42 = vmul.f32 0.35355338, %v1353_v41  ;;  %v3319_v43 = vpop.f32.mrb[5].mxu1 }
 0x3d7   : > { %v1356_v44 = vpop.f32.mrb[6].mxu1 }
 0x3d8   : > { %v3320_v45 = vpop.f32.mrb[7].mxu1  ;;  %v1507_v46 = vsel %vm1312_vm3, %v1503_v42, -inf }
 0x3d9   : > { %1508 = vmax.xlane.f32.xlu1 %v1507_v46 }
 0x440   : > { %v1401_v47 = vpop.f32.mrb[0].mxu0 }
 0x441   : > { %v1504_v48 = vmul.f32 0.35355338, %v1401_v47  ;;  %v3325_v49 = vpop.f32.mrb[1].mxu0 }
 0x442   : > { %v1404_v50 = vpop.f32.mrb[2].mxu0 }
 0x443   : > { %v3326_v51 = vpop.f32.mrb[3].mxu0  ;;  %v1510_v52 = vsel %vm1312_vm3, %v1504_v48, -inf }
 0x444   : > { %1511 = vmax.xlane.f32.xlu0 %v1510_v52  ;;  %v1449_v53 = vpop.f32.mrb[8].mxu1 }
 0x445   : > { %v1505_v54 = vmul.f32 0.35355338, %v1449_v53  ;;  %v3331_v55 = vpop.f32.mrb[9].mxu1 }
 0x446   : > { %v1452_v56 = vpop.f32.mrb[10].mxu1 }
 0x447   : > { %v3332_v57 = vpop.f32.mrb[11].mxu1  ;;  %v1513_v58 = vsel %vm1312_vm3, %v1505_v54, -inf }
 0x448   : > { %v1497_v59 = vpop.f32.mrb[4].mxu0  ;;  %1514 = vmax.xlane.f32.xlu1 %v1513_v58 }
 0x449   : > { %v1506_v60 = vmul.f32 0.35355338, %v1497_v59  ;;  %v3337_v61 = vpop.f32.mrb[5].mxu0  ;;  %v3580_v59 = vld [vmem:[%s4812_s16] sm:$0xff]  }
 0x44a   : > { %v1500_v62 = vpop.f32.mrb[6].mxu0 }
 0x44b   : > { %v3338_v63 = vpop.f32.mrb[7].mxu0  ;;  %v1516_v0 = vsel %vm1312_vm3, %v1506_v60, -inf }
 0x44c   : > { %1517 = vmax.xlane.f32.xlu0 %v1516_v0 }
 0x459   : > { %1555 = vrot.lane.b32.xlu1 %v4241_v28, %s3820_s15 }
 0x466   : > { %v1509_v1 = vpop.xlane.xlu1 %1508 }
 0x467   : > { %v1519_v2 = vsub.f32 %v1503_v42, %v1509_v1 }
 0x469   : > { %v1523_v4 = vmul.f32 1.442695, %v1519_v2 }
 0x46b   : > { %3596 = vpow2.f32 %v1523_v4 }
 0x475   : > { %v3597_v5 = vpop.eup %3596 }
 0x476   : > { %v1531_v6 = vsel %vm1312_vm3, %v3597_v5, 0.0 }
 0x47d   : > { %1532 = vadd.xlane.f32.xlu1 %v1531_v6 }
 0x4d1   : > { %v1512_v7 = vpop.xlane.xlu0 %1511 }
 0x4d2   : > { %v1520_v8 = vsub.f32 %v1504_v48, %v1512_v7 }
 0x4d4   : > { %v1525_v9 = vmul.f32 1.442695, %v1520_v8 }
 0x4d5   : > { %v1515_v10 = vpop.xlane.xlu1 %1514 }
 0x4d6   : > { %3598 = vpow2.f32 %v1525_v9  ;;  %v1521_v12 = vsub.f32 %v1505_v54, %v1515_v10 }
 0x4d8   : > { %v1527_v13 = vmul.f32 1.442695, %v1521_v12 }
 0x4d9   : > { %v1518_v14 = vpop.xlane.xlu0 %1517  ;;  %v1556_v15 = vpop.permute.xlu1 %1555 }
 0x4da   : > { %3600 = vpow2.f32 %v1527_v13  ;;  %v1522_v16 = vsub.f32 %v1506_v60, %v1518_v14  ;;  %v1562_v17 = vsel %vm1560_vm4, %v1556_v15, 0  ;;  %v3581_v60 = vld [vmem:[%s4812_s16 + $0x8] sm:$0xff]   ;;  %s4816_s16 = sld [smem:[#allocation27_spill]] }
 0x4db   : > { %3340 = vmatpush3.bf16.msra.mxu1 %v1562_v17 }
 0x4dc   : > { %v1529_v18 = vmul.f32 1.442695, %v1522_v16  ;;  %3351 = vmatprep.subr.bf16.mxu1 %v3814_v11 }
 0x4de   : > { %3602 = vpow2.f32 %v1529_v18  ;;  %v3194_v18 = vld [vmem:[%s4814_s3] ss:$0 sm:$0xff] }
 0x4e0   : > { %v3599_v19 = vpop.eup %3598 }
 0x4e1   : > { %v1534_v20 = vsel %vm1312_vm3, %v3599_v19, 0.0 }
 0x4e2   : > { %1535 = vadd.xlane.f32.xlu0 %v1534_v20 }
 0x4e4   : > { %v3601_v21 = vpop.eup %3600 }
 0x4e5   : > { %v1537_v22 = vsel %vm1312_vm3, %v3601_v21, 0.0 }
 0x4e6   : > { %1538 = vadd.xlane.f32.xlu1 %v1537_v22 }
 0x4e8   : > { %v3603_v23 = vpop.eup %3602 }
 0x4e9   : > { %v1540_v24 = vsel %vm1312_vm3, %v3603_v23, 0.0 }
 0x4ea   : > { %1541 = vadd.xlane.f32.xlu0 %v1540_v24 }
 0x4f7   : > { %1652 = vrot.lane.b32.xlu1 %v4255_v31, %s3820_s15 }
 0x4fb   : > { %1700 = vrot.lane.b32.xlu1 %v4259_v32, %s3820_s15 }
 0x500   : > { %1604 = vrot.lane.b32.xlu0 %v4251_v30, %s3820_s15  ;;  %s4815_s15 = sld [smem:[#allocation31_spill]] }
 0x50a   : > { %v1533_v25 = vpop.xlane.xlu1 %1532 }
 0x50b   : > { %3604 = vrcp.f32 %v1533_v25 }
 0x515   : > { %v3605_v26 = vpop.eup %3604 }
 0x516   : > { %v1544_v27 = vmul.f32 %v3605_v26, %v3597_v5 }
 0x518   : > { %v1551_v28 = vpack.c.bf16 %v1544_v27, %v1544_v27  ;;  %v1827_v44 = vsel %vm1312_vm3, %v1544_v27, 0.0 }
 0x51a   : > { %3342 = vmatmul.mubr.msk.bf16.vlgmr.msra.gmra.mrb[12].mxu1 %vm1312_vm3, %v1551_v28 }
 0x51b   : > { %3353 = vmatprep.mubr.msk.bf16.mxu1 %vm3815_vm2, %v3814_v11 }
 0x56f   : > { %v1536_v29 = vpop.xlane.xlu0 %1535 }
 0x570   : > { %3606 = vrcp.f32 %v1536_v29 }
 0x573   : > { %v1539_v33 = vpop.xlane.xlu1 %1538 }
 0x574   : > { %3608 = vrcp.f32 %v1539_v33 }
 0x577   : > { %v1542_v31 = vpop.xlane.xlu0 %1541  ;;  %v1653_v34 = vpop.permute.xlu1 %1652 }
 0x578   : > { %3610 = vrcp.f32 %v1542_v31  ;;  %v1658_v32 = vsel %vm1560_vm4, %v1653_v34, 0  ;;  %v3582_v31 = vld [vmem:[%s4815_s15] sm:$0xff]  }
 0x579   : > { %3352 = vmatpush3.bf16.msra.mxu1 %v1658_v32  ;;  %v1198_v34 = vld [vmem:[%s4816_s16] sm:$0xff]  ;;  %s4818_s16 = sld [smem:[#allocation43_spill]] }
 0x57a   : > { %v3607_v30 = vpop.eup %3606  ;;  %3363 = vmatprep.subr.bf16.mxu1 %v3814_v11  ;;  %v1938_v32 = vpack.c.bf16 %v1198_v34, %v1198_v34 }
 0x57b   : > { %v1546_v35 = vmul.f32 %v3607_v30, %v3599_v19  ;;  %v1605_v36 = vpop.permute.xlu0 %1604  ;;  %v1701_v38 = vpop.permute.xlu1 %1700 }
 0x57c   : > { %v1610_v37 = vsel %vm1560_vm4, %v1605_v36, 0  ;;  %v1706_v43 = vsel %vm1560_vm4, %v1701_v38, 0 }
 0x57d   : > { %3346 = vmatpush3.bf16.msra.mxu0 %v1610_v37  ;;  %v1552_v39 = vpack.c.bf16 %v1546_v35, %v1546_v35  ;;  %v1828_v41 = vsel %vm1312_vm3, %v1546_v35, 0.0 }
 0x57e   : > { %v3609_v40 = vpop.eup %3608  ;;  %3357 = vmatprep.subr.bf16.mxu0 %v3814_v11  ;;  %v1829_v48 = vadd.f32 %v1828_v41, %v1827_v44 }
 0x57f   : > { %v1548_v42 = vmul.f32 %v3609_v40, %v3601_v21  ;;  %v3198_v40 = vld [vmem:[%s1177_s5] ss:$0 sm:$0xff]  ;;  %s4819_s25 = scalar_lea.vmem %s4818_s16, %s4101_s30  ;;  %s4828_s5 = sld [smem:[#allocation48_spill]] }
 0x580   : > { %3348 = vmatmul.mubr.msk.bf16.vlgmr.msra.gmra.mrb[8].mxu0 %vm1312_vm3, %v1552_v39 }
 0x581   : > { %v1830_v45 = vsel %vm1312_vm3, %v1548_v42, 0.0  ;;  %3358 = vmatpush3.bf16.msra.mxu0 %v1706_v43  ;;  %v1553_v46 = vpack.c.bf16 %v1548_v42, %v1548_v42  ;;  %3359 = vmatprep.mubr.msk.bf16.mxu0 %vm3815_vm2, %v3814_v11  ;;  %v3199_v42 = vld [vmem:[%s1180_s6] ss:$0 sm:$0xff] }
 0x582   : > { %v3611_v47 = vpop.eup %3610  ;;  %3371 = vmatprep.subr.bf16.mxu0 %v3814_v11  ;;  %v1831_v50 = vadd.f32 %v1830_v45, %v1829_v48 }
 0x583   : > { %v1550_v49 = vmul.f32 %v3611_v47, %v3603_v23  ;;  %3354 = vmatmul.mubr.msk.bf16.vlgmr.msra.gmra.mrb[16].mxu1 %vm1312_vm3, %v1553_v46  ;;  %v3204_v46 = vld [vmem:[%s4819_s25] ss:$0 sm:$0xff] }
 0x584   : > { %3367 = vmatprep.mubr.msk.bf16.mxu1 %vm3815_vm2, %v3814_v11  ;;  %3364 = vmatpush3.bf16.msra.mxu1 %v3580_v59 }
 0x585   : > { %v1832_v51 = vsel %vm1312_vm3, %v1550_v49, 0.0  ;;  %v1554_v52 = vpack.c.bf16 %v1550_v49, %v1550_v49  ;;  %3365 = vmatprep.subr.bf16.mxu1 %v3814_v11  ;;  %s4829_s6 = scalar_lea.vmem %s4828_s5, %s4101_s30 }
 0x586   : > { %v1833_v53 = vadd.f32 %v1832_v51, %v1831_v50 }
 0x588   : > { %v1834_v54 = vmul.f32 0.25, %v1833_v53  ;;  %3360 = vmatmul.mubr.msk.bf16.vlgmr.msra.gmra.mrb[12].mxu0 %vm1312_vm3, %v1554_v52  ;;  %3366 = vmatpush3.bf16.msra.mxu1 %v3581_v60 }
 0x589   : > { %3375 = vmatprep.mubr.msk.bf16.mxu0 %vm3815_vm2, %v3814_v11  ;;  %3379 = vmatprep.subr.bf16.mxu1 %v3814_v11 }
 0x58a   : > { %2717 = vst.msk [vmem:[%s4732_s21] sm:$0xff] %vm1312_vm3, %v1834_v54  ;;  %s4817_s21 = sld [smem:[#allocation30_spill]] }
 0x590   : > { %v3584_v30 = vld [vmem:[%s4817_s21] sm:$0xff]   ;;  %v3585_v35 = vld [vmem:[%s4817_s21 + $0x8] sm:$0xff]  }
 0x591   : > { %3372 = vmatpush3.bf16.msra.mxu0 %v3584_v30 }
 0x592   : > { %3373 = vmatprep.subr.bf16.mxu0 %v3814_v11 }
 0x595   : > { %3374 = vmatpush3.bf16.msra.mxu0 %v3585_v35 }
 0x596   : > { %3387 = vmatprep.subr.bf16.mxu0 %v3814_v11 }
 0x5ed   : > { %v1598_v55 = vpop.f32.mrb[12].mxu1 }
 0x5ee   : > { %v3343_v56 = vpop.f32.mrb[13].mxu1 }
 0x5ef   : > { %v1601_v57 = vpop.f32.mrb[14].mxu1  ;;  %v3200_v56 = vld [vmem:[%s4821_s7] ss:$0 sm:$0xff]  ;;  %s4830_s7 = sld [smem:[#allocation51_spill]] (!%p3232_p8) }
 0x5f0   : > { %v3344_v58 = vpop.f32.mrb[15].mxu1 }
 0x653   : > { %v1646_v61 = vpop.f32.mrb[8].mxu0 }
 0x654   : > { %1749 = vrot.lane.b32.xlu0 %v1646_v61, %s3821_s24  ;;  %v3349_v62 = vpop.f32.mrb[9].mxu0 }
 0x655   : > { %v1649_v63 = vpop.f32.mrb[10].mxu0 }
 0x656   : > { %v3350_v0 = vpop.f32.mrb[11].mxu0  ;;  %v1694_v1 = vpop.f32.mrb[16].mxu1 }
 0x657   : > { %1753 = vrot.lane.b32.xlu1 %v1694_v1, %s3822_s22  ;;  %v3355_v2 = vpop.f32.mrb[17].mxu1 }
 0x658   : > { %v1697_v4 = vpop.f32.mrb[18].mxu1 }
 0x659   : > { %v3356_v5 = vpop.f32.mrb[19].mxu1 }
 0x65b   : > { %v1742_v6 = vpop.f32.mrb[12].mxu0 }
 0x65c   : > { %1757 = vrot.lane.b32.xlu0 %v1742_v6, %s3823_s10  ;;  %v3361_v7 = vpop.f32.mrb[13].mxu0 }
 0x65d   : > { %v1745_v8 = vpop.f32.mrb[14].mxu0 }
 0x65e   : > { %v3362_v9 = vpop.f32.mrb[15].mxu0 }
 0x6c6   : > { %v1750_v10 = vpop.permute.xlu0 %1749 }
 0x6c7   : > { %v1760_v13 = vsel %vm1312_vm3, %v1598_v55, %v1750_v10 }
 0x6c9   : > { %v1754_v12 = vpop.permute.xlu1 %1753 }
 0x6ca   : > { %v1762_v14 = vsel %vm1761_vm5, %v1760_v13, %v1754_v12 }
 0x6ce   : > { %v1758_v15 = vpop.permute.xlu0 %1757 }
 0x6cf   : > { %v1764_v16 = vsel %vm1763_vm6, %v1762_v14, %v1758_v15 }
 0x6d0   : > { %v1765_v17 = vpack.c.bf16 %v1764_v16, %v1764_v16 }
 0x6d2   : > { %3368 = vmatmul.mubr.msk.bf16.vlgmr.msra.gmra.mrb[20].mxu1 %vm1201_vm1, %v1765_v17 }
 0x6d3   : > { %3383 = vmatprep.mubr.msk.bf16.mxu1 %vm3815_vm2, %v3814_v11  ;;  %3380 = vmatpush3.bf16.msra.mxu1 %v3582_v31 }
 0x6d4   : > { %3381 = vmatprep.subr.bf16.mxu1 %v3814_v11 }
 0x7a5   : > { %v1821_v19 = vpop.f32.mrb[20].mxu1 }
 0x7a6   : > { %v1822_v20 = vadd.f32 %v3194_v18, %v1821_v19  ;;  %v3369_v21 = vpop.f32.mrb[21].mxu1 }
 0x7a7   : > { %v1824_v22 = vpop.f32.mrb[22].mxu1 }
 0x7a8   : > { %v4349_v23 = vadd.f32 %v1822_v20, %v4207_v3  ;;  %v3370_v24 = vpop.f32.mrb[23].mxu1  ;;  %v3583_v3 = vld [vmem:[%s4815_s15 + $0x8] sm:$0xff]   ;;  %s4826_s15 = sld [smem:[#allocation46_spill]] }
 0x7a9   : > { %3382 = vmatpush3.bf16.msra.mxu1 %v3583_v3 }
 0x7aa   : > { %v1838_v25 = vsel %vm1201_vm1, %v4349_v23, 0.0  ;;  %3393 = vmatprep.subr.bf16.mxu1 %v3814_v11 }
 0x7ab   : > { %1839 = vadd.xlane.f32.xlu1 %v1838_v25 }
 0x7ac   : > { %3384 = vmatmul.mubr.msk.bf16.vlgmr.msra.gmra.mrb[24].mxu1 %vm1201_vm1, %v1938_v32 }
 0x7ad   : > { %3395 = vmatprep.mubr.msk.bf16.mxu1 %vm3815_vm2, %v3814_v11 }
 0x7ae   : > { %s4827_s16 = scalar_lea.vmem %s4826_s15, %s4101_s30 }
 0x838   : > { %v1840_v26 = vpop.xlane.xlu1 %1839 }
 0x839   : > { %v1841_v27 = vmul.f32 0.03125, %v1840_v26 }
 0x83b   : > { %v1842_v28 = vsub.f32 %v4349_v23, %v1841_v27 }
 0x83d   : > { %v1843_v29 = vmul.f32 %v1842_v28, %v1842_v28 }
 0x83f   : > { %v1844_v33 = vsel %vm1201_vm1, %v1843_v29, 0.0 }
 0x840   : > { %1845 = vadd.xlane.f32.xlu0 %v1844_v33 }
 0x87f   : > { %v1994_v47 = vpop.f32.mrb[24].mxu1 }
 0x880   : > { %v1995_v48 = vadd.f32 %v3204_v46, %v1994_v47  ;;  %v3385_v49 = vpop.f32.mrb[25].mxu1 }
 0x881   : > { %v1997_v50 = vpop.f32.mrb[26].mxu1 }
 0x882   : > { %v4385_v51 = vpack.c.bf16 %v1995_v48, %v1995_v48  ;;  %v3386_v52 = vpop.f32.mrb[27].mxu1 }
 0x884   : > { %2014 = vrot.lane.b32.xlu0 %v4385_v51, %s3817_s2  ;;  %v2024_v53 = vsel %vm1312_vm3, %v4385_v51, 0  ;;  %2016 = vrot.lane.b32.xlu1 %v4385_v51, %s3818_s26 }
 0x888   : > { %2018 = vrot.lane.b32.xlu0 %v4385_v51, %s3816_s13 }
 0x8cd   : > { %v1846_v36 = vpop.xlane.xlu0 %1845 }
 0x8ce   : > { %v1847_v37 = vmul.f32 0.03125, %v1846_v36 }
 0x8d0   : > { %v1848_v38 = vadd.f32 1e-06, %v1847_v37 }
 0x8d2   : > { %3612 = vrsqrt.f32 %v1848_v38 }
 0x8dc   : > { %v3613_v39 = vpop.eup %3612 }
 0x8dd   : > { %v1850_v41 = vmul.f32 %v3613_v39, %v1842_v28 }
 0x8df   : > { %v1857_v43 = vmul.f32 %v3198_v40, %v1850_v41 }
 0x8e1   : > { %v1864_v44 = vadd.f32 %v3199_v42, %v1857_v43 }
 0x8e3   : > { %v1870_v45 = vpack.c.bf16 %v1864_v44, %v1864_v44 }
 0x8e5   : > { %3376 = vmatmul.mubr.msk.bf16.vlgmr.msra.gmra.mrb[16].mxu0 %vm1201_vm1, %v1870_v45 }
 0x8e6   : > { %3389 = vmatprep.mubr.msk.bf16.mxu0 %vm3815_vm2, %v3814_v11  ;;  %3388 = vmatpush3.bf16.xpose.msra.mxu0 %v2024_v53 }
 0x8e7   : > { %3399 = vmatprep.subr.bf16.mxu0 %v3814_v11 }
 0x8f6   : > { %v2015_v54 = vpop.permute.xlu0 %2014  ;;  %v4403_v60 = vpop.permute.xlu1 %2016 }
 0x8f7   : > { %v2070_v55 = vsel %vm1312_vm3, %v2015_v54, 0  ;;  %v2116_v0 = vsel %vm1312_vm3, %v4403_v60, 0 }
 0x8f8   : > { %3394 = vmatpush3.bf16.xpose.msra.mxu1 %v2070_v55 }
 0x8f9   : > { %3405 = vmatprep.subr.bf16.mxu1 %v3814_v11 }
 0x8fa   : > { %v4414_v1 = vpop.permute.xlu0 %2018 }
 0x8fb   : > { %v2162_v4 = vsel %vm1312_vm3, %v4414_v1, 0 }
 0x9b8   : > { %v1926_v57 = vpop.f32.mrb[16].mxu0 }
 0x9b9   : > { %v1927_v58 = vadd.f32 %v3200_v56, %v1926_v57  ;;  %v3377_v59 = vpop.f32.mrb[17].mxu0 }
 0x9ba   : > { %v1929_v61 = vpop.f32.mrb[18].mxu0 }
 0x9bb   : > { %v1932_v62 = vpack.c.bf16 %v1927_v58, %v1927_v58  ;;  %v3378_v63 = vpop.f32.mrb[19].mxu0 }
 0x9bd   : > { %2007 = vrot.lane.b32.xlu1 %v1932_v62, %s3817_s2  ;;  %2011 = vrot.lane.b32.xlu0 %v1932_v62, %s3816_s13  ;;  %s4822_s2 = scalar_lea.vmem %s4687_s12, %s4101_s30 }
 0x9be   : > { %3390 = vmatmul.mubr.msk.bf16.vlgmr.msra.gmra.mrb[20].mxu0 %vm1312_vm3, %v1932_v62 }
 0x9bf   : > { %3400 = vmatpush3.bf16.xpose.msra.mxu0 %v2116_v0  ;;  %3401 = vmatprep.mubr.msk.bf16.mxu0 %vm3815_vm2, %v3814_v11 }
 0x9c0   : > { %3411 = vmatprep.subr.bf16.mxu0 %v3814_v11 }
 0x9c1   : > { %2009 = vrot.lane.b32.xlu1 %v1932_v62, %s3818_s26  ;;  %s4823_s26 = sld [smem:[#allocation32_spill]] }
 0xa2f   : > { %v2008_v2 = vpop.permute.xlu1 %2007  ;;  %v2012_v6 = vpop.permute.xlu0 %2011 }
 0xa30   : > { %3396 = vmatmul.mubr.msk.bf16.vlgmr.msra.gmra.mrb[28].mxu1 %vm1312_vm3, %v2008_v2 }
 0xa31   : > { %3406 = vmatpush3.bf16.xpose.msra.mxu1 %v2162_v4  ;;  %3407 = vmatprep.mubr.msk.bf16.mxu1 %vm3815_vm2, %v3814_v11 }
 0xa32   : > { %3417 = vmatprep.subr.bf16.mxu1 %v3814_v11 }
 0xa33   : > { %v2010_v5 = vpop.permute.xlu1 %2009 }
 0xa34   : > { %3402 = vmatmul.mubr.msk.bf16.vlgmr.msra.gmra.mrb[24].mxu0 %vm1312_vm3, %v2010_v5 }
 0xa35   : > { %3413 = vmatprep.mubr.msk.bf16.mxu0 %vm3815_vm2, %v3814_v11 }
 0xa38   : > { %3408 = vmatmul.mubr.msk.bf16.vlgmr.msra.gmra.mrb[32].mxu1 %vm1312_vm3, %v2012_v6 }
 0xa39   : > { %3419 = vmatprep.mubr.msk.bf16.mxu1 %vm3815_vm2, %v3814_v11 }
 0xa91   : > { %v2060_v7 = vpop.f32.mrb[20].mxu0 }
 0xa92   : > { %v2204_v8 = vmul.f32 0.35355338, %v2060_v7  ;;  %v3391_v9 = vpop.f32.mrb[21].mxu0 }
 0xa93   : > { %v2063_v10 = vpop.f32.mrb[22].mxu0 }
 0xa94   : > { %v3392_v12 = vpop.f32.mrb[23].mxu0  ;;  %v2208_v13 = vsel %vm1312_vm3, %v2204_v8, -inf }
 0xa95   : > { %2209 = vmax.xlane.f32.xlu1 %v2208_v13 }
 0xb03   : > { %v2106_v14 = vpop.f32.mrb[28].mxu1 }
 0xb04   : > { %v2205_v15 = vmul.f32 0.35355338, %v2106_v14  ;;  %v3397_v16 = vpop.f32.mrb[29].mxu1 }
 0xb05   : > { %v2109_v17 = vpop.f32.mrb[30].mxu1 }
 0xb06   : > { %v3398_v18 = vpop.f32.mrb[31].mxu1  ;;  %v2211_v19 = vsel %vm1312_vm3, %v2205_v15, -inf }
 0xb07   : > { %v2152_v20 = vpop.f32.mrb[24].mxu0  ;;  %2212 = vmax.xlane.f32.xlu0 %v2211_v19 }
 0xb08   : > { %v2206_v21 = vmul.f32 0.35355338, %v2152_v20  ;;  %v3403_v22 = vpop.f32.mrb[25].mxu0 }
 0xb09   : > { %v2155_v24 = vpop.f32.mrb[26].mxu0 }
 0xb0a   : > { %v3404_v25 = vpop.f32.mrb[27].mxu0  ;;  %v2214_v26 = vsel %vm1312_vm3, %v2206_v21, -inf }
 0xb0b   : > { %2215 = vmax.xlane.f32.xlu0 %v2214_v26  ;;  %v2198_v27 = vpop.f32.mrb[32].mxu1 }
 0xb0c   : > { %v2207_v28 = vmul.f32 0.35355338, %v2198_v27  ;;  %v3409_v29 = vpop.f32.mrb[33].mxu1  ;;  %v3586_v27 = vld [vmem:[%s4151_s9] sm:$0xff]  }
 0xb0d   : > { %v2201_v33 = vpop.f32.mrb[34].mxu1 }
 0xb0e   : > { %v3410_v31 = vpop.f32.mrb[35].mxu1  ;;  %v2217_v3 = vsel %vm1312_vm3, %v2207_v28, -inf }
 0xb0f   : > { %2218 = vmax.xlane.f32.xlu1 %v2217_v3 }
 0xb20   : > { %2304 = vrot.lane.b32.xlu1 %v2015_v54, %s3819_s14 }
 0xb21   : > { %2256 = vrot.lane.b32.xlu0 %v4385_v51, %s3819_s14 }
 0xb22   : > { %v2210_v34 = vpop.xlane.xlu1 %2209 }
 0xb23   : > { %v2220_v32 = vsub.f32 %v2204_v8, %v2210_v34 }
 0xb25   : > { %v2224_v30 = vmul.f32 1.442695, %v2220_v32 }
 0xb27   : > { %3614 = vpow2.f32 %v2224_v30 }
 0xb31   : > { %v3615_v35 = vpop.eup %3614 }
 0xb32   : > { %v2232_v36 = vsel %vm1312_vm3, %v3615_v35, 0.0 }
 0xb40   : > { %2233 = vadd.xlane.f32.xlu0 %v2232_v36 }
 0xb94   : > { %v2213_v37 = vpop.xlane.xlu0 %2212 }
 0xb95   : > { %v2221_v38 = vsub.f32 %v2205_v15, %v2213_v37 }
 0xb97   : > { %v2226_v39 = vmul.f32 1.442695, %v2221_v38 }
 0xb98   : > { %v2216_v40 = vpop.xlane.xlu0 %2215 }
 0xb99   : > { %3616 = vpow2.f32 %v2226_v39  ;;  %v2222_v41 = vsub.f32 %v2206_v21, %v2216_v40 }
 0xb9b   : > { %v2228_v42 = vmul.f32 1.442695, %v2222_v41 }
 0xb9c   : > { %v2257_v43 = vpop.permute.xlu0 %2256  ;;  %v2219_v44 = vpop.xlane.xlu1 %2218 }
 0xb9d   : > { %3618 = vpow2.f32 %v2228_v42  ;;  %v2262_v45 = vsel %vm1560_vm4, %v2257_v43, 0  ;;  %v2223_v46 = vsub.f32 %v2207_v28, %v2219_v44  ;;  %v3587_v28 = vld [vmem:[%s4151_s9 + $0x8] sm:$0xff]  }
 0xb9e   : > { %3412 = vmatpush3.bf16.msra.mxu0 %v2262_v45 }
 0xb9f   : > { %v2230_v47 = vmul.f32 1.442695, %v2223_v46  ;;  %3423 = vmatprep.subr.bf16.mxu0 %v3814_v11 }
 0xba0   : > { %v2305_v48 = vpop.permute.xlu1 %2304 }
 0xba1   : > { %3620 = vpow2.f32 %v2230_v47  ;;  %v2310_v49 = vsel %vm1560_vm4, %v2305_v48, 0  ;;  %v3216_v47 = vld [vmem:[%s4822_s2] ss:$0 sm:$0xff]  ;;  %s4831_s2 = sld [smem:[#allocation52_spill]] (!%p3232_p8) }
 0xba2   : > { %3418 = vmatpush3.bf16.msra.mxu1 %v2310_v49 }
 0xba3   : > { %v3617_v50 = vpop.eup %3616  ;;  %3429 = vmatprep.subr.bf16.mxu1 %v3814_v11 }
 0xba4   : > { %v2235_v51 = vsel %vm1312_vm3, %v3617_v50, 0.0 }
 0xba5   : > { %2236 = vadd.xlane.f32.xlu1 %v2235_v51 }
 0xba7   : > { %v3619_v52 = vpop.eup %3618 }
 0xba8   : > { %v2238_v53 = vsel %vm1312_vm3, %v3619_v52, 0.0 }
 0xba9   : > { %2239 = vadd.xlane.f32.xlu0 %v2238_v53 }
 0xbab   : > { %v3621_v54 = vpop.eup %3620 }
 0xbac   : > { %v2241_v55 = vsel %vm1312_vm3, %v3621_v54, 0.0 }
 0xbad   : > { %2242 = vadd.xlane.f32.xlu1 %v2241_v55 }
 0xbbe   : > { %2352 = vrot.lane.b32.xlu1 %v4403_v60, %s3819_s14 }
 0xbbf   : > { %2400 = vrot.lane.b32.xlu0 %v4414_v1, %s3819_s14 }
 0xbcd   : > { %v2234_v56 = vpop.xlane.xlu0 %2233 }
 0xbce   : > { %3622 = vrcp.f32 %v2234_v56 }
 0xbd8   : > { %v3623_v57 = vpop.eup %3622 }
 0xbd9   : > { %v2245_v58 = vmul.f32 %v3623_v57, %v3615_v35 }
 0xbdb   : > { %v2252_v59 = vpack.c.bf16 %v2245_v58, %v2245_v58  ;;  %v2525_v10 = vsel %vm1312_vm3, %v2245_v58, 0.0 }
 0xbdd   : > { %3414 = vmatmul.mubr.msk.bf16.vlgmr.msra.gmra.mrb[28].mxu0 %vm1312_vm3, %v2252_v59 }
 0xbde   : > { %3425 = vmatprep.mubr.msk.bf16.mxu0 %vm3815_vm2, %v3814_v11 }
 0xc32   : > { %v2237_v61 = vpop.xlane.xlu1 %2236 }
 0xc33   : > { %3624 = vrcp.f32 %v2237_v61  ;;  %v3588_v61 = vld [vmem:[%s4160_s29] sm:$0xff]  }
 0xc36   : > { %v2240_v62 = vpop.xlane.xlu0 %2239 }
 0xc37   : > { %3626 = vrcp.f32 %v2240_v62  ;;  %v3589_v62 = vld [vmem:[%s4160_s29 + $0x8] sm:$0xff]  }
 0xc3a   : > { %v2243_v63 = vpop.xlane.xlu1 %2242  ;;  %v2401_v1 = vpop.permute.xlu0 %2400 }
 0xc3b   : > { %3628 = vrcp.f32 %v2243_v63  ;;  %v2406_v9 = vsel %vm1560_vm4, %v2401_v1, 0  ;;  %v3591_v63 = vld [vmem:[%s4823_s26 + $0x8] sm:$0xff]  }
 0xc3d   : > { %v3625_v60 = vpop.eup %3624 }
 0xc3e   : > { %v2247_v0 = vmul.f32 %v3625_v60, %v3617_v50  ;;  %v2353_v2 = vpop.permute.xlu1 %2352 }
 0xc3f   : > { %v2358_v4 = vsel %vm1560_vm4, %v2353_v2, 0 }
 0xc40   : > { %3424 = vmatpush3.bf16.msra.mxu0 %v2358_v4  ;;  %v2253_v5 = vpack.c.bf16 %v2247_v0, %v2247_v0  ;;  %v2526_v7 = vsel %vm1312_vm3, %v2247_v0, 0.0  ;;  %v3220_v4 = vld [vmem:[%s1183_s11] ss:$0 sm:$0xff] }
 0xc41   : > { %v3627_v6 = vpop.eup %3626  ;;  %3435 = vmatprep.subr.bf16.mxu0 %v3814_v11  ;;  %v2527_v15 = vadd.f32 %v2526_v7, %v2525_v10  ;;  %v3592_v10 = vld [vmem:[%s4823_s26 + $0x10] sm:$0xff]  }
 0xc42   : > { %v2249_v8 = vmul.f32 %v3627_v6, %v3619_v52  ;;  %3420 = vmatmul.mubr.msk.bf16.vlgmr.msra.gmra.mrb[36].mxu1 %vm1312_vm3, %v2253_v5  ;;  %v3221_v6 = vld [vmem:[%s1186_s0] ss:$0 sm:$0xff] }
 0xc43   : > { %3430 = vmatpush3.bf16.msra.mxu1 %v2406_v9  ;;  %3431 = vmatprep.mubr.msk.bf16.mxu1 %vm3815_vm2, %v3814_v11 }
 0xc44   : > { %v2528_v12 = vsel %vm1312_vm3, %v2249_v8, 0.0  ;;  %v2254_v13 = vpack.c.bf16 %v2249_v8, %v2249_v8  ;;  %3443 = vmatprep.subr.bf16.mxu1 %v3814_v11 }
 0xc45   : > { %v3629_v14 = vpop.eup %3628  ;;  %v2529_v17 = vadd.f32 %v2528_v12, %v2527_v15  ;;  %v3593_v12 = vld [vmem:[%s4823_s26 + $0x18] sm:$0xff]  }
 0xc46   : > { %v2251_v16 = vmul.f32 %v3629_v14, %v3621_v54  ;;  %3426 = vmatmul.mubr.msk.bf16.vlgmr.msra.gmra.mrb[32].mxu0 %vm1312_vm3, %v2254_v13  ;;  %v3222_v13 = vld [vmem:[%s4827_s16] ss:$0 sm:$0xff] }
 0xc47   : > { %3439 = vmatprep.mubr.msk.bf16.mxu0 %vm3815_vm2, %v3814_v11  ;;  %3436 = vmatpush3.bf16.msra.mxu0 %v3586_v27 }
 0xc48   : > { %v2530_v18 = vsel %vm1312_vm3, %v2251_v16, 0.0  ;;  %v2255_v19 = vpack.c.bf16 %v2251_v16, %v2251_v16  ;;  %3437 = vmatprep.subr.bf16.mxu0 %v3814_v11 }
 0xc49   : > { %v2531_v20 = vadd.f32 %v2530_v18, %v2529_v17 }
 0xc4a   : > { %3432 = vmatmul.mubr.msk.bf16.vlgmr.msra.gmra.mrb[40].mxu1 %vm1312_vm3, %v2255_v19 }
 0xc4b   : > { %v2532_v21 = vmul.f32 0.25, %v2531_v20  ;;  %3447 = vmatprep.mubr.msk.bf16.mxu1 %vm3815_vm2, %v3814_v11  ;;  %3438 = vmatpush3.bf16.msra.mxu0 %v3587_v28 }
 0xc4c   : > { %3451 = vmatprep.subr.bf16.mxu0 %v3814_v11  ;;  %3444 = vmatpush3.bf16.msra.mxu1 %v3588_v61 }
 0xc4d   : > { %2718 = vst.msk [vmem:[%s4733_s8] sm:$0xff] %vm1312_vm3, %v2532_v21  ;;  %3445 = vmatprep.subr.bf16.mxu1 %v3814_v11 }
 0xc50   : > { %3446 = vmatpush3.bf16.msra.mxu1 %v3589_v62 }
 0xcb0   : > { %v2298_v22 = vpop.f32.mrb[28].mxu0 }
 0xcb1   : > { %v3415_v24 = vpop.f32.mrb[29].mxu0 }
 0xcb2   : > { %v2301_v25 = vpop.f32.mrb[30].mxu0 }
 0xcb3   : > { %v3416_v26 = vpop.f32.mrb[31].mxu0 }
 0xd15   : > { %v2346_v29 = vpop.f32.mrb[36].mxu1 }
 0xd16   : > { %2449 = vrot.lane.b32.xlu1 %v2346_v29, %s3821_s24  ;;  %v3421_v33 = vpop.f32.mrb[37].mxu1 }
 0xd17   : > { %v2349_v31 = vpop.f32.mrb[38].mxu1 }
 0xd18   : > { %v3422_v3 = vpop.f32.mrb[39].mxu1 }
 0xd19   : > { %v2394_v34 = vpop.f32.mrb[32].mxu0 }
 0xd1a   : > { %2453 = vrot.lane.b32.xlu0 %v2394_v34, %s3822_s22  ;;  %v3427_v32 = vpop.f32.mrb[33].mxu0 }
 0xd1b   : > { %v2397_v30 = vpop.f32.mrb[34].mxu0 }
 0xd1c   : > { %v3428_v35 = vpop.f32.mrb[35].mxu0 }
 0xd1d   : > { %v2442_v36 = vpop.f32.mrb[40].mxu1 }
 0xd1e   : > { %2457 = vrot.lane.b32.xlu1 %v2442_v36, %s3823_s10  ;;  %v3433_v37 = vpop.f32.mrb[41].mxu1 }
 0xd1f   : > { %v2445_v38 = vpop.f32.mrb[42].mxu1  ;;  %v3233_v37 = vld [vmem:[%s4830_s7] ss:$0 sm:$0xff] (!%p3232_p8) }
 0xd20   : > { %v3434_v39 = vpop.f32.mrb[43].mxu1 }
 0xd21   : > { %v3234_v39 = vld [vmem:[%s4831_s2] ss:$0 sm:$0xff] (!%p3232_p8) }
 0xd88   : > { %v2450_v40 = vpop.permute.xlu1 %2449 }
 0xd89   : > { %v2460_v42 = vsel %vm1312_vm3, %v2298_v22, %v2450_v40 }
 0xd8c   : > { %v2454_v41 = vpop.permute.xlu0 %2453 }
 0xd8d   : > { %v2461_v43 = vsel %vm1761_vm5, %v2460_v42, %v2454_v41 }
 0xd90   : > { %v2458_v44 = vpop.permute.xlu1 %2457 }
 0xd91   : > { %v2462_v45 = vsel %vm1763_vm6, %v2461_v43, %v2458_v44 }
 0xd92   : > { %v2463_v46 = vpack.c.bf16 %v2462_v45, %v2462_v45 }
 0xd94   : > { %3440 = vmatmul.mubr.msk.bf16.vlgmr.msra.gmra.mrb[36].mxu0 %vm1201_vm1, %v2463_v46 }
 0xd95   : > { %3459 = vmatprep.mubr.msk.bf16.mxu0 %vm3815_vm2, %v3814_v11 }
 0xe67   : > { %v2519_v48 = vpop.f32.mrb[36].mxu0 }
 0xe68   : > { %v2520_v49 = vadd.f32 %v3216_v47, %v2519_v48  ;;  %v3441_v50 = vpop.f32.mrb[37].mxu0 }
 0xe69   : > { %v2522_v51 = vpop.f32.mrb[38].mxu0 }
 0xe6a   : > { %v2533_v52 = vadd.f32 %v2520_v49, %v4349_v23  ;;  %v3442_v53 = vpop.f32.mrb[39].mxu0  ;;  %v3590_v23 = vld [vmem:[%s4823_s26] sm:$0xff]  }
 0xe6b   : > { %3452 = vmatpush3.bf16.msra.mxu0 %v3590_v23 }
 0xe6c   : > { %v2536_v54 = vsel %vm1201_vm1, %v2533_v52, 0.0  ;;  %3453 = vmatprep.subr.bf16.mxu0 %v3814_v11 }
 0xe6d   : > { %2537 = vadd.xlane.f32.xlu0 %v2536_v54 }
 0xe6f   : > { %3454 = vmatpush3.bf16.msra.mxu0 %v3591_v63 }
 0xe70   : > { %3455 = vmatprep.subr.bf16.mxu0 %v3814_v11 }
 0xe73   : > { %3456 = vmatpush3.bf16.msra.mxu0 %v3592_v10 }
 0xe74   : > { %3457 = vmatprep.subr.bf16.mxu0 %v3814_v11  ;;  %v3226_v11 = vld [vmem:[%s4829_s6] ss:$0 sm:$0xff] }
 0xe77   : > { %3458 = vmatpush3.bf16.msra.mxu0 %v3593_v12 }
 0xefa   : > { %v2538_v55 = vpop.xlane.xlu0 %2537 }
 0xefb   : > { %v2539_v56 = vmul.f32 0.03125, %v2538_v55 }
 0xefd   : > { %v2540_v57 = vsub.f32 %v2533_v52, %v2539_v56 }
 0xeff   : > { %v2541_v58 = vmul.f32 %v2540_v57, %v2540_v57 }
 0xf01   : > { %v2542_v59 = vsel %vm1201_vm1, %v2541_v58, 0.0 }
 0xf02   : > { %2543 = vadd.xlane.f32.xlu1 %v2542_v59 }
 0xf8f   : > { %v2544_v60 = vpop.xlane.xlu1 %2543 }
 0xf90   : > { %v2545_v0 = vmul.f32 0.03125, %v2544_v60 }
 0xf92   : > { %v2546_v2 = vadd.f32 1e-06, %v2545_v0 }
 0xf94   : > { %3630 = vrsqrt.f32 %v2546_v2 }
 0xf9e   : > { %v3631_v1 = vpop.eup %3630 }
 0xf9f   : > { %v2548_v5 = vmul.f32 %v3631_v1, %v2540_v57 }
 0xfa1   : > { %v2555_v7 = vmul.f32 %v3220_v4, %v2548_v5 }
 0xfa3   : > { %v2562_v8 = vadd.f32 %v3221_v6, %v2555_v7 }
 0xfa5   : > { %v2568_v9 = vpack.c.bf16 %v2562_v8, %v2562_v8 }
 0xfa7   : > { %3448 = vmatmul.mubr.msk.bf16.vlgmr.msra.gmra.mrb[44].mxu1 %vm1201_vm1, %v2568_v9 }
0x107a   : > { %v2624_v14 = vpop.f32.mrb[44].mxu1 }
0x107b   : > { %v2625_v15 = vadd.f32 %v3222_v13, %v2624_v14  ;;  %v3449_v16 = vpop.f32.mrb[45].mxu1 }
0x107c   : > { %v2627_v17 = vpop.f32.mrb[46].mxu1 }
0x107d   : > { %v2630_v18 = vmax.f32 %v2625_v15, 0.0  ;;  %v3450_v19 = vpop.f32.mrb[47].mxu1 }
0x107f   : > { %v2640_v20 = vpack.c.bf16 %v2630_v18, %v2630_v18 }
0x1081   : > { %3460 = vmatmul.mubr.msk.bf16.vlgmr.msra.gmra.mrb[40].mxu0 %vm2671_vm7, %v2640_v20 }
0x1153   : > { %2722 = sbr.rel (%p3232_p8) target bundleno = 4755 (0x1293), region = 128 }
0x1154   : > { %v2709_v21 = vpop.f32.mrb[40].mxu0 }
0x1155   : > { %v2710_v22 = vadd.f32 %v3226_v11, %v2709_v21  ;;  %v3461_v24 = vpop.f32.mrb[41].mxu0 }
0x1156   : > { %v2712_v25 = vpop.f32.mrb[42].mxu0 }
0x1157   : > { %v2715_v26 = vadd.f32 %v2710_v22, %v2533_v52  ;;  %v3462_v27 = vpop.f32.mrb[43].mxu0 }
0x1159   : > { %2716 = vst.msk [vmem:[#allocation2] sm:$0xff] %vm1201_vm1, %v2715_v26  ;;  %v2725_v28 = vsel (!%p3232_p8), %vm1201_vm1, %v2715_v26, 0.0 }
0x115a   : > { %2726 = vadd.xlane.f32.xlu0 %v2725_v28 }
0x11e7   : > { %v2727_v29 = vpop.xlane.xlu0 %2726 }
0x11e8   : > { %v2728_v33 = vmul.f32 0.03125, %v2727_v29 }
0x11ea   : > { %v2729_v31 = vsub.f32 %v2715_v26, %v2728_v33 }
0x11ec   : > { %v2730_v3 = vmul.f32 %v2729_v31, %v2729_v31 }
0x11ee   : > { %v2731_v34 = vsel %vm1201_vm1, %v2730_v3, 0.0 }
0x11ef   : > { %2732 = vadd.xlane.f32.xlu0 %v2731_v34 }
0x127c   : > { %v2733_v32 = vpop.xlane.xlu0 %2732 }
0x127d   : > { %v2734_v30 = vmul.f32 0.03125, %v2733_v32 }
0x127f   : > { %v2735_v35 = vadd.f32 1e-06, %v2734_v30 }
0x1281   : > { %3632 = vrsqrt.f32 %v2735_v35 }
0x128b   : > { %v3633_v36 = vpop.eup %3632 }
0x128c   : > { %v2737_v38 = vmul.f32 %v3633_v36, %v2729_v31 }
0x128e   : > { %v2744_v40 = vmul.f32 %v3233_v37, %v2737_v38 }
0x1290   : > { %v2751_v41 = vadd.f32 %v3234_v39, %v2744_v40 }
0x1292   : > { %2752 = vst.msk [vmem:[%s1090_s1] sm:$0xff] %vm1201_vm1, %v2751_v41 }
0x1293 PF: > { %s4832_s26 = sld [smem:[#allocation18_spill]]  ;;  %s4834_s14 = sld [smem:[#allocation15_spill]] }
0x1294   : > { %s3239_s10 = sshll.u32 %s3796_s28, 1  ;;  %s4836_s11 = scalar_lea.vmem [#allocation5], %s4095_s27 }
0x1295   : > { %s2792_s15 = sshll.u32 %s4836_s11, 4  ;;  %s4837_s25 = sld [smem:[#allocation54_spill]]  ;;  %s2793_s15 = int_to_ptr.vmem [resolvable:$true] %s2792_s15 }
0x1296   : > { %s3634_s30 = scalar_lea.vmem %s2793_s15, 128  ;;  %s3824_s28 = smov [#allocation5]  }
0x1297   : > { %p3635_p9 = scmp.ne.s32.totalorder %s2793_s15, %s3634_s30  ;;  %s3638_s4 = sshll.u32 %s3824_s28, 4  ;;  %s3639_s4 = int_to_ptr.vmem [resolvable:$false] %s3638_s4 }
0x1298   : > { %s3640_s7 = scalar_lea.vmem %s3639_s4, 256  ;;  %p3641_p0 = scmp.lt.s32.totalorder %s2793_s15, %s3639_s4 }
0x1299   : > { %s4833_s29 = sadd.s32 4294967295, %s4832_s26   ;;  %s4541_s3 = sadd.s32 %s4834_s14, %s3239_s10 }
0x129a   : > { %s4537_s22 = sand.u32 1, %s4833_s29   ;;  %s3240_s21 = sshll.u32 %s4541_s3, 7 }
0x129b   : > { %s4551_s5 = scalar_lea.hbm %s4837_s25, %s3240_s21  ;;  %s2759_s6 = scalar_lea.sflag [#allocation6], %s4537_s22 }
0x129c   : > { %p3636_p10 = pnand %p3635_p9, %p4071_p12  ;;  %p3642_p1 = scmp.lt.s32.totalorder %s3640_s7, %s3634_s30 }
0x129e   : > { %p3637_p11 = pneg %p3636_p10  ;;  %p3643_p4 = por %p3642_p1, %p3641_p0 }
0x12a0   : > { %p3644_p2 = pnand %p3643_p4, %p3637_p11 }
0x12a2   : > { %3647 = shalt.err (!%p3644_p2)
}
0x12a3   : > { %s3648_s9 = scalar_lea.hbm %s4551_s5, 128  ;;  %s3652_s26 = scalar_lea.hbm %s4837_s25, 512 }
0x12a4   : > { %p3649_p5 = scmp.ne.s32.totalorder %s4551_s5, %s3648_s9  ;;  %p3653_p9 = scmp.lt.u32.totalorder %s4551_s5, %s4837_s25 }
0x12a5   : > { %p3654_p10 = scmp.lt.u32.totalorder %s3652_s26, %s3648_s9  ;;  %p3656_p0 = scmp.lt.u32.totalorder %s3648_s9, %s4551_s5 }
0x12a6   : > { %p3650_p6 = pnand %p3649_p5, %p4071_p12 }
0x12a7   : > { %p3655_p11 = por %p3654_p10, %p3653_p9 }
0x12a8   : > { %p3651_p8 = pneg %p3650_p6 }
0x12a9   : > { %p3657_p1 = por %p3656_p0, %p3655_p11 }
0x12ab   : > { %p3658_p4 = pnand %p3657_p1, %p3651_p8 }
0x12ad   : > { %3661 = shalt.err (!%p3658_p4)
}
0x12ae   : > { %s4838_s11 = sld [smem:[#allocation13_spill]]  ;;  %s3238_s0 = sshll.u32 %s4834_s14, 7 }
0x12af   : > { %3464 = dma.vmem_to_hbm [thread:$0]  (%p4071_p12), %s2793_s15, 128, %s4551_s5, %s2759_s6  }
0x12b0   : > { %s4840_s4 = sld [smem:[#allocation53_spill]]  ;;  %s2777_s9 = sshll.u32 %s1090_s1, 4  ;;  %s4581_s9 = int_to_ptr.vmem [resolvable:$true] %s2777_s9 }
0x12b1   : > { %s4842_s29 = sld [smem:[#allocation55_spill]]  ;;  %s3662_s5 = scalar_lea.vmem %s4581_s9, 128 }
0x12b2   : > { %p3663_p2 = scmp.ne.s32.totalorder %s4581_s9, %s3662_s5  ;;  %s3825_s23 = smov [#allocation3]  }
0x12b3   : > { %s3666_s1 = sshll.u32 %s3825_s23, 4  ;;  %s3667_s1 = int_to_ptr.vmem [resolvable:$false] %s3666_s1 }
0x12b4   : > { %s4844_s15 = sand.u32 1, %s4838_s11   ;;  %p3664_p5 = pnand %p3663_p2, %p4040_p3 }
0x12b5   : > { %s2754_s14 = scalar_lea.sflag [#allocation4], %s4844_s15  ;;  %p3669_p8 = scmp.lt.s32.totalorder %s4581_s9, %s3667_s1 }
0x12b6   : > { %s4841_s13 = smov %s4840_s4  ;;  %s4577_s7 = scalar_lea.hbm %s4840_s4, %s3238_s0 }
0x12b7   : > { %s4843_s8 = smov %s4842_s29  ;;  %s4588_s10 = scalar_lea.hbm %s4842_s29, %s3240_s21 }
0x12b8   : > { %p3665_p6 = pneg %p3664_p5  ;;  %s3668_s0 = scalar_lea.vmem %s3667_s1, 256 }
0x12b9   : > { %p3670_p9 = scmp.lt.s32.totalorder %s3668_s0, %s3662_s5 }
0x12bb   : > { %p3671_p10 = por %p3670_p9, %p3669_p8 }
0x12bd   : > { %p3672_p11 = pnand %p3671_p10, %p3665_p6 }
0x12bf   : > { %3675 = shalt.err (!%p3672_p11)
}
0x12c0   : > { %s3676_s3 = scalar_lea.hbm %s4577_s7, 128  ;;  %s3680_s30 = scalar_lea.hbm %s4841_s13, 256 }
0x12c1   : > { %p3677_p0 = scmp.ne.s32.totalorder %s4577_s7, %s3676_s3  ;;  %p3681_p2 = scmp.lt.u32.totalorder %s4577_s7, %s4841_s13 }
0x12c2   : > { %p3682_p5 = scmp.lt.u32.totalorder %s3680_s30, %s3676_s3  ;;  %p3684_p8 = scmp.lt.u32.totalorder %s3676_s3, %s4577_s7 }
0x12c3   : > { %p3678_p1 = pnand %p3677_p0, %p4040_p3 }
0x12c4   : > { %p3683_p6 = por %p3682_p5, %p3681_p2 }
0x12c5   : > { %p3679_p4 = pneg %p3678_p1 }
0x12c6   : > { %p3685_p9 = por %p3684_p8, %p3683_p6 }
0x12c8   : > { %p3686_p10 = pnand %p3685_p9, %p3679_p4 }
0x12ca   : > { %3689 = shalt.err (!%p3686_p10)
}
0x12cb   : > { %3463 = dma.vmem_to_hbm [thread:$0]  (%p4040_p3), %s4581_s9, 128, %s4577_s7, %s2754_s14  }
0x12cc   : > { %s4845_s2 = scalar_lea.vmem [#allocation7], %s4095_s27  ;;  %s3826_s15 = smov [#allocation7]  }
0x12cd   : > { %s2807_s26 = sshll.u32 %s4845_s2, 4  ;;  %s3694_s5 = sshll.u32 %s3826_s15, 4  ;;  %s2808_s26 = int_to_ptr.vmem [resolvable:$true] %s2807_s26  ;;  %s3695_s5 = int_to_ptr.vmem [resolvable:$false] %s3694_s5 }
0x12ce   : > { %s3690_s29 = scalar_lea.vmem %s2808_s26, 128  ;;  %s3696_s23 = scalar_lea.vmem %s3695_s5, 256 }
0x12cf   : > { %p3691_p11 = scmp.ne.s32.totalorder %s2808_s26, %s3690_s29  ;;  %p3697_p4 = scmp.lt.s32.totalorder %s2808_s26, %s3695_s5 }
0x12d0   : > { %p3698_p2 = scmp.lt.s32.totalorder %s3696_s23, %s3690_s29 }
0x12d1   : > { %p3692_p0 = pnand %p3691_p11, %p4071_p12 }
0x12d2   : > { %p3699_p5 = por %p3698_p2, %p3697_p4 }
0x12d3   : > { %p3693_p1 = pneg %p3692_p0 }
0x12d5   : > { %p3700_p6 = pnand %p3699_p5, %p3693_p1 }
0x12d7   : > { %3703 = shalt.err (!%p3700_p6)
}
0x12d8   : > { %s3704_s27 = scalar_lea.hbm %s4588_s10, 128  ;;  %s3708_s9 = scalar_lea.hbm %s4843_s8, 512 }
0x12d9   : > { %p3705_p3 = scmp.ne.s32.totalorder %s4588_s10, %s3704_s27  ;;  %p3709_p10 = scmp.lt.u32.totalorder %s4588_s10, %s4843_s8 }
0x12da   : > { %p3710_p11 = scmp.lt.u32.totalorder %s3708_s9, %s3704_s27  ;;  %p3712_p1 = scmp.lt.u32.totalorder %s3704_s27, %s4588_s10 }
0x12db   : > { %p3706_p8 = pnand %p3705_p3, %p4071_p12 }
0x12dc   : > { %p3711_p0 = por %p3710_p11, %p3709_p10 }
0x12dd   : > { %p3707_p9 = pneg %p3706_p8 }
0x12de   : > { %p3713_p4 = por %p3712_p1, %p3711_p0 }
0x12e0   : > { %p3714_p2 = pnand %p3713_p4, %p3707_p9 }
0x12e2   : > { %3717 = shalt.err (!%p3714_p2)
}
0x12e3   : > { %3465 = dma.vmem_to_hbm [thread:$0]  (%p4071_p12), %s2808_s26, 128, %s4588_s10, %s2759_s6  }
0x12e4 PF: > { %s4846_s0 = sld [smem:[#allocation18_spill]]  ;;  %s4847_s3 = sld [smem:[#allocation12_spill]] }
0x12ea   : > { %p3479_p5 = scmp.ge.s32.totalorder %s4846_s0, 2  ;;  %s2819_s11 = sand.u32 1, %s4847_s3  }
0x12eb   : > { %s2820_s30 = scalar_lea.sflag [#allocation4], %s2819_s11 }
0x12ec   : > { %p3470_p6 = pnand %p3479_p5, %p4059_p7 }
0x12ee   : > { %3763 = dma.done.wait (!%p3470_p6), %s2820_s30, 128  }
0x12ef   : > { %3765 = vsyncadd (!%p3470_p6), %s2820_s30, 4294967168  ;;  %s4849_s28 = sadd.s32 4294967294, %s4846_s0   ;;  %p3473_p3 = pnand %p3479_p5, %p4083_p13 }
0x12f0   : > { %s2828_s2 = sand.u32 1, %s4849_s28  }
0x12f1   : > { %s2829_s24 = scalar_lea.sflag [#allocation6], %s2828_s2 }
0x12f2   : > { %3767 = dma.done.wait (!%p3473_p3), %s2829_s24, 256  }
0x12f3   : > { %3769 = vsyncadd (!%p3473_p3), %s2829_s24, 4294967040  ;;  %s44_s1 = sadd.s32 1, %s4846_s0   ;;  %s4851_s7 = sld [smem:[#allocation10_spill]] }
0x12f4   : > { %p41_p12 = scmp.ge.s32.totalorder %s44_s1, 6   ;;  %s4852_s4 = sld [smem:[#allocation11_spill]] }
0x12f5   : > { %s4853_s22 = sld [smem:[#allocation25_spill]]  ;;  %s4854_s30 = sld [smem:[#allocation13_spill]] }
0x12f6   : > { %s4855_s9 = sld [smem:[#allocation14_spill]]  ;;  %s4856_s5 = sld [smem:[#allocation24_spill]] }
0x12f7   : > { %s4857_s28 = sld [smem:[#allocation16_spill]]  ;;  %s4858_s0 = sld [smem:[#allocation17_spill]] }
0x12f8   : > { %s4859_s10 = sld [smem:[#allocation19_spill]]  ;;  %s4860_s29 = sld [smem:[#allocation21_spill]] }
0x12f9   :  { %43 = sbr.rel (!%p41_p12) target bundleno = 33 (0x21), region = 258 }
0x12fb   : > { %4861 = sst [smem:[#allocation10_spill]] %s4853_s22 }
0x1300   :  { %2843 = vsyncpa [#allocation4], 1 }
0x1301   :  { %2845 = vsyncpa [#allocation4 + $0x1], 1 }
0x1302   :  { %2846 = vsyncpa [#allocation6], 1 }
0x1303   :  { %2848 = vsyncpa [#allocation6 + $0x1], 1 }

</bundles_post_ra>
